<compile_context>
chip_gen: v7x
topology: tpu7x:2x2x1
jax: 0.10.0
libtpu: 0.0.40
codegen_flags: <defaults>
</compile_context>

<pallas_src>
import functools

import jax
import jax.numpy as jnp
from jax import lax
from jax.experimental import pallas as pl
from jax.experimental.pallas import tpu as pltpu

# Small demo shapes (production: H=768, V=30522, S up to 512).
B = 2       # batch
S = 16      # sequence length
H = 128     # hidden size of the (stand-in) transformer
V = 1000    # vocab size; deliberately NOT a multiple of 128 to exercise padding

TV = 512    # vocab tile: lane-dense, multiple of 256 (v6e/v7x MXU N fill)
S_SUB = 32  # sequence positions per M-subtile -> sub_m = S_SUB * b_pad (256 for b_pad=8)


def _splade_kernel(h_ref, w_ref, b_ref, m_ref, o_ref, *, b_pad, s_sub, n_sub, agg):
    """One vocab tile (one grid step).

    h_ref : [m_pad, H]   bf16   resident hidden states, row layout [s_pad, b_pad] flat
    w_ref : [H, TV]      bf16   streamed vocab-projection tile
    b_ref : [1, TV]      f32    vocab-projection bias tile
    m_ref : [m_pad, 1]   f32    resident attention mask (0/1), same row layout as h
    o_ref : [b_pad, TV]  f32    pooled SPLADE values for this vocab tile
    """
    sub_m = s_sub * b_pad
    w = w_ref[...]
    bias = b_ref[...]

    def body(i, acc):
        start = pl.multiple_of(i * sub_m, sub_m)
        h_blk = h_ref[pl.ds(start, sub_m), :]     # [sub_m, H]  sublane-aligned slice
        m_blk = m_ref[pl.ds(start, sub_m), :]     # [sub_m, 1]
        # MLM-head projection on the MXU (bf16 inputs, f32 accumulation).
        logits = jnp.dot(h_blk, w, preferred_element_type=jnp.float32) + bias
        # SPLADE activation: log(1 + relu(logits)) * mask   (all f32 / VPU+EUP).
        # act >= 0, so a zero-initialised max accumulator is correct.
        act = jnp.log1p(jnp.maximum(logits, 0.0)) * m_blk           # [sub_m, TV]
        # Sequence reduction: elementwise running max/sum on static,
        # sublane-aligned [b_pad, TV] slices — pure VPU work, no XLU reduce.
        for t in range(s_sub):
            blk = act[t * b_pad:(t + 1) * b_pad, :]
            acc = jnp.maximum(acc, blk) if agg == "max" else acc + blk
        return acc

    acc0 = jnp.zeros((b_pad, o_ref.shape[1]), jnp.float32)
    acc = lax.fori_loop(0, n_sub, body, acc0, unroll=(n_sub <= 4))
    o_ref[...] = acc                                   # lane-dense unmasked store


def splade_forward(hidden, w_vocab, b_vocab, attention_mask, agg="max",
                   tv=TV, s_sub=S_SUB):
    """hidden: [B, S, H] f32, attention_mask: [B, S] -> [B, V] f32."""
    assert agg in ("sum", "max")
    batch, seq, hid = hidden.shape
    vocab = w_vocab.shape[1]
    assert tv % 256 == 0

    b_pad = ((batch + 7) // 8) * 8              # fill all 8 output sublanes
    s_pad = ((seq + s_sub - 1) // s_sub) * s_sub
    m_pad = s_pad * b_pad                       # total token rows (resident)
    n_sub = s_pad // s_sub                      # in-kernel M-subtiles
    v_pad = ((vocab + tv - 1) // tv) * tv       # pad vocab to a whole tile count

    # Token layout [S, B, H] flattened, so each [b_pad, TV] slice of the
    # activation is one sequence position for the whole (padded) batch.
    # Padded batch/sequence rows carry mask = 0 -> act = 0 (identity for both aggs).
    h = jnp.transpose(hidden, (1, 0, 2))
    h = jnp.pad(h, ((0, s_pad - seq), (0, b_pad - batch), (0, 0)))
    h_flat = h.reshape(m_pad, hid).astype(jnp.bfloat16)

    m = jnp.transpose(attention_mask.astype(jnp.float32), (1, 0))
    m = jnp.pad(m, ((0, s_pad - seq), (0, b_pad - batch)))
    m_flat = m.reshape(m_pad, 1)

    # Zero-pad the vocab axis: zero W columns + zero bias -> act = 0 there.
    w_p = jnp.pad(w_vocab, ((0, 0), (0, v_pad - vocab))).astype(jnp.bfloat16)
    b_p = jnp.pad(b_vocab, (0, v_pad - vocab)).reshape(1, v_pad).astype(jnp.float32)

    kernel = functools.partial(_splade_kernel, b_pad=b_pad, s_sub=s_sub,
                               n_sub=n_sub, agg=agg)

    # Explicit VMEM accounting (hidden/mask resident, W/bias/out double-buffered),
    # clamped well under v7x's 64 MiB per-TC budget.
    vmem_bytes = (
        2 * m_pad * hid * 2          # hidden bf16 (x2 in case it is double-buffered)
        + 2 * m_pad * 4              # mask f32
        + 2 * hid * tv * 2           # W tile bf16, double-buffered
        + 2 * tv * 4                 # bias tile
        + 2 * b_pad * tv * 4         # output tile
    )
    vmem_limit = int(min(max(2 * vmem_bytes, 16 * 1024 * 1024), 48 * 1024 * 1024))

    # TODO(synk): at prod shapes, force single-buffering of the resident hidden
    # (pipeline_mode=pl.Buffered(1)) to save ~6 MB of VMEM on v7x.
    grid = (v_pad // tv,)                       # single vocab-tile axis
    out = pl.pallas_call(
        kernel,
        out_shape=jax.ShapeDtypeStruct((b_pad, v_pad), jnp.float32),
        grid_spec=pltpu.PrefetchScalarGridSpec(
            num_scalar_prefetch=0,
            grid=grid,
            in_specs=[
                pl.BlockSpec((m_pad, hid), lambda j: (0, 0)),   # hidden: VMEM-resident
                pl.BlockSpec((hid, tv), lambda j: (0, j)),      # W: streamed per vocab tile
                pl.BlockSpec((1, tv), lambda j: (0, j)),        # bias tile
                pl.BlockSpec((m_pad, 1), lambda j: (0, 0)),     # mask: VMEM-resident
            ],
            out_specs=pl.BlockSpec((b_pad, tv), lambda j: (0, j)),
        ),
        compiler_params=pltpu.CompilerParams(
            dimension_semantics=("parallel",),   # vocab tiles shard across v7x's 2 TCs
            vmem_limit_bytes=vmem_limit,
        ),
    )(h_flat, w_p, b_p, m_flat)

    return out[:batch, :vocab]


def splade_reference(hidden, w_vocab, b_vocab, attention_mask, agg="max"):
    # Reference uses the same bf16-cast operands so numerics are comparable.
    h = hidden.astype(jnp.bfloat16).astype(jnp.float32)
    w = w_vocab.astype(jnp.bfloat16).astype(jnp.float32)
    logits = jnp.einsum("bsh,hv->bsv", h, w,
                        preferred_element_type=jnp.float32) + b_vocab[None, None, :]
    act = jnp.log1p(jax.nn.relu(logits)) * attention_mask[..., None].astype(jnp.float32)
    return jnp.max(act, axis=1) if agg == "max" else jnp.sum(act, axis=1)


if __name__ == "__main__":
    # TODO(synk): the full AutoModelForMaskedLM (BERT encoder) is not translated;
    # deterministic random hidden states stand in for the encoder output.
    key = jax.random.PRNGKey(0)
    k_h, k_w, k_b = jax.random.split(key, 3)

    hidden = jax.random.normal(k_h, (B, S, H), dtype=jnp.float32)
    w_vocab = jax.random.normal(k_w, (H, V), dtype=jnp.float32) * 0.1
    b_vocab = jax.random.normal(k_b, (V,), dtype=jnp.float32) * 0.01

    # Attention mask: second example has padded (masked-out) positions.
    attention_mask = jnp.concatenate(
        [jnp.ones((1, S), dtype=jnp.float32),
         jnp.concatenate([jnp.ones((1, S - 5)), jnp.zeros((1, 5))],
                         axis=1).astype(jnp.float32)],
        axis=0)

    ok = True
    for agg_mode in ("max", "sum"):
        out = splade_forward(hidden, w_vocab, b_vocab, attention_mask, agg=agg_mode)
        out = jax.block_until_ready(out)
        ref = splade_reference(hidden, w_vocab, b_vocab, attention_mask, agg=agg_mode)
        assert out.shape == (B, V)
        ok &= bool(jnp.allclose(out, ref, atol=2e-2, rtol=2e-2))

    assert ok
    print("KERNEL_OK")
</pallas_src>

<mosaic_0001>
module attributes {stable_mosaic.version = 11 : i64} {
  func.func @_splade_kernel(%arg0: i32, %arg1: memref<256x128xbf16, #tpu.memory_space<vmem>>, %arg2: memref<128x512xbf16, #tpu.memory_space<vmem>>, %arg3: memref<1x512xf32, #tpu.memory_space<vmem>>, %arg4: memref<256x1xf32, #tpu.memory_space<vmem>>, %arg5: memref<8x512xf32, #tpu.memory_space<vmem>>) attributes {dimension_semantics = [#tpu.dimension_semantics<parallel>], iteration_bounds = array<i64: 2>, scalar_prefetch = 0 : i64, scratch_operands = 0 : i64, tpu.core_type = #tpu.core_type<tc>, window_params = [{pipeline_mode = #tpu.pipeline_mode<synchronous>, transform_indices = @transform_0, window_bounds = array<i64: 256, 128>}, {transform_indices = @transform_1, window_bounds = array<i64: 128, 512>}, {transform_indices = @transform_2, window_bounds = array<i64: 1, 512>}, {pipeline_mode = #tpu.pipeline_mode<synchronous>, transform_indices = @transform_3, window_bounds = array<i64: 256, 1>}, {transform_indices = @transform_4, window_bounds = array<i64: 8, 512>}]} {
    %c0 = arith.constant 0 : index
    %c0_0 = arith.constant 0 : index
    %0 = vector.load %arg2[%c0, %c0_0] : memref<128x512xbf16, #tpu.memory_space<vmem>>, vector<128x512xbf16>
    %c0_1 = arith.constant 0 : index
    %c0_2 = arith.constant 0 : index
    %1 = vector.load %arg3[%c0_1, %c0_2] : memref<1x512xf32, #tpu.memory_space<vmem>>, vector<1x512xf32>
    %cst = arith.constant 0.000000e+00 : f32
    %2 = vector.broadcast %cst : f32 to vector<8x512xf32>
    %c0_i32 = arith.constant 0 : i32
    %c256_i32 = arith.constant 256 : i32
    %3 = arith.muli %c0_i32, %c256_i32 : i32
    %4 = tpu.assume_multiple %3, 256 : i32
    %5 = arith.index_cast %4 : i32 to index
    %c0_3 = arith.constant 0 : index
    %6 = vector.load %arg1[%5, %c0_3] : memref<256x128xbf16, #tpu.memory_space<vmem>>, vector<256x128xbf16>
    %7 = arith.index_cast %4 : i32 to index
    %c0_4 = arith.constant 0 : index
    %8 = vector.load %arg4[%7, %c0_4] : memref<256x1xf32, #tpu.memory_space<vmem>>, vector<256x1xf32>
    %cst_5 = arith.constant dense<0.000000e+00> : vector<256x512xf32>
    %9 = tpu.matmul %6, %0, %cst_5 {dimension_numbers = #tpu.dot_dimension_numbers<[1], [0], [0], [1], [0, 0, 1, 1], [], []>} : vector<256x128xbf16>, vector<128x512xbf16>, vector<256x512xf32> -> vector<256x512xf32>
    %10 = vector.broadcast %1 : vector<1x512xf32> to vector<256x512xf32>
    %11 = arith.addf %9, %10 : vector<256x512xf32>
    %cst_6 = arith.constant 0.000000e+00 : f32
    %12 = vector.broadcast %cst_6 : f32 to vector<256x512xf32>
    %13 = arith.maximumf %11, %12 : vector<256x512xf32>
    %14 = math.log1p %13 : vector<256x512xf32>
    %15 = vector.broadcast %8 : vector<256x1xf32> to vector<256x512xf32>
    %16 = arith.mulf %14, %15 : vector<256x512xf32>
    %17 = vector.extract_strided_slice %16 {offsets = [0, 0], sizes = [8, 512], strides = [1, 1]} : vector<256x512xf32> to vector<8x512xf32>
    %18 = arith.maximumf %2, %17 : vector<8x512xf32>
    %19 = vector.extract_strided_slice %16 {offsets = [8, 0], sizes = [8, 512], strides = [1, 1]} : vector<256x512xf32> to vector<8x512xf32>
    %20 = arith.maximumf %18, %19 : vector<8x512xf32>
    %21 = vector.extract_strided_slice %16 {offsets = [16, 0], sizes = [8, 512], strides = [1, 1]} : vector<256x512xf32> to vector<8x512xf32>
    %22 = arith.maximumf %20, %21 : vector<8x512xf32>
    %23 = vector.extract_strided_slice %16 {offsets = [24, 0], sizes = [8, 512], strides = [1, 1]} : vector<256x512xf32> to vector<8x512xf32>
    %24 = arith.maximumf %22, %23 : vector<8x512xf32>
    %25 = vector.extract_strided_slice %16 {offsets = [32, 0], sizes = [8, 512], strides = [1, 1]} : vector<256x512xf32> to vector<8x512xf32>
    %26 = arith.maximumf %24, %25 : vector<8x512xf32>
    %27 = vector.extract_strided_slice %16 {offsets = [40, 0], sizes = [8, 512], strides = [1, 1]} : vector<256x512xf32> to vector<8x512xf32>
    %28 = arith.maximumf %26, %27 : vector<8x512xf32>
    %29 = vector.extract_strided_slice %16 {offsets = [48, 0], sizes = [8, 512], strides = [1, 1]} : vector<256x512xf32> to vector<8x512xf32>
    %30 = arith.maximumf %28, %29 : vector<8x512xf32>
    %31 = vector.extract_strided_slice %16 {offsets = [56, 0], sizes = [8, 512], strides = [1, 1]} : vector<256x512xf32> to vector<8x512xf32>
    %32 = arith.maximumf %30, %31 : vector<8x512xf32>
    %33 = vector.extract_strided_slice %16 {offsets = [64, 0], sizes = [8, 512], strides = [1, 1]} : vector<256x512xf32> to vector<8x512xf32>
    %34 = arith.maximumf %32, %33 : vector<8x512xf32>
    %35 = vector.extract_strided_slice %16 {offsets = [72, 0], sizes = [8, 512], strides = [1, 1]} : vector<256x512xf32> to vector<8x512xf32>
    %36 = arith.maximumf %34, %35 : vector<8x512xf32>
    %37 = vector.extract_strided_slice %16 {offsets = [80, 0], sizes = [8, 512], strides = [1, 1]} : vector<256x512xf32> to vector<8x512xf32>
    %38 = arith.maximumf %36, %37 : vector<8x512xf32>
    %39 = vector.extract_strided_slice %16 {offsets = [88, 0], sizes = [8, 512], strides = [1, 1]} : vector<256x512xf32> to vector<8x512xf32>
    %40 = arith.maximumf %38, %39 : vector<8x512xf32>
    %41 = vector.extract_strided_slice %16 {offsets = [96, 0], sizes = [8, 512], strides = [1, 1]} : vector<256x512xf32> to vector<8x512xf32>
    %42 = arith.maximumf %40, %41 : vector<8x512xf32>
    %43 = vector.extract_strided_slice %16 {offsets = [104, 0], sizes = [8, 512], strides = [1, 1]} : vector<256x512xf32> to vector<8x512xf32>
    %44 = arith.maximumf %42, %43 : vector<8x512xf32>
    %45 = vector.extract_strided_slice %16 {offsets = [112, 0], sizes = [8, 512], strides = [1, 1]} : vector<256x512xf32> to vector<8x512xf32>
    %46 = arith.maximumf %44, %45 : vector<8x512xf32>
    %47 = vector.extract_strided_slice %16 {offsets = [120, 0], sizes = [8, 512], strides = [1, 1]} : vector<256x512xf32> to vector<8x512xf32>
    %48 = arith.maximumf %46, %47 : vector<8x512xf32>
    %49 = vector.extract_strided_slice %16 {offsets = [128, 0], sizes = [8, 512], strides = [1, 1]} : vector<256x512xf32> to vector<8x512xf32>
    %50 = arith.maximumf %48, %49 : vector<8x512xf32>
    %51 = vector.extract_strided_slice %16 {offsets = [136, 0], sizes = [8, 512], strides = [1, 1]} : vector<256x512xf32> to vector<8x512xf32>
    %52 = arith.maximumf %50, %51 : vector<8x512xf32>
    %53 = vector.extract_strided_slice %16 {offsets = [144, 0], sizes = [8, 512], strides = [1, 1]} : vector<256x512xf32> to vector<8x512xf32>
    %54 = arith.maximumf %52, %53 : vector<8x512xf32>
    %55 = vector.extract_strided_slice %16 {offsets = [152, 0], sizes = [8, 512], strides = [1, 1]} : vector<256x512xf32> to vector<8x512xf32>
    %56 = arith.maximumf %54, %55 : vector<8x512xf32>
    %57 = vector.extract_strided_slice %16 {offsets = [160, 0], sizes = [8, 512], strides = [1, 1]} : vector<256x512xf32> to vector<8x512xf32>
    %58 = arith.maximumf %56, %57 : vector<8x512xf32>
    %59 = vector.extract_strided_slice %16 {offsets = [168, 0], sizes = [8, 512], strides = [1, 1]} : vector<256x512xf32> to vector<8x512xf32>
    %60 = arith.maximumf %58, %59 : vector<8x512xf32>
    %61 = vector.extract_strided_slice %16 {offsets = [176, 0], sizes = [8, 512], strides = [1, 1]} : vector<256x512xf32> to vector<8x512xf32>
    %62 = arith.maximumf %60, %61 : vector<8x512xf32>
    %63 = vector.extract_strided_slice %16 {offsets = [184, 0], sizes = [8, 512], strides = [1, 1]} : vector<256x512xf32> to vector<8x512xf32>
    %64 = arith.maximumf %62, %63 : vector<8x512xf32>
    %65 = vector.extract_strided_slice %16 {offsets = [192, 0], sizes = [8, 512], strides = [1, 1]} : vector<256x512xf32> to vector<8x512xf32>
    %66 = arith.maximumf %64, %65 : vector<8x512xf32>
    %67 = vector.extract_strided_slice %16 {offsets = [200, 0], sizes = [8, 512], strides = [1, 1]} : vector<256x512xf32> to vector<8x512xf32>
    %68 = arith.maximumf %66, %67 : vector<8x512xf32>
    %69 = vector.extract_strided_slice %16 {offsets = [208, 0], sizes = [8, 512], strides = [1, 1]} : vector<256x512xf32> to vector<8x512xf32>
    %70 = arith.maximumf %68, %69 : vector<8x512xf32>
    %71 = vector.extract_strided_slice %16 {offsets = [216, 0], sizes = [8, 512], strides = [1, 1]} : vector<256x512xf32> to vector<8x512xf32>
    %72 = arith.maximumf %70, %71 : vector<8x512xf32>
    %73 = vector.extract_strided_slice %16 {offsets = [224, 0], sizes = [8, 512], strides = [1, 1]} : vector<256x512xf32> to vector<8x512xf32>
    %74 = arith.maximumf %72, %73 : vector<8x512xf32>
    %75 = vector.extract_strided_slice %16 {offsets = [232, 0], sizes = [8, 512], strides = [1, 1]} : vector<256x512xf32> to vector<8x512xf32>
    %76 = arith.maximumf %74, %75 : vector<8x512xf32>
    %77 = vector.extract_strided_slice %16 {offsets = [240, 0], sizes = [8, 512], strides = [1, 1]} : vector<256x512xf32> to vector<8x512xf32>
    %78 = arith.maximumf %76, %77 : vector<8x512xf32>
    %79 = vector.extract_strided_slice %16 {offsets = [248, 0], sizes = [8, 512], strides = [1, 1]} : vector<256x512xf32> to vector<8x512xf32>
    %80 = arith.maximumf %78, %79 : vector<8x512xf32>
    %c1_i32 = arith.constant 1 : i32
    %c0_7 = arith.constant 0 : index
    %c0_8 = arith.constant 0 : index
    %81 = vector.load %arg5[%c0_7, %c0_8] : memref<8x512xf32, #tpu.memory_space<vmem>>, vector<8x512xf32>
    tpu.vector_store %arg5[%c0_7, %c0_8], %80 {strides = array<i32>} : memref<8x512xf32, #tpu.memory_space<vmem>>, vector<8x512xf32>,
    return
  }
  func.func @transform_0(%arg0: i32) -> (i32, i32) {
    %c0_i32 = arith.constant 0 : i32
    %c0_i32_0 = arith.constant 0 : i32
    %c0_i32_1 = arith.constant 0 : i32
    return %c0_i32, %c0_i32_0 : i32, i32
  }
  func.func @transform_1(%arg0: i32) -> (i32, i32) {
    %c0_i32 = arith.constant 0 : i32
    %c0_i32_0 = arith.constant 0 : i32
    return %c0_i32, %arg0 : i32, i32
  }
  func.func @transform_2(%arg0: i32) -> (i32, i32) {
    %c0_i32 = arith.constant 0 : i32
    %c0_i32_0 = arith.constant 0 : i32
    return %c0_i32, %arg0 : i32, i32
  }
  func.func @transform_3(%arg0: i32) -> (i32, i32) {
    %c0_i32 = arith.constant 0 : i32
    %c0_i32_0 = arith.constant 0 : i32
    %c0_i32_1 = arith.constant 0 : i32
    return %c0_i32, %c0_i32_0 : i32, i32
  }
  func.func @transform_4(%arg0: i32) -> (i32, i32) {
    %c0_i32 = arith.constant 0 : i32
    %c0_i32_0 = arith.constant 0 : i32
    return %c0_i32, %arg0 : i32, i32
  }
}

</mosaic_0001>

<bundles_post_ra>
// kernel: tpu_custom_call.1
= control target key start
LH: loop header
LB: loop body
LE: loop exit
PB: predicated region body
PF: predicated region fallthrough
CT: control target
= control target key end

     0   :  { %9 = vsyncpa [#allocation3], 0  ;;  %s5693_s0 = inlined_call_operand.vmem [shape: bf16[256,128], index: 0, kind: input, shape index: {}]   ;;  %s5694_s1 = inlined_call_operand.hbm [shape: bf16[128,1024], index: 1, kind: input, shape index: {}]   ;;  %s5695_s2 = inlined_call_operand.vmem [shape: f32[1,1024], index: 2, kind: input, shape index: {}]   ;;  %s5696_s3 = inlined_call_operand.vmem [shape: f32[256,1], index: 3, kind: input, shape index: {}]   ;;  %s5697_s4 = inlined_call_operand.hbm [shape: f32[8,1024], index: 4, kind: output, shape index: {}]  }
   0x1   :  { %11 = vsyncpa [#allocation3 + $0x1], 0 }
   0x2   :  { %12 = vsyncpa [#allocation4], 0 }
   0x3   :  { %14 = vsyncpa [#allocation4 + $0x1], 0  ;;  %s3358_s15 = smov 0   ;;  %s3360_s16 = smov 0  }
   0x4   :  { %s3362_s17 = smov 0   ;;  %s3364_s18 = smov 0  }
   0x5 LB: > { %s3379_s19 = sadd.s32 4294967295, %s3325_s18   ;;  %s2792_s20 = sadd.s32 4294967294, %s3325_s18   ;;  %s3325_s18 = sphi %s3364_s18, %s6079_s18   ;;  %s3321_s17 = sphi %s3362_s17, %s6078_s17   ;;  %s3317_s16 = sphi %s3360_s16, %s6077_s16   ;;  %s3313_s15 = sphi %s3358_s15, %s6076_s15  }
   0x6   : > { %s3383_s21 = sadd.s32 1, %s3325_s18   ;;  %s48_s22 = sadd.s32 1, %s3321_s17 }
   0x7   : > { %s45_s23 = ssub.s32 %s3325_s18, %s3383_s21  ;;  %p55_p0 = scmp.ne.s32.totalorder %s3321_s17, %s3317_s16 }
   0x8   : > { %p46_p1 = scmp.eq.s32.totalorder %s45_s23, 0  ;;  %p56_p2 = scmp.eq.s32.totalorder %s3325_s18, 0 }
   0x9   : > { %p61_p3 = scmp.ne.s32.totalorder %s3317_s16, %s3313_s15  ;;  %p62_p4 = scmp.eq.s32.totalorder %s3379_s19, 0 }
   0xa   : > { %s3395_s24 = scalar_select %p46_p1, %s3321_s17, %s48_s22  }
   0xb   : > { %p3397_p5 = por %p56_p2, %p55_p0  ;;  %p3401_p6 = por %p62_p4, %p61_p3 }
   0xc   : > { %p132_p7 = scmp.eq.s32.totalorder %s3379_s19, 1  ;;  %p138_p8 = scmp.eq.s32.totalorder %s2792_s20, 1 }
   0xd   : > { %p2869_p10 = scmp.lt.s32.totalorder %s3325_s18, 2  ;;  %s164_s29 = sand.u32 1, %s3321_s17  }
   0xe   : > { %p3408_p11 = por %p132_p7, %p55_p0  ;;  %p3412_p12 = por %p138_p8, %p61_p3 }
   0xf   : > { %s2855_s30 = sshll.u32 %s3325_s18, 8  ;;  %s2795_s5 = sshll.u32 %s164_s29, 8 }
  0x10   : > { %s5709_s27 = scalar_select %p3408_p11, 1, 0 }
  0x11   : > { %s5710_s28 = scalar_select %p3412_p12, 1, 0 }
  0x12   : > { %s3421_s8 = scalar_lea.hbm %s5694_s1, %s2855_s30  ;;  %s168_s9 = scalar_lea.vmem [#allocation2], %s2795_s5 }
  0x13   : > { %s175_s10 = sshll.u32 %s168_s9, 4  ;;  %p3425_p13 = pnand %p2869_p10, %p3397_p5  ;;  %s3429_s10 = int_to_ptr.vmem [resolvable:$true] %s175_s10 }
  0x14   : > { %s3432_s12 = scalar_lea.sflag [#allocation3], %s164_s29  ;;  %s3229_s13 = scalar_lea.hbm %s3421_s8, 4096 }
  0x15   : > { %p3230_p1 = scmp.ne.s32.totalorder %s3421_s8, %s3229_s13  ;;  %p3231_p2 = pneg %p3425_p13 }
  0x16   : > { %s3234_s22 = scalar_lea.hbm %s5694_s1, 8192  ;;  %p3235_p5 = scmp.lt.u32.totalorder %s3421_s8, %s5694_s1 }
  0x17   : > { %p3232_p3 = pnand %p3231_p2, %p3230_p1  ;;  %p3236_p7 = scmp.lt.u32.totalorder %s3234_s22, %s3229_s13 }
  0x18   : > { %p3238_p10 = scmp.lt.u32.totalorder %s3229_s13, %s3421_s8 }
  0x19   : > { %p3233_p4 = pneg %p3232_p3  ;;  %p3237_p8 = por %p3236_p7, %p3235_p5 }
  0x1b   : > { %p3239_p9 = por %p3238_p10, %p3237_p8 }
  0x1d   : > { %p3240_p0 = pnand %p3239_p9, %p3233_p4 }
  0x1f   : > { %3243 = shalt.err (!%p3240_p0)
}
  0x20   : > { %s3244_s29 = scalar_lea.vmem %s3429_s10, 4096  ;;  %s3327_s30 = smov [#allocation2]  }
  0x21   : > { %p3245_p1 = scmp.ne.s32.totalorder %s3429_s10, %s3244_s29  ;;  %s3249_s5 = sshll.u32 %s3327_s30, 4  ;;  %s3250_s5 = int_to_ptr.vmem [resolvable:$false] %s3249_s5 }
  0x22   : > { %s3251_s6 = scalar_lea.vmem %s3250_s5, 8192  ;;  %p3252_p11 = scmp.lt.s32.totalorder %s3429_s10, %s3250_s5 }
  0x23   : > { %p3247_p3 = pnand %p3245_p1, %p3231_p2  ;;  %p3253_p5 = scmp.lt.s32.totalorder %s3251_s6, %s3244_s29 }
  0x25   : > { %p3248_p12 = pneg %p3247_p3  ;;  %p3254_p7 = por %p3253_p5, %p3252_p11 }
  0x27   : > { %p3255_p8 = pnand %p3254_p7, %p3248_p12 }
  0x29   : > { %3258 = shalt.err (!%p3255_p8)
}
  0x2a   : > { %s3328_s7 = smov 512   ;;  %s3329_s9 = smov 256  }
  0x2b   : > { %s3330_s13 = smov 16   ;;  %p191_p9 = scmp.lt.s32.totalorder %s3325_s18, 3 }
  0x2c   : > { %2864 = dma.hbm_to_vmem [thread:$0]  (!%p3425_p13), %s3421_s8, 4096, %s3429_s10, %s3432_s12, %s3328_s7, %s3329_s9, %s3330_s13  }
  0x2d   : > { %p5712_p0 = scmp.ge.s32.totalorder %s3325_s18, 1 }
  0x2f   : > { %p192_p2 = pnand %p5712_p0, %p191_p9 }
  0x31   : > { %195 = sbr.rel (%p192_p2) target bundleno = 753 (0x2f1), region = 36 }
  0x38   : > { %s3464_s14 = sand.u32 1, %s3317_s16  }
  0x39   : > { %s2799_s20 = sshll.u32 %s3464_s14, 8  ;;  %s198_s22 = scalar_lea.sflag [#allocation3], %s3464_s14 }
  0x3a   : > { %s3468_s23 = scalar_lea.vmem [#allocation2], %s2799_s20 }
  0x3b   : > { %3304 = dma.done.wait (%p3401_p6), %s198_s22, 4096  }
  0x3c   : > { %3306 = vsyncadd (%p3401_p6), %s198_s22, 4294963200  ;;  %v3331_v0 = vmov 0   ;;  %v2909_v1 = vld [vmem:[%s3468_s23 + $0x4] ss:$16 sps:$4 sm:$0xff]   ;;  %v2911_v2 = vld [vmem:[%s3468_s23 + $0xc] ss:$16 sps:$4 sm:$0xff]  }
  0x3d   : > { %644 = vmatprep.mubr.bf16.mxu0 %v3331_v0  ;;  %837 = vmatprep.mubr.bf16.mxu1 %v3331_v0  ;;  %v2913_v3 = vld [vmem:[%s3468_s23] ss:$16 sps:$4 sm:$0xff]   ;;  %v2914_v4 = vld [vmem:[%s3468_s23 + $0x8] ss:$16 sps:$4 sm:$0xff]   ;;  %v2915_v5 = vld [vmem:[%s3468_s23 + $0x24] ss:$16 sps:$4 sm:$0xff]  }
  0x3e   : > { %2907 = vset.pattern.permute.xlu0 %v3331_v0  ;;  %2908 = vset.pattern.permute.xlu1 %v3331_v0  ;;  %v2917_v6 = vld [vmem:[%s3468_s23 + $0x2c] ss:$16 sps:$4 sm:$0xff]   ;;  %v2919_v7 = vld [vmem:[%s3468_s23 + $0x20] ss:$16 sps:$4 sm:$0xff]   ;;  %v2920_v8 = vld [vmem:[%s3468_s23 + $0x28] ss:$16 sps:$4 sm:$0xff]  }
  0x3f   : > { %612 = vmatprep.subr.bf16.mxu0 %v2909_v1  ;;  %805 = vmatprep.subr.bf16.mxu1 %v2911_v2  ;;  %v2921_v9 = vld [vmem:[%s3468_s23 + $0x44] ss:$16 sps:$4 sm:$0xff]   ;;  %v2923_v10 = vld [vmem:[%s3468_s23 + $0x4c] ss:$16 sps:$4 sm:$0xff]   ;;  %v2925_v11 = vld [vmem:[%s3468_s23 + $0x40] ss:$16 sps:$4 sm:$0xff]  }
  0x40   : > { %613 = vmatpush1.bf16.msra.mxu0 %v2913_v3  ;;  %806 = vmatpush1.bf16.msra.mxu1 %v2914_v4  ;;  %v2926_v12 = vld [vmem:[%s3468_s23 + $0x48] ss:$16 sps:$4 sm:$0xff]   ;;  %v2927_v13 = vld [vmem:[%s3468_s23 + $0x64] ss:$16 sps:$4 sm:$0xff]   ;;  %v2929_v14 = vld [vmem:[%s3468_s23 + $0x6c] ss:$16 sps:$4 sm:$0xff]  }
  0x41   : > { %614 = vmatprep.subr.bf16.mxu0 %v2915_v5  ;;  %807 = vmatprep.subr.bf16.mxu1 %v2917_v6  ;;  %v2931_v15 = vld [vmem:[%s3468_s23 + $0x60] ss:$16 sps:$4 sm:$0xff]   ;;  %v2932_v16 = vld [vmem:[%s3468_s23 + $0x68] ss:$16 sps:$4 sm:$0xff]   ;;  %v2933_v17 = vld [vmem:[%s3468_s23 + $0x84] ss:$16 sps:$4 sm:$0xff]  }
  0x42   : > { %v2935_v18 = vld [vmem:[%s3468_s23 + $0x8c] ss:$16 sps:$4 sm:$0xff]   ;;  %v2937_v19 = vld [vmem:[%s3468_s23 + $0x80] ss:$16 sps:$4 sm:$0xff]   ;;  %v2938_v20 = vld [vmem:[%s3468_s23 + $0x88] ss:$16 sps:$4 sm:$0xff]  }
  0x43   : > { %v2939_v21 = vld [vmem:[%s3468_s23 + $0xa4] ss:$16 sps:$4 sm:$0xff]   ;;  %v2941_v22 = vld [vmem:[%s3468_s23 + $0xac] ss:$16 sps:$4 sm:$0xff]   ;;  %v2943_v23 = vld [vmem:[%s3468_s23 + $0xa0] ss:$16 sps:$4 sm:$0xff]  }
  0x44   : > { %615 = vmatpush1.bf16.msra.mxu0 %v2919_v7  ;;  %808 = vmatpush1.bf16.msra.mxu1 %v2920_v8  ;;  %v2944_v24 = vld [vmem:[%s3468_s23 + $0xa8] ss:$16 sps:$4 sm:$0xff]   ;;  %v2945_v25 = vld [vmem:[%s3468_s23 + $0xc4] ss:$16 sps:$4 sm:$0xff]   ;;  %v2947_v26 = vld [vmem:[%s3468_s23 + $0xcc] ss:$16 sps:$4 sm:$0xff]  }
  0x45   : > { %616 = vmatprep.subr.bf16.mxu0 %v2921_v9  ;;  %809 = vmatprep.subr.bf16.mxu1 %v2923_v10  ;;  %v2949_v27 = vld [vmem:[%s3468_s23 + $0xc0] ss:$16 sps:$4 sm:$0xff]   ;;  %v2950_v28 = vld [vmem:[%s3468_s23 + $0xc8] ss:$16 sps:$4 sm:$0xff]   ;;  %v2951_v29 = vld [vmem:[%s3468_s23 + $0xe4] ss:$16 sps:$4 sm:$0xff]  }
  0x46   : > { %v2953_v30 = vld [vmem:[%s3468_s23 + $0xec] ss:$16 sps:$4 sm:$0xff]   ;;  %v2955_v31 = vld [vmem:[%s3468_s23 + $0xe0] ss:$16 sps:$4 sm:$0xff]   ;;  %v2956_v32 = vld [vmem:[%s3468_s23 + $0xe8] ss:$16 sps:$4 sm:$0xff]  }
  0x47   : > { %v2957_v33 = vld [vmem:[%s5693_s0] sm:$0xff]   ;;  %v305_v35 = vld [vmem:[%s5696_s3 + $0x10] sm:$0xff]  ;;  %v304_v36 = vld [vmem:[%s5696_s3 + $0x8] sm:$0xff]  ;;  %s2801_s26 = sshll.u32 %s3379_s19, 2  ;;  %s2800_s12 = sshll.u32 %s3464_s14, 5 }
  0x48   : > { %617 = vmatpush1.bf16.msra.mxu0 %v2925_v11  ;;  %810 = vmatpush1.bf16.msra.mxu1 %v2926_v12  ;;  %v303_v34 = vld [vmem:[%s5696_s3] sm:$0xff]  ;;  %v306_v37 = vld [vmem:[%s5696_s3 + $0x18] sm:$0xff]  ;;  %v2958_v38 = vld [vmem:[%s5693_s0 + $0x8] sm:$0xff]   ;;  %p232_p6 = scmp.lt.s32.totalorder %s2801_s26, 7  ;;  %s229_s25 = scalar_lea.vmem [#allocation5], %s2800_s12 }
  0x49   : > { %618 = vmatprep.subr.bf16.mxu0 %v2927_v13  ;;  %811 = vmatprep.subr.bf16.mxu1 %v2929_v14  ;;  %v307_v39 = vld [vmem:[%s5696_s3 + $0x20] sm:$0xff]  ;;  %v308_v40 = vld [vmem:[%s5696_s3 + $0x28] sm:$0xff]  ;;  %v309_v41 = vld [vmem:[%s5696_s3 + $0x30] sm:$0xff]  ;;  %s2856_s29 = sshll.u32 %s3379_s19, 9  ;;  %s2713_s30 = sshll.u32 %s229_s25, 4  ;;  %s5651_s30 = int_to_ptr.vmem [resolvable:$true] %s2713_s30 }
  0x4a   : > { %2280 = vperm.xlu0 %2907, %v303_v34   ;;  %2290 = vperm.xlu1 %2908, %v305_v35   ;;  %v310_v42 = vld [vmem:[%s5696_s3 + $0x38] sm:$0xff]  ;;  %v2959_v43 = vld [vmem:[%s5693_s0 + $0x10] sm:$0xff]   ;;  %v311_v44 = vld [vmem:[%s5696_s3 + $0x40] sm:$0xff]  ;;  %s6081_s26 = smov (!%p232_p6, %s2801_s26), 7  ;;  %s5649_s7 = scalar_lea.hbm %s5697_s4, %s2856_s29 }
  0x4b   : > { %v312_v45 = vld [vmem:[%s5696_s3 + $0x48] sm:$0xff]  ;;  %v313_v46 = vld [vmem:[%s5696_s3 + $0x50] sm:$0xff]  ;;  %v314_v47 = vld [vmem:[%s5696_s3 + $0x58] sm:$0xff]  ;;  %s234_s11 = scalar_lea.vmem %s5695_s2, %s6081_s26  ;;  %s2699_s9 = scalar_lea.sflag [#allocation4], %s3464_s14 }
  0x4c   : > { %619 = vmatpush1.bf16.msra.mxu0 %v2931_v15  ;;  %812 = vmatpush1.bf16.msra.mxu1 %v2932_v16  ;;  %v2960_v48 = vld [vmem:[%s5693_s0 + $0x18] sm:$0xff]   ;;  %v315_v49 = vld [vmem:[%s5696_s3 + $0x60] sm:$0xff]  ;;  %v316_v50 = vld [vmem:[%s5696_s3 + $0x68] sm:$0xff]  ;;  %s3259_s13 = scalar_lea.vmem %s5651_s30, 512  ;;  %p6073_p12 = scmp.ne.s32.totalorder %s5709_s27, 0 }
  0x4d   : > { %620 = vmatprep.subr.bf16.mxu0 %v2933_v17  ;;  %813 = vmatprep.subr.bf16.mxu1 %v2935_v18  ;;  %v317_v51 = vld [vmem:[%s5696_s3 + $0x70] sm:$0xff]  ;;  %v318_v52 = vld [vmem:[%s5696_s3 + $0x78] sm:$0xff]  ;;  %v2961_v53 = vld [vmem:[%s5693_s0 + $0x20] sm:$0xff]   ;;  %v336_v18 = vlaneseq  ;;  %p3260_p11 = scmp.ne.s32.totalorder %s5651_s30, %s3259_s13  ;;  %s3332_s19 = smov [#allocation5]  }
  0x4e   : > { %2285 = vperm.xlu0 %2907, %v304_v36   ;;  %2295 = vperm.xlu1 %2908, %v306_v37   ;;  %v319_v54 = vld [vmem:[%s5696_s3 + $0x80] sm:$0xff]  ;;  %v320_v55 = vld [vmem:[%s5696_s3 + $0x88] sm:$0xff]  ;;  %v321_v56 = vld [vmem:[%s5696_s3 + $0x90] sm:$0xff]  ;;  %s3263_s20 = sshll.u32 %s3332_s19, 4  ;;  %s3264_s20 = int_to_ptr.vmem [resolvable:$false] %s3263_s20 }
  0x4f   : > { %v322_v57 = vld [vmem:[%s5696_s3 + $0x98] sm:$0xff]  ;;  %v2962_v58 = vld [vmem:[%s5693_s0 + $0x28] sm:$0xff]   ;;  %v323_v59 = vld [vmem:[%s5696_s3 + $0xa0] sm:$0xff]  ;;  %p3261_p13 = pnand %p3260_p11, %p6073_p12  ;;  %s3265_s22 = scalar_lea.vmem %s3264_s20, 1024 }
  0x50   : > { %621 = vmatpush1.bf16.msra.mxu0 %v2937_v19  ;;  %814 = vmatpush1.bf16.msra.mxu1 %v2938_v20  ;;  %v324_v60 = vld [vmem:[%s5696_s3 + $0xa8] sm:$0xff]  ;;  %v325_v61 = vld [vmem:[%s5696_s3 + $0xb0] sm:$0xff]  ;;  %v326_v62 = vld [vmem:[%s5696_s3 + $0xb8] sm:$0xff]  ;;  %v337_v19 = vshrl.u32 %v336_v18, 7  ;;  %p3266_p10 = scmp.lt.s32.totalorder %s5651_s30, %s3264_s20  ;;  %p3267_p1 = scmp.lt.s32.totalorder %s3265_s22, %s3259_s13 }
  0x51   : > { %622 = vmatprep.subr.bf16.mxu0 %v2939_v21  ;;  %815 = vmatprep.subr.bf16.mxu1 %v2941_v22  ;;  %v2963_v63 = vld [vmem:[%s5693_s0 + $0x30] sm:$0xff]   ;;  %v327_v1 = vld [vmem:[%s5696_s3 + $0xc0] sm:$0xff]  ;;  %v328_v2 = vld [vmem:[%s5696_s3 + $0xc8] sm:$0xff]  ;;  %p3262_p4 = pneg %p3261_p13 }
  0x52   : > { %2300 = vperm.xlu0 %2907, %v307_v39   ;;  %2305 = vperm.xlu1 %2908, %v308_v40   ;;  %v329_v3 = vld [vmem:[%s5696_s3 + $0xd0] sm:$0xff]  ;;  %v330_v4 = vld [vmem:[%s5696_s3 + $0xd8] sm:$0xff]  ;;  %v331_v6 = vld [vmem:[%s5696_s3 + $0xe0] sm:$0xff]  ;;  %v338_v20 = vsub.s32 0, %v337_v19  ;;  %v346_v21 = vsub.s32 2, %v337_v19  ;;  %p3268_p3 = por %p3267_p1, %p3266_p10 }
  0x53   : > { %v2964_v5 = vld [vmem:[%s5693_s0 + $0x38] sm:$0xff]   ;;  %v332_v7 = vld [vmem:[%s5696_s3 + $0xe8] sm:$0xff]  ;;  %v333_v8 = vld [vmem:[%s5696_s3 + $0xf0] sm:$0xff] }
  0x54   : > { %623 = vmatpush1.bf16.msra.mxu0 %v2943_v23  ;;  %816 = vmatpush1.bf16.msra.mxu1 %v2944_v24  ;;  %v334_v9 = vld [vmem:[%s5696_s3 + $0xf8] sm:$0xff]  ;;  %v2965_v10 = vld [vmem:[%s5693_s0 + $0x40] sm:$0xff]   ;;  %v2966_v11 = vld [vmem:[%s5693_s0 + $0x48] sm:$0xff]   ;;  %v342_v23 = vsub.s32 1, %v337_v19  ;;  %p3269_p5 = pnand %p3268_p3, %p3262_p4 }
  0x55   : > { %624 = vmatprep.subr.bf16.mxu0 %v2945_v25  ;;  %817 = vmatprep.subr.bf16.mxu1 %v2947_v26  ;;  %v2967_v12 = vld [vmem:[%s5693_s0 + $0x50] sm:$0xff]   ;;  %v2968_v13 = vld [vmem:[%s5693_s0 + $0x58] sm:$0xff]   ;;  %v2969_v14 = vld [vmem:[%s5693_s0 + $0x60] sm:$0xff]  }
  0x56   : > { %2310 = vperm.xlu0 %2907, %v309_v41   ;;  %2315 = vperm.xlu1 %2908, %v310_v42   ;;  %v2970_v15 = vld [vmem:[%s5693_s0 + $0x68] sm:$0xff]   ;;  %v2971_v16 = vld [vmem:[%s5693_s0 + $0x70] sm:$0xff]   ;;  %v2972_v17 = vld [vmem:[%s5693_s0 + $0x78] sm:$0xff]  }
  0x57   : > { %v270_v22 = vld [vmem:[%s234_s11] sm:$0xf] }
  0x58   : > { %625 = vmatpush1.bf16.msra.mxu0 %v2949_v27  ;;  %818 = vmatpush1.bf16.msra.mxu1 %v2950_v28  ;;  %v3688_v24 = vrot.slane %v270_v22, %v338_v20  ;;  %v3690_v25 = vrot.slane %v270_v22, %v346_v21  ;;  %v3692_v26 = vrot.slane %v270_v22, %v342_v23 }
  0x59   : > { %626 = vmatprep.subr.bf16.mxu0 %v2951_v29  ;;  %819 = vmatprep.subr.bf16.mxu1 %v2953_v30 }
  0x5a   : > { %2320 = vperm.xlu0 %2907, %v311_v44   ;;  %2325 = vperm.xlu1 %2908, %v312_v45   ;;  %5713 = vst [vmem:[#allocation8_spill] sm:$0xff] %v3688_v24  ;;  %5714 = vst [vmem:[#allocation9_spill] sm:$0xff] %v3690_v25 }
  0x5c   : > { %627 = vmatpush1.bf16.msra.mxu0 %v2955_v31  ;;  %820 = vmatpush1.bf16.msra.mxu1 %v2956_v32 }
  0x5e   : > { %2330 = vperm.xlu0 %2907, %v313_v46   ;;  %2335 = vperm.xlu1 %2908, %v314_v47  }
  0x5f   : > { %645 = vmatmul.mubr.bf16.vlgmr.msra.gmra.mrb[0].mxu0 %v2957_v33  ;;  %838 = vmatmul.mubr.bf16.vlgmr.msra.gmra.mrb[0].mxu1 %v2957_v33 }
  0x60   : > { %654 = vmatprep.mubr.bf16.mxu0 %v3331_v0  ;;  %847 = vmatprep.mubr.bf16.mxu1 %v3331_v0 }
  0x62   : > { %2340 = vperm.xlu0 %2907, %v315_v49   ;;  %2345 = vperm.xlu1 %2908, %v316_v50  }
  0x66   : > { %2350 = vperm.xlu0 %2907, %v317_v51   ;;  %2355 = vperm.xlu1 %2908, %v318_v52  }
  0x67   : > { %655 = vmatmul.mubr.bf16.gmra.mrb[4].mxu0 %v2958_v38  ;;  %848 = vmatmul.mubr.bf16.gmra.mrb[4].mxu1 %v2958_v38 }
  0x68   : > { %664 = vmatprep.mubr.bf16.mxu0 %v3331_v0  ;;  %857 = vmatprep.mubr.bf16.mxu1 %v3331_v0 }
  0x6a   : > { %2360 = vperm.xlu0 %2907, %v319_v54   ;;  %2365 = vperm.xlu1 %2908, %v320_v55  }
  0x6e   : > { %2370 = vperm.xlu0 %2907, %v321_v56   ;;  %2375 = vperm.xlu1 %2908, %v322_v57  }
  0x6f   : > { %665 = vmatmul.mubr.bf16.gmra.mrb[8].mxu0 %v2959_v43  ;;  %858 = vmatmul.mubr.bf16.gmra.mrb[8].mxu1 %v2959_v43 }
  0x70   : > { %674 = vmatprep.mubr.bf16.mxu0 %v3331_v0  ;;  %867 = vmatprep.mubr.bf16.mxu1 %v3331_v0 }
  0x72   : > { %2380 = vperm.xlu0 %2907, %v323_v59   ;;  %2385 = vperm.xlu1 %2908, %v324_v60  }
  0x76   : > { %2390 = vperm.xlu0 %2907, %v325_v61   ;;  %2395 = vperm.xlu1 %2908, %v326_v62  }
  0x77   : > { %675 = vmatmul.mubr.bf16.gmra.mrb[12].mxu0 %v2960_v48  ;;  %868 = vmatmul.mubr.bf16.gmra.mrb[12].mxu1 %v2960_v48 }
  0x78   : > { %684 = vmatprep.mubr.bf16.mxu0 %v3331_v0  ;;  %877 = vmatprep.mubr.bf16.mxu1 %v3331_v0 }
  0x7a   : > { %2400 = vperm.xlu0 %2907, %v327_v1   ;;  %2405 = vperm.xlu1 %2908, %v328_v2  }
  0x7e   : > { %2410 = vperm.xlu0 %2907, %v329_v3   ;;  %2415 = vperm.xlu1 %2908, %v330_v4  }
  0x7f   : > { %685 = vmatmul.mubr.bf16.gmra.mrb[16].mxu0 %v2961_v53  ;;  %878 = vmatmul.mubr.bf16.gmra.mrb[16].mxu1 %v2961_v53 }
  0x80   : > { %694 = vmatprep.mubr.bf16.mxu0 %v3331_v0  ;;  %887 = vmatprep.mubr.bf16.mxu1 %v3331_v0 }
  0x82   : > { %2420 = vperm.xlu0 %2907, %v331_v6   ;;  %2425 = vperm.xlu1 %2908, %v332_v7  }
  0x86   : > { %2430 = vperm.xlu0 %2907, %v333_v8   ;;  %2435 = vperm.xlu1 %2908, %v334_v9  }
  0x87   : > { %695 = vmatmul.mubr.bf16.gmra.mrb[20].mxu0 %v2962_v58  ;;  %888 = vmatmul.mubr.bf16.gmra.mrb[20].mxu1 %v2962_v58 }
  0x88   : > { %704 = vmatprep.mubr.bf16.mxu0 %v3331_v0  ;;  %897 = vmatprep.mubr.bf16.mxu1 %v3331_v0 }
  0x8f   : > { %705 = vmatmul.mubr.bf16.gmra.mrb[24].mxu0 %v2963_v63  ;;  %898 = vmatmul.mubr.bf16.gmra.mrb[24].mxu1 %v2963_v63 }
  0x90   : > { %714 = vmatprep.mubr.bf16.mxu0 %v3331_v0  ;;  %907 = vmatprep.mubr.bf16.mxu1 %v3331_v0 }
  0x97   : > { %715 = vmatmul.mubr.bf16.gmra.mrb[28].mxu0 %v2964_v5  ;;  %908 = vmatmul.mubr.bf16.gmra.mrb[28].mxu1 %v2964_v5 }
  0x98   : > { %724 = vmatprep.mubr.bf16.mxu0 %v3331_v0  ;;  %917 = vmatprep.mubr.bf16.mxu1 %v3331_v0 }
  0x9f   : > { %725 = vmatmul.mubr.bf16.gmra.mrb[32].mxu0 %v2965_v10  ;;  %918 = vmatmul.mubr.bf16.gmra.mrb[32].mxu1 %v2965_v10 }
  0xa0   : > { %734 = vmatprep.mubr.bf16.mxu0 %v3331_v0  ;;  %927 = vmatprep.mubr.bf16.mxu1 %v3331_v0 }
  0xa7   : > { %735 = vmatmul.mubr.bf16.gmra.mrb[36].mxu0 %v2966_v11  ;;  %928 = vmatmul.mubr.bf16.gmra.mrb[36].mxu1 %v2966_v11 }
  0xa8   : > { %744 = vmatprep.mubr.bf16.mxu0 %v3331_v0  ;;  %937 = vmatprep.mubr.bf16.mxu1 %v3331_v0 }
  0xaf   : > { %745 = vmatmul.mubr.bf16.gmra.mrb[40].mxu0 %v2967_v12  ;;  %938 = vmatmul.mubr.bf16.gmra.mrb[40].mxu1 %v2967_v12 }
  0xb0   : > { %754 = vmatprep.mubr.bf16.mxu0 %v3331_v0  ;;  %947 = vmatprep.mubr.bf16.mxu1 %v3331_v0 }
  0xb7   : > { %755 = vmatmul.mubr.bf16.gmra.mrb[44].mxu0 %v2968_v13  ;;  %948 = vmatmul.mubr.bf16.gmra.mrb[44].mxu1 %v2968_v13 }
  0xb8   : > { %764 = vmatprep.mubr.bf16.mxu0 %v3331_v0  ;;  %957 = vmatprep.mubr.bf16.mxu1 %v3331_v0 }
  0xbf   : > { %765 = vmatmul.mubr.bf16.gmra.mrb[48].mxu0 %v2969_v14  ;;  %958 = vmatmul.mubr.bf16.gmra.mrb[48].mxu1 %v2969_v14 }
  0xc0   : > { %774 = vmatprep.mubr.bf16.mxu0 %v3331_v0  ;;  %967 = vmatprep.mubr.bf16.mxu1 %v3331_v0 }
  0xc7   : > { %775 = vmatmul.mubr.bf16.gmra.mrb[52].mxu0 %v2970_v15  ;;  %968 = vmatmul.mubr.bf16.gmra.mrb[52].mxu1 %v2970_v15 }
  0xc8   : > { %784 = vmatprep.mubr.bf16.mxu0 %v3331_v0  ;;  %977 = vmatprep.mubr.bf16.mxu1 %v3331_v0 }
  0xcf   : > { %785 = vmatmul.mubr.bf16.gmra.mrb[56].mxu0 %v2971_v16  ;;  %978 = vmatmul.mubr.bf16.gmra.mrb[56].mxu1 %v2971_v16 }
  0xd0   : > { %794 = vmatprep.mubr.bf16.mxu0 %v3331_v0  ;;  %987 = vmatprep.mubr.bf16.mxu1 %v3331_v0  ;;  %v350_v0 = vsub.s32 3, %v337_v19 }
  0xd2   : > { %v3694_v27 = vrot.slane %v270_v22, %v350_v0 }
  0xd7   : > { %795 = vmatmul.mubr.bf16.gmra.mrb[60].mxu0 %v2972_v17  ;;  %988 = vmatmul.mubr.bf16.gmra.mrb[60].mxu1 %v2972_v17 }
 0x132   : > { %v646_v28 = vpop.f32.mrb[0].mxu0  ;;  %v839_v29 = vpop.f32.mrb[0].mxu1 }
 0x133   : > { %v647_v30 = vadd.f32 %v646_v28, %v3688_v24  ;;  %v840_v31 = vadd.f32 %v839_v29, %v3690_v25  ;;  %v648_v32 = vpop.f32.mrb[1].mxu0  ;;  %v841_v33 = vpop.f32.mrb[1].mxu1 }
 0x134   : > { %v649_v34 = vadd.f32 %v648_v32, %v3692_v26  ;;  %v842_v35 = vadd.f32 %v841_v33, %v3694_v27  ;;  %v650_v36 = vpop.f32.mrb[2].mxu0  ;;  %v843_v37 = vpop.f32.mrb[2].mxu1 }
 0x135   : > { %v3700_v38 = vmax.f32 %v647_v30, 0.0  ;;  %v3702_v39 = vmax.f32 %v840_v31, 0.0  ;;  %v652_v40 = vpop.f32.mrb[3].mxu0  ;;  %v845_v41 = vpop.f32.mrb[3].mxu1  ;;  %v651_v44 = vadd.f32 %v650_v36, %v3688_v24  ;;  %v844_v48 = vadd.f32 %v843_v37, %v3690_v25 }
 0x136   : > { %v3704_v42 = vmax.f32 %v649_v34, 0.0  ;;  %v3706_v43 = vmax.f32 %v842_v35, 0.0  ;;  %v653_v52 = vadd.f32 %v652_v40, %v3692_v26  ;;  %v846_v56 = vadd.f32 %v845_v41, %v3694_v27 }
 0x137   : > { %v1126_v45 = vadd.f32 1.0, %v3700_v38  ;;  %v1129_v46 = vmul.f32 -0.5, %v3700_v38  ;;  %v1144_v47 = vadd.f32 1.0, %v3702_v39  ;;  %v1147_v49 = vmul.f32 -0.5, %v3702_v39 }
 0x138   : > { %v1135_v50 = vadd.f32 1.0, %v3704_v42  ;;  %v1138_v51 = vmul.f32 -0.5, %v3704_v42  ;;  %v1156_v59 = vmul.f32 -0.5, %v3706_v43  ;;  %v3722_v63 = vmax.f32 %v651_v44, 0.0 }
 0x139   : > { %v1130_v53 = vadd.f32 1.0, %v1129_v46  ;;  %2973 = vlog2.f32 %v1126_v45  ;;  %v1148_v57 = vadd.f32 1.0, %v1147_v49  ;;  %v1153_v4 = vadd.f32 1.0, %v3706_v43 }
 0x13a   : > { %v1139_v58 = vadd.f32 1.0, %v1138_v51  ;;  %v656_v60 = vpop.f32.mrb[4].mxu0  ;;  %v849_v61 = vpop.f32.mrb[4].mxu1  ;;  %2975 = vlog2.f32 %v1144_v47  ;;  %v1157_v8 = vadd.f32 1.0, %v1156_v59  ;;  %v1162_v9 = vadd.f32 1.0, %v3722_v63 }
 0x13b   : > { %v658_v1 = vpop.f32.mrb[5].mxu0  ;;  %v851_v2 = vpop.f32.mrb[5].mxu1  ;;  %v3725_v3 = vmul.f32 %v1130_v53, %v3700_v38  ;;  %2977 = vlog2.f32 %v1135_v50  ;;  %v1165_v10 = vmul.f32 -0.5, %v3722_v63  ;;  %v3733_v11 = vmax.f32 %v844_v48, 0.0 }
 0x13c   : > { %v660_v6 = vpop.f32.mrb[6].mxu0  ;;  %v3729_v7 = vpop.f32.mrb[6].mxu1  ;;  %v3738_v13 = vmul.f32 %v1148_v57, %v3702_v39  ;;  %v3741_v14 = vmul.f32 %v1139_v58, %v3704_v42  ;;  %v3743_v15 = vmax.f32 %v653_v52, 0.0  ;;  %v3745_v16 = vmax.f32 %v846_v56, 0.0 }
 0x13d   : > { %v3735_v12 = vpop.f32.mrb[7].mxu0  ;;  %v3747_v17 = vpop.f32.mrb[7].mxu1  ;;  %v1166_v18 = vadd.f32 1.0, %v1165_v10  ;;  %v1180_v19 = vadd.f32 1.0, %v3733_v11  ;;  %v1183_v20 = vmul.f32 -0.5, %v3733_v11  ;;  %v657_v21 = vadd.f32 %v656_v60, %v3688_v24 }
 0x13e   : > { %2979 = vlog2.f32 %v1153_v4  ;;  %v1171_v23 = vadd.f32 1.0, %v3743_v15  ;;  %v1174_v0 = vmul.f32 -0.5, %v3743_v15  ;;  %v3756_v28 = vmul.f32 %v1157_v8, %v3706_v43 }
 0x13f   : > { %2981 = vlog2.f32 %v1162_v9  ;;  %v1184_v31 = vadd.f32 1.0, %v1183_v20  ;;  %v1189_v32 = vadd.f32 1.0, %v3745_v16  ;;  %v1192_v33 = vmul.f32 -0.5, %v3745_v16 }
 0x140   : > { %2983 = vlog2.f32 %v1180_v19  ;;  %v3767_v36 = vmul.f32 %v1166_v18, %v3722_v63  ;;  %v3769_v37 = vmax.f32 %v657_v21, 0.0  ;;  %v850_v40 = vadd.f32 %v849_v61, %v3690_v25 }
 0x141   : > { %2985 = vlog2.f32 %v1171_v23  ;;  %v1175_v46 = vadd.f32 1.0, %v1174_v0  ;;  %v659_v48 = vadd.f32 %v658_v1, %v3692_v26  ;;  %v852_v49 = vadd.f32 %v851_v2, %v3694_v27 }
 0x142   : > { %v3762_v34 = vpop.f32.mrb[8].mxu0  ;;  %v3764_v35 = vpop.f32.mrb[8].mxu1  ;;  %v1193_v53 = vadd.f32 1.0, %v1192_v33  ;;  %v1198_v56 = vadd.f32 1.0, %v3769_v37  ;;  %v1201_v57 = vmul.f32 -0.5, %v3769_v37  ;;  %v3789_v58 = vmax.f32 %v850_v40, 0.0 }
 0x143   : > { %v3772_v41 = vpop.f32.mrb[9].mxu0  ;;  %v3774_v44 = vpop.f32.mrb[9].mxu1  ;;  %v3796_v61 = vmul.f32 %v1184_v31, %v3733_v11  ;;  %2987 = vlog2.f32 %v1189_v32  ;;  %v3798_v1 = vmax.f32 %v659_v48, 0.0  ;;  %v3800_v2 = vmax.f32 %v852_v49, 0.0 }
 0x144   : > { %v3776_v45 = vpop.eup %2973  ;;  %v3781_v50 = vpop.f32.mrb[10].mxu0  ;;  %v1202_v8 = vadd.f32 1.0, %v1201_v57  ;;  %v1216_v9 = vadd.f32 1.0, %v3789_v58  ;;  %v1219_v10 = vmul.f32 -0.5, %v3789_v58  ;;  %v661_v18 = vadd.f32 %v660_v6, %v3688_v24 }
 0x145   : > { %v3783_v51 = vpop.f32.mrb[10].mxu1  ;;  %v3785_v52 = vpop.eup %2975  ;;  %5715 = vst [vmem:[#allocation10_spill] sm:$0xff] %v3800_v2  ;;  %v3808_v19 = vmul.f32 %v1175_v46, %v3743_v15  ;;  %v1207_v21 = vadd.f32 1.0, %v3798_v1  ;;  %v1210_v23 = vmul.f32 -0.5, %v3798_v1  ;;  %v3814_v0 = vmul.f32 %v1193_v53, %v3745_v16 }
 0x146   : > { %v3791_v59 = vpop.f32.mrb[11].mxu0  ;;  %v3793_v60 = vpop.eup %2977  ;;  %2989 = vlog2.f32 %v1198_v56  ;;  %v1220_v6 = vadd.f32 1.0, %v1219_v10  ;;  %v1225_v40 = vadd.f32 1.0, %v3800_v2  ;;  %v1228_v46 = vmul.f32 -0.5, %v3800_v2 }
 0x147   : > { %v3802_v4 = vpop.f32.mrb[11].mxu1  ;;  %2991 = vlog2.f32 %v1216_v9  ;;  %v3829_v53 = vmul.f32 %v1202_v8, %v3769_v37  ;;  %v3831_v56 = vmax.f32 %v661_v18, 0.0  ;;  %v854_v9 = vadd.f32 %v3729_v7, %v3690_v25 }
 0x148   : > { %v3818_v33 = vpop.eup %2979  ;;  %2993 = vlog2.f32 %v1207_v21  ;;  %v1211_v20 = vadd.f32 1.0, %v1210_v23  ;;  %v663_v29 = vadd.f32 %v3735_v12, %v3692_v26  ;;  %v856_v8 = vadd.f32 %v3747_v17, %v3694_v27 }
 0x149   : > { %v3826_v57 = vpop.eup %2981  ;;  %5718 = vst [vmem:[#allocation13_spill] sm:$0xff] %v3831_v56  ;;  %v1229_v30 = vadd.f32 1.0, %v1228_v46  ;;  %v1234_v22 = vadd.f32 1.0, %v3831_v56  ;;  %v1237_v5 = vmul.f32 -0.5, %v3831_v56  ;;  %v3854_v23 = vmax.f32 %v854_v9, 0.0 }
 0x14a   : > { %v3822_v48 = vpop.f32.mrb[12].mxu0  ;;  %v3824_v49 = vpop.f32.mrb[12].mxu1  ;;  %v3859_v12 = vmul.f32 %v1220_v6, %v3789_v58  ;;  %2995 = vlog2.f32 %v1225_v40  ;;  %v3861_v17 = vmax.f32 %v663_v29, 0.0  ;;  %v3863_v55 = vmax.f32 %v856_v8, 0.0 }
 0x14b   : > { %5716 = vst [vmem:[#allocation11_spill] sm:$0xff] %v3822_v48  ;;  %5717 = vst [vmem:[#allocation12_spill] sm:$0xff] %v3824_v49  ;;  %v3835_v10 = vpop.f32.mrb[13].mxu0  ;;  %v3837_v31 = vpop.f32.mrb[13].mxu1  ;;  %v1238_v54 = vadd.f32 1.0, %v1237_v5  ;;  %v1252_v46 = vadd.f32 1.0, %v3854_v23  ;;  %v667_v9 = vadd.f32 %v3762_v34, %v3688_v24  ;;  %v3874_v6 = vmul.f32 %v1211_v20, %v3798_v1 }
 0x14c   : > { %5719 = vst [vmem:[#allocation14_spill] sm:$0xff] %v3835_v10  ;;  %5720 = vst [vmem:[#allocation15_spill] sm:$0xff] %v3837_v31  ;;  %v3839_v32 = vpop.eup %2983  ;;  %v3846_v18 = vpop.f32.mrb[14].mxu0  ;;  %v1243_v40 = vadd.f32 1.0, %v3861_v17  ;;  %v1246_v8 = vmul.f32 -0.5, %v3861_v17  ;;  %v3880_v5 = vmul.f32 %v1229_v30, %v3800_v2  ;;  %2997 = vlog2.f32 %v1234_v22 }
 0x14d   : > { %5721 = vst [vmem:[#allocation16_spill] sm:$0xff] %v3846_v18  ;;  %v3848_v21 = vpop.f32.mrb[14].mxu1  ;;  %v3850_v7 = vpop.eup %2985  ;;  %5723 = vst [vmem:[#allocation18_spill] sm:$0xff] %v3854_v23  ;;  %v3884_v34 = vmul.f32 %v1238_v54, %v3831_v56  ;;  %v1261_v20 = vadd.f32 1.0, %v3863_v55  ;;  %v1264_v29 = vmul.f32 -0.5, %v3863_v55  ;;  %2999 = vlog2.f32 %v1252_v46 }
 0x14e   : > { %5722 = vst [vmem:[#allocation17_spill] sm:$0xff] %v3848_v21  ;;  %v3856_v47 = vpop.f32.mrb[15].mxu0  ;;  %5725 = vst [vmem:[#allocation20_spill] sm:$0xff] %v3859_v12  ;;  %v3865_v62 = vpop.f32.mrb[15].mxu1  ;;  %v1255_v21 = vmul.f32 -0.5, %v3854_v23  ;;  %v1247_v22 = vadd.f32 1.0, %v1246_v8  ;;  %v860_v54 = vadd.f32 %v3764_v35, %v3690_v25  ;;  %3001 = vlog2.f32 %v1243_v40 }
 0x14f   : > { %5724 = vst [vmem:[#allocation19_spill] sm:$0xff] %v3856_v47  ;;  %5726 = vst [vmem:[#allocation21_spill] sm:$0xff] %v3861_v17  ;;  %v3871_v18 = vpop.eup %2987  ;;  %v3895_v30 = vmax.f32 %v667_v9, 0.0  ;;  %v862_v46 = vadd.f32 %v3774_v44, %v3694_v27  ;;  %3003 = vlog2.f32 %v1261_v20 }
 0x150   : > { %5727 = vst [vmem:[#allocation22_spill] sm:$0xff] %v3865_v62  ;;  %5728 = vst [vmem:[#allocation23_spill] sm:$0xff] %v3880_v5  ;;  %v1256_v62 = vadd.f32 1.0, %v1255_v21  ;;  %v3893_v48 = vpop.eup %2989  ;;  %v3932_v56 = vmul.f32 %v1247_v22, %v3861_v17 }
 0x151   : > { %5729 = vst [vmem:[#allocation24_spill] sm:$0xff] %v3884_v34  ;;  %v3903_v31 = vpop.eup %2991  ;;  %v1273_v40 = vmul.f32 -0.5, %v3895_v30  ;;  %v3920_v34 = vmax.f32 %v860_v54, 0.0 }
 0x152   : > { %v3889_v10 = vpop.f32.mrb[16].mxu0  ;;  %v3891_v49 = vpop.f32.mrb[16].mxu1  ;;  %5739 = vst [vmem:[#allocation34_spill] sm:$0xff] %v3932_v56  ;;  %v1146_v56 = vmul.f32 0.6931472, %v3785_v52 }
 0x153   : > { %5730 = vst [vmem:[#allocation25_spill] sm:$0xff] %v3889_v10  ;;  %5731 = vst [vmem:[#allocation26_spill] sm:$0xff] %v3891_v49  ;;  %v3899_v21 = vpop.f32.mrb[17].mxu0  ;;  %v3901_v47 = vpop.f32.mrb[17].mxu1  ;;  %v669_v49 = vadd.f32 %v3772_v41, %v3692_v26  ;;  %v1270_v41 = vadd.f32 1.0, %v3895_v30  ;;  %v1291_v54 = vmul.f32 -0.5, %v3920_v34 }
 0x154   : > { %5732 = vst [vmem:[#allocation27_spill] sm:$0xff] %v3899_v21  ;;  %5733 = vst [vmem:[#allocation28_spill] sm:$0xff] %v3901_v47  ;;  %v3910_v9 = vpop.f32.mrb[18].mxu0  ;;  %v3912_v8 = vpop.f32.mrb[18].mxu1  ;;  %v3917_v21 = vmul.f32 %v1256_v62, %v3854_v23  ;;  %v1265_v47 = vadd.f32 1.0, %v1264_v29  ;;  %v1274_v62 = vadd.f32 1.0, %v1273_v40 }
 0x155   : > { %5734 = vst [vmem:[#allocation29_spill] sm:$0xff] %v3910_v9  ;;  %5735 = vst [vmem:[#allocation30_spill] sm:$0xff] %v3912_v8  ;;  %v3914_v35 = vpop.eup %2993  ;;  %v3922_v10 = vpop.f32.mrb[19].mxu0  ;;  %v3925_v44 = vmax.f32 %v669_v49, 0.0  ;;  %v3927_v9 = vmax.f32 %v862_v46, 0.0  ;;  %v1288_v29 = vadd.f32 1.0, %v3920_v34  ;;  %3005 = vlog2.f32 %v1270_v41 }
 0x156   : > { %5736 = vst [vmem:[#allocation31_spill] sm:$0xff] %v3917_v21  ;;  %5737 = vst [vmem:[#allocation32_spill] sm:$0xff] %v3922_v10  ;;  %v3929_v8 = vpop.f32.mrb[19].mxu1  ;;  %v3936_v21 = vpop.eup %2995  ;;  %v1128_v46 = vmul.f32 0.6931472, %v3776_v45  ;;  %v1292_v22 = vadd.f32 1.0, %v1291_v54  ;;  %v3956_v45 = vmul.f32 %v1274_v62, %v3895_v30 }
 0x157   : > { %5738 = vst [vmem:[#allocation33_spill] sm:$0xff] %v3929_v8  ;;  %v1279_v10 = vadd.f32 1.0, %v3925_v44  ;;  %v1282_v49 = vmul.f32 -0.5, %v3925_v44  ;;  %v3943_v8 = vmul.f32 %v1265_v47, %v3863_v55  ;;  %v1297_v17 = vadd.f32 1.0, %v3927_v9  ;;  %v3953_v2 = vpop.eup %2997 }
 0x158   : > { %v1300_v20 = vmul.f32 -0.5, %v3927_v9  ;;  %3007 = vlog2.f32 %v1288_v29  ;;  %v5742_v47 = vand.u32 2147483647, %v3700_v38  ;;  %v1137_v41 = vmul.f32 0.6931472, %v3793_v60 }
 0x159   : > { %v1283_v23 = vadd.f32 1.0, %v1282_v49  ;;  %3009 = vlog2.f32 %v1279_v10  ;;  %v5747_v29 = vand.u32 2147483647, %v3704_v42  ;;  %v3982_v60 = vmul.f32 %v1292_v22, %v3920_v34 }
 0x15a   : > { %v3949_v5 = vpop.f32.mrb[20].mxu0  ;;  %v3951_v12 = vpop.f32.mrb[20].mxu1  ;;  %vm3960_vm0 = vcmp.lt.f32.partialorder %v5742_v47, 0.0004427343  ;;  %v1155_v54 = vmul.f32 0.6931472, %v3818_v33  ;;  %3011 = vlog2.f32 %v1297_v17 }
 0x15b   : > { %5740 = vst [vmem:[#allocation35_spill] sm:$0xff] %v3949_v5  ;;  %5741 = vst [vmem:[#allocation36_spill] sm:$0xff] %v3951_v12  ;;  %v3965_v49 = vpop.f32.mrb[21].mxu0  ;;  %v3967_v40 = vpop.f32.mrb[21].mxu1  ;;  %v1134_v62 = vsel %vm3960_vm0, %v3725_v3, %v1128_v46  ;;  %vm1142_vm1 = vcmp.lt.f32.partialorder %v5747_v29, 0.0004427343 }
 0x15c   : > { %5745 = vst [vmem:[#allocation37_spill] sm:$0xff] %v3965_v49  ;;  %5746 = vst [vmem:[#allocation38_spill] sm:$0xff] %v3967_v40  ;;  %v3975_v38 = vpop.f32.mrb[22].mxu0  ;;  %v3977_v47 = vpop.f32.mrb[22].mxu1  ;;  %v1143_v10 = vsel %vm1142_vm1, %v3741_v14, %v1137_v41  ;;  %v5750_v42 = vand.u32 2147483647, %v3702_v39  ;;  %v864_v41 = vadd.f32 %v3783_v51, %v3690_v25 }
 0x15d   : > { %5748 = vst [vmem:[#allocation39_spill] sm:$0xff] %v3975_v38  ;;  %5749 = vst [vmem:[#allocation40_spill] sm:$0xff] %v3977_v47  ;;  %v3979_v12 = vpop.eup %2999  ;;  %v2281_v40 = vpop.permute.xlu0 %2280  ;;  %v5751_v46 = vand.u32 2147483647, %v3706_v43  ;;  %v671_v43 = vadd.f32 %v3781_v50, %v3688_v24  ;;  %v866_v50 = vadd.f32 %v3802_v4, %v3694_v27  ;;  %v5756_v17 = vand.u32 2147483647, %v3722_v63 }
 0x15e   : > { %v3987_v3 = vpop.eup %3001  ;;  %vm1151_vm2 = vcmp.lt.f32.partialorder %v5750_v42, 0.0004427343  ;;  %v3997_v22 = vmul.f32 %v2281_v40, %v1134_v62  ;;  %v3999_v47 = vmul.f32 %v2281_v40, %v1143_v10  ;;  %v4001_v14 = vpop.f32.mrb[23].mxu0  ;;  %v4016_v10 = vmul.f32 %v1283_v23, %v3925_v44 }
 0x15f   : > { %vm3993_vm3 = vcmp.lt.f32.partialorder %v5751_v46, 0.0004427343  ;;  %5754 = vst [vmem:[#allocation41_spill] sm:$0xff] %v4001_v14  ;;  %v4003_v52 = vpop.f32.mrb[23].mxu1  ;;  %v1152_v33 = vsel %vm1151_vm2, %v3738_v13, %v1146_v56  ;;  %v4013_v62 = vpop.eup %3003  ;;  %v1301_v42 = vadd.f32 1.0, %v1300_v20  ;;  %v4020_v13 = vmax.f32 %v671_v43, 0.0 }
 0x160   : > { %5755 = vst [vmem:[#allocation42_spill] sm:$0xff] %v4003_v52  ;;  %v1161_v39 = vsel %vm3993_vm3, %v3756_v28, %v1155_v54  ;;  %v4018_v46 = vmul.f32 %v2281_v40, %v1152_v33  ;;  %v4022_v56 = vmax.f32 %v864_v41, 0.0  ;;  %v673_v28 = vadd.f32 %v3791_v59, %v3692_v26 }
 0x161   : > { %v4028_v51 = vmul.f32 %v2281_v40, %v1161_v39  ;;  %v2566_v54 = vmax.f32 %v3997_v22, 0.0  ;;  %v1164_v23 = vmul.f32 0.6931472, %v3826_v57  ;;  %vm4034_vm4 = vcmp.lt.f32.partialorder %v5756_v17, 0.0004427343  ;;  %v4044_v39 = vpop.eup %3005 }
 0x162   : > { %v2567_v29 = vmax.f32 %v3999_v47, 0.0  ;;  %v1306_v33 = vadd.f32 1.0, %v4020_v13  ;;  %v1309_v59 = vmul.f32 -0.5, %v4020_v13  ;;  %v4042_v40 = vpop.f32.mrb[24].mxu0  ;;  %v1324_v57 = vadd.f32 1.0, %v4022_v56  ;;  %v4052_v41 = vpop.f32.mrb[24].mxu1 }
 0x163   : > { %5759 = vst [vmem:[#allocation43_spill] sm:$0xff] %v4042_v40  ;;  %v1327_v63 = vmul.f32 -0.5, %v4022_v56  ;;  %v4048_v22 = vmax.f32 %v673_v28, 0.0  ;;  %v4050_v43 = vmax.f32 %v866_v50, 0.0  ;;  %5760 = vst [vmem:[#allocation44_spill] sm:$0xff] %v4052_v41  ;;  %v4054_v47 = vpop.eup %3007  ;;  %v4057_v17 = vmul.f32 %v1301_v42, %v3927_v9  ;;  %v4061_v14 = vpop.f32.mrb[25].mxu0 }
 0x164   : > { %v2568_v4 = vmax.f32 %v4018_v46, 0.0  ;;  %v1310_v40 = vadd.f32 1.0, %v1309_v59  ;;  %v1173_v52 = vmul.f32 0.6931472, %v3850_v7  ;;  %5762 = vst [vmem:[#allocation46_spill] sm:$0xff] %v4061_v14  ;;  %v4063_v38 = vpop.f32.mrb[25].mxu1  ;;  %v4065_v28 = vpop.eup %3009  ;;  %3013 = vlog2.f32 %v1306_v33 }
 0x165   : > { %5761 = vst [vmem:[#allocation45_spill] sm:$0xff] %v4057_v17  ;;  %5763 = vst [vmem:[#allocation47_spill] sm:$0xff] %v4063_v38  ;;  %v2569_v50 = vmax.f32 %v4028_v51, 0.0  ;;  %v1328_v49 = vadd.f32 1.0, %v1327_v63  ;;  %v1315_v41 = vadd.f32 1.0, %v4048_v22  ;;  %v1318_v5 = vmul.f32 -0.5, %v4048_v22  ;;  %v2286_v7 = vpop.permute.xlu0 %2285 }
 0x166   : > { %v4070_v42 = vpop.f32.mrb[26].mxu0  ;;  %v4072_v17 = vpop.f32.mrb[26].mxu1  ;;  %v1336_v46 = vmul.f32 -0.5, %v4050_v43  ;;  %v1170_v59 = vsel %vm4034_vm4, %v3767_v36, %v1164_v23  ;;  %v4084_v63 = vmul.f32 %v1310_v40, %v4020_v13  ;;  %3015 = vlog2.f32 %v1324_v57 }
 0x167   : > { %5764 = vst [vmem:[#allocation48_spill] sm:$0xff] %v4070_v42  ;;  %5765 = vst [vmem:[#allocation49_spill] sm:$0xff] %v4072_v17  ;;  %v4079_v38 = vpop.f32.mrb[27].mxu0  ;;  %v4081_v51 = vpop.f32.mrb[27].mxu1  ;;  %v4088_v33 = vadd.f32 1.0, %v4050_v43  ;;  %v4091_v17 = vmul.f32 %v1328_v49, %v4022_v56  ;;  %v4093_v14 = vadd.f32 1.0, %v1318_v5  ;;  %3017 = vlog2.f32 %v1315_v41 }
 0x168   : > { %5766 = vst [vmem:[#allocation50_spill] sm:$0xff] %v4079_v38  ;;  %5767 = vst [vmem:[#allocation51_spill] sm:$0xff] %v4081_v51  ;;  %v5768_v36 = vand.u32 2147483647, %v3743_v15  ;;  %v1182_v20 = vmul.f32 0.6931472, %v3839_v32  ;;  %v4102_v40 = vpop.eup %3011  ;;  %v2442_v41 = vmul.f32 %v2286_v7, %v1170_v59 }
 0x169   : > { %v5771_v49 = vand.u32 2147483647, %v3733_v11  ;;  %v1191_v5 = vmul.f32 0.6931472, %v3871_v18  ;;  %v5774_v32 = vand.u32 2147483647, %v3745_v16  ;;  %3019 = vlog2.f32 %v4088_v33 }
 0x16a   : > { %vm4097_vm5 = vcmp.lt.f32.partialorder %v5768_v36, 0.0004427343  ;;  %v4110_v42 = vpop.f32.mrb[28].mxu0  ;;  %v4112_v15 = vpop.f32.mrb[28].mxu1  ;;  %v1337_v36 = vadd.f32 1.0, %v1336_v46 }
 0x16b   : > { %v1179_v57 = vsel %vm4097_vm5, %v3808_v19, %v1173_v52  ;;  %vm1187_vm6 = vcmp.lt.f32.partialorder %v5771_v49, 0.0004427343  ;;  %5772 = vst [vmem:[#allocation52_spill] sm:$0xff] %v4110_v42  ;;  %5773 = vst [vmem:[#allocation53_spill] sm:$0xff] %v4112_v15  ;;  %vm1196_vm7 = vcmp.lt.f32.partialorder %v5774_v32, 0.0004427343  ;;  %v4123_v42 = vmax.f32 %v2566_v54, %v2442_v41  ;;  %v2291_v54 = vpop.permute.xlu1 %2290 }
 0x16c   : > { %v1188_v51 = vsel %vm1187_vm6, %v3796_v61, %v1182_v20  ;;  %v4117_v38 = vpop.f32.mrb[29].mxu0  ;;  %v4119_v23 = vpop.f32.mrb[29].mxu1  ;;  %v1197_v11 = vsel %vm1196_vm7, %v3814_v0, %v1191_v5  ;;  %v2443_v19 = vmul.f32 %v2286_v7, %v1179_v57  ;;  %v1200_v18 = vmul.f32 0.6931472, %v3893_v48  ;;  %v5784_v32 = vld [vmem:[#allocation20_spill] sm:$0xff] }
 0x16d   : > { %5775 = vst [vmem:[#allocation54_spill] sm:$0xff] %v4117_v38  ;;  %5776 = vst [vmem:[#allocation55_spill] sm:$0xff] %v4119_v23  ;;  %v2444_v52 = vmul.f32 %v2286_v7, %v1188_v51  ;;  %v2445_v49 = vmul.f32 %v2286_v7, %v1197_v11  ;;  %v5777_v46 = vand.u32 2147483647, %v3769_v37  ;;  %v1209_v16 = vmul.f32 0.6931472, %v3914_v35 }
 0x16e   : > { %v4128_v61 = vpop.f32.mrb[30].mxu0  ;;  %v4130_v59 = vmax.f32 %v2567_v29, %v2443_v19  ;;  %v5779_v51 = vand.u32 2147483647, %v3798_v1  ;;  %v1218_v37 = vmul.f32 0.6931472, %v3903_v31  ;;  %v4143_v57 = vpop.f32.mrb[30].mxu1 }
 0x16f   : > { %vm1205_vm8 = vcmp.lt.f32.partialorder %v5777_v46, 0.0004427343  ;;  %5778 = vst [vmem:[#allocation56_spill] sm:$0xff] %v4128_v61  ;;  %v4132_v20 = vmax.f32 %v2568_v4, %v2444_v52  ;;  %v4137_v48 = vmax.f32 %v2569_v50, %v2445_v49  ;;  %v5780_v35 = vand.u32 2147483647, %v3789_v58  ;;  %5781 = vst [vmem:[#allocation57_spill] sm:$0xff] %v4143_v57  ;;  %v4152_v50 = vpop.eup %3013 }
 0x170   : > { %v1206_v0 = vsel %vm1205_vm8, %v3829_v53, %v1200_v18  ;;  %vm1214_vm9 = vcmp.lt.f32.partialorder %v5779_v51, 0.0004427343  ;;  %v1227_v29 = vmul.f32 0.6931472, %v3936_v21  ;;  %v5782_v4 = vld [vmem:[#allocation10_spill] sm:$0xff]  ;;  %v5785_v31 = vld [vmem:[#allocation11_spill] sm:$0xff]  ;;  %v4161_v52 = vpop.eup %3015 }
 0x171   : > { %v1215_v7 = vsel %vm1214_vm9, %v3874_v6, %v1209_v16  ;;  %vm1223_vm10 = vcmp.lt.f32.partialorder %v5780_v35, 0.0004427343  ;;  %v5783_v5 = vand.u32 2147483647, %v5782_v4  ;;  %v4148_v53 = vmul.f32 %v2291_v54, %v1206_v0  ;;  %v5786_v58 = vld [vmem:[#allocation12_spill] sm:$0xff]  ;;  %v5787_v19 = vld [vmem:[#allocation14_spill] sm:$0xff]  ;;  %v4178_v4 = vpop.eup %3017 }
 0x172   : > { %v4150_v1 = vmul.f32 %v2291_v54, %v1215_v7  ;;  %v1224_v6 = vsel %vm1223_vm10, %v5784_v32, %v1218_v37  ;;  %v677_v41 = vadd.f32 %v5785_v31, %v3688_v24  ;;  %v870_v11 = vadd.f32 %v5786_v58, %v3690_v25  ;;  %v5788_v18 = vld [vmem:[#allocation23_spill] sm:$0xff]  ;;  %v5790_v31 = vld [vmem:[#allocation16_spill] sm:$0xff]  ;;  %v4187_v58 = vpop.f32.mrb[31].mxu0 }
 0x173   : > { %vm1232_vm11 = vcmp.lt.f32.partialorder %v5783_v5, 0.0004427343  ;;  %v679_v21 = vadd.f32 %v5787_v19, %v3692_v26  ;;  %v4164_v46 = vmul.f32 %v2291_v54, %v1224_v6  ;;  %v5789_v32 = vld [vmem:[#allocation15_spill] sm:$0xff]  ;;  %5791 = vst [vmem:[#allocation10_spill] sm:$0xff] %v4187_v58  ;;  %v4237_v33 = vpop.f32.mrb[32].mxu0 }
 0x174   : > { %v1233_v49 = vsel %vm1232_vm11, %v5788_v18, %v1227_v29  ;;  %v4172_v7 = vmax.f32 %v677_v41, 0.0  ;;  %v4174_v37 = vmax.f32 %v870_v11, 0.0  ;;  %v872_v6 = vadd.f32 %v5789_v32, %v3694_v27  ;;  %5795 = vst [vmem:[#allocation12_spill] sm:$0xff] %v4237_v33  ;;  %v4251_v33 = vpop.eup %3019 }
 0x175   : > { %v4170_v51 = vmul.f32 %v2291_v54, %v1233_v49  ;;  %v4176_v35 = vmax.f32 %v679_v21, 0.0  ;;  %v681_v54 = vadd.f32 %v5790_v31, %v3688_v24  ;;  %v5792_v21 = vld [vmem:[#allocation17_spill] sm:$0xff]  ;;  %v4195_v49 = vpop.f32.mrb[31].mxu1  ;;  %v4199_v32 = vmul.f32 %v4093_v14, %v4048_v22 }
 0x176   : > { %v1342_v11 = vadd.f32 1.0, %v4172_v7  ;;  %v1345_v19 = vmul.f32 -0.5, %v4172_v7  ;;  %v874_v18 = vadd.f32 %v5792_v21, %v3690_v25  ;;  %5793 = vst [vmem:[#allocation20_spill] sm:$0xff] %v4195_v49  ;;  %v1360_v31 = vadd.f32 1.0, %v4174_v37  ;;  %v5800_v25 = vld [vmem:[#allocation21_spill] sm:$0xff] }
 0x177   : > { %v1363_v29 = vmul.f32 -0.5, %v4174_v37  ;;  %v4205_v41 = vmul.f32 %v1337_v36, %v4050_v43  ;;  %v1351_v0 = vadd.f32 1.0, %v4176_v35  ;;  %v1354_v21 = vmul.f32 -0.5, %v4176_v35 }
 0x178   : > { %v1346_v5 = vadd.f32 1.0, %v1345_v19  ;;  %v4210_v58 = vmax.f32 %v872_v6, 0.0  ;;  %v4212_v14 = vmax.f32 %v681_v54, 0.0  ;;  %3021 = vlog2.f32 %v1342_v11 }
 0x179   : > { %v1364_v49 = vadd.f32 1.0, %v1363_v29  ;;  %v1355_v57 = vadd.f32 1.0, %v1354_v21  ;;  %v4215_v61 = vmax.f32 %v874_v18, 0.0  ;;  %3023 = vlog2.f32 %v1360_v31  ;;  %v5799_v21 = vld [vmem:[#allocation24_spill] sm:$0xff] }
 0x17a   : > { %v1369_v19 = vadd.f32 1.0, %v4210_v58  ;;  %v1372_v23 = vmul.f32 -0.5, %v4210_v58  ;;  %v4221_v16 = vmul.f32 %v1346_v5, %v4172_v7  ;;  %3025 = vlog2.f32 %v1351_v0 }
 0x17b   : > { %v1378_v29 = vadd.f32 1.0, %v4212_v14  ;;  %v1381_v6 = vmul.f32 -0.5, %v4212_v14  ;;  %v4226_v54 = vmul.f32 %v1364_v49, %v4174_v37  ;;  %v4229_v11 = vmul.f32 %v1355_v57, %v4176_v35  ;;  %v5796_v57 = vld [vmem:[#allocation13_spill] sm:$0xff] }
 0x17c   : > { %v1373_v18 = vadd.f32 1.0, %v1372_v23  ;;  %3027 = vlog2.f32 %v1369_v19  ;;  %v4234_v5 = vadd.f32 1.0, %v4215_v61  ;;  %v1236_v0 = vmul.f32 0.6931472, %v3953_v2  ;;  %v4244_v23 = vpop.f32.mrb[32].mxu1 }
 0x17d   : > { %5794 = vst [vmem:[#allocation11_spill] sm:$0xff] %v4226_v54  ;;  %3029 = vlog2.f32 %v1378_v29  ;;  %v4239_v36 = vadd.f32 1.0, %v1381_v6  ;;  %v1399_v49 = vmul.f32 -0.5, %v4215_v61  ;;  %v5797_v38 = vand.u32 2147483647, %v5796_v57  ;;  %5798 = vst [vmem:[#allocation14_spill] sm:$0xff] %v4244_v23  ;;  %v2296_v6 = vpop.permute.xlu1 %2295 }
 0x17e   : > { %v1245_v15 = vmul.f32 0.6931472, %v3987_v3  ;;  %v5801_v2 = vand.u32 2147483647, %v5800_v25  ;;  %v4254_v29 = vmul.f32 %v1373_v18, %v4210_v58  ;;  %v1254_v57 = vmul.f32 0.6931472, %v3979_v12 }
 0x17f   : > { %vm1241_vm12 = vcmp.lt.f32.partialorder %v5797_v38, 0.0004427343  ;;  %v5803_v38 = vld [vmem:[#allocation18_spill] sm:$0xff]  ;;  %v1263_v19 = vmul.f32 0.6931472, %v4013_v62  ;;  %v5807_v18 = vld [vmem:[#allocation31_spill] sm:$0xff]  ;;  %3031 = vlog2.f32 %v4234_v5 }
 0x180   : > { %v1242_v31 = vsel %vm1241_vm12, %v5799_v21, %v1236_v0  ;;  %vm1250_vm13 = vcmp.lt.f32.partialorder %v5801_v2, 0.0004427343  ;;  %5802 = vst [vmem:[#allocation23_spill] sm:$0xff] %v4254_v29  ;;  %v5804_v54 = vand.u32 2147483647, %v5803_v38  ;;  %v5805_v23 = vld [vmem:[#allocation34_spill] sm:$0xff] }
 0x181   : > { %v1251_v21 = vsel %vm1250_vm13, %v5805_v23, %v1245_v15  ;;  %v5806_v3 = vand.u32 2147483647, %v3863_v55  ;;  %v2450_v25 = vmul.f32 %v2296_v6, %v1242_v31  ;;  %v1272_v0 = vmul.f32 0.6931472, %v4044_v39  ;;  %v4264_v2 = vpop.f32.mrb[33].mxu0  ;;  %v4274_v62 = vpop.f32.mrb[33].mxu1 }
 0x182   : > { %vm1259_vm14 = vcmp.lt.f32.partialorder %v5804_v54, 0.0004427343  ;;  %v2451_v12 = vmul.f32 %v2296_v6, %v1251_v21  ;;  %v5808_v38 = vand.u32 2147483647, %v3895_v30  ;;  %v4276_v55 = vpop.eup %3021  ;;  %v5811_v39 = vmax.f32 %v4123_v42, %v4148_v53 }
 0x183   : > { %vm1268_vm15 = vcmp.lt.f32.partialorder %v5806_v3, 0.0004427343  ;;  %v1260_v29 = vsel %vm1259_vm14, %v5807_v18, %v1254_v57  ;;  %v4286_v30 = vpop.eup %3023  ;;  %v1281_v21 = vmul.f32 0.6931472, %v4065_v28  ;;  %v1290_v42 = vmul.f32 0.6931472, %v4054_v47 }
 0x184   : > { %v1269_v24 = vsel %vm1268_vm15, %v3943_v8, %v1263_v19  ;;  %vm4270_vm0 = vcmp.lt.f32.partialorder %v5808_v38, 0.0004427343  ;;  %v2452_v15 = vmul.f32 %v2296_v6, %v1260_v29  ;;  %v4281_v23 = vmax.f32 %v5811_v39, %v2450_v25  ;;  %v4297_v53 = vpop.eup %3025 }
 0x185   : > { %v2453_v31 = vmul.f32 %v2296_v6, %v1269_v24  ;;  %v1278_v8 = vsel %vm4270_vm0, %v3956_v45, %v1272_v0  ;;  %v5812_v19 = vmax.f32 %v4130_v59, %v4150_v1  ;;  %v5813_v24 = vand.u32 2147483647, %v3925_v44  ;;  %v2301_v59 = vpop.permute.xlu0 %2300 }
 0x186   : > { %v5814_v29 = vmax.f32 %v4132_v20, %v4164_v46  ;;  %v5815_v6 = vmax.f32 %v4137_v48, %v4170_v51  ;;  %v5816_v1 = vand.u32 2147483647, %v3920_v34  ;;  %v1299_v44 = vmul.f32 0.6931472, %v4102_v40  ;;  %v4314_v46 = vpop.f32.mrb[34].mxu0  ;;  %v3028_v0 = vpop.eup %3027  ;;  %v5818_v48 = vld [vmem:[#allocation45_spill] sm:$0xff] }
 0x187   : > { %v4291_v57 = vmax.f32 %v5812_v19, %v2451_v12  ;;  %vm1286_vm1 = vcmp.lt.f32.partialorder %v5813_v24, 0.0004427343  ;;  %v5817_v25 = vand.u32 2147483647, %v3927_v9  ;;  %v2454_v20 = vmul.f32 %v2301_v59, %v1278_v8  ;;  %v5819_v34 = vld [vmem:[#allocation19_spill] sm:$0xff]  ;;  %v4319_v54 = vpop.eup %3029 }
 0x188   : > { %v2580_v45 = vmax.f32 %v5814_v29, %v2452_v15  ;;  %v4305_v3 = vmax.f32 %v5815_v6, %v2453_v31  ;;  %vm1295_vm2 = vcmp.lt.f32.partialorder %v5816_v1, 0.0004427343  ;;  %v1287_v28 = vsel %vm1286_vm1, %v4016_v10, %v1281_v21  ;;  %v4328_v21 = vpop.f32.mrb[34].mxu1 }
 0x189   : > { %v1296_v47 = vsel %vm1295_vm2, %v3982_v60, %v1290_v42  ;;  %vm1304_vm3 = vcmp.lt.f32.partialorder %v5817_v25, 0.0004427343  ;;  %v2455_v18 = vmul.f32 %v2301_v59, %v1287_v28  ;;  %v683_v38 = vadd.f32 %v5819_v34, %v3692_v26  ;;  %v5820_v60 = vld [vmem:[#allocation22_spill] sm:$0xff]  ;;  %v2306_v28 = vpop.permute.xlu1 %2305  ;;  %v4368_v25 = vpop.f32.mrb[35].mxu0 }
 0x18a   : > { %v1305_v51 = vsel %vm1304_vm3, %v5818_v48, %v1299_v44  ;;  %v2456_v12 = vmul.f32 %v2301_v59, %v1296_v47  ;;  %v2582_v10 = vmax.f32 %v4281_v23, %v2454_v20  ;;  %v876_v9 = vadd.f32 %v5820_v60, %v3694_v27  ;;  %v4375_v34 = vpop.f32.mrb[35].mxu1 }
 0x18b   : > { %v2457_v40 = vmul.f32 %v2301_v59, %v1305_v51  ;;  %v1308_v15 = vmul.f32 0.6931472, %v4152_v50  ;;  %v1400_v31 = vadd.f32 1.0, %v1399_v49  ;;  %v2583_v39 = vmax.f32 %v4291_v57, %v2455_v18 }
 0x18c   : > { %v2584_v8 = vmax.f32 %v2580_v45, %v2456_v12  ;;  %v4326_v19 = vmax.f32 %v683_v38, 0.0  ;;  %v4332_v42 = vmax.f32 %v876_v9, 0.0  ;;  %v1317_v23 = vmul.f32 0.6931472, %v4178_v4  ;;  %v2311_v9 = vpop.permute.xlu0 %2310 }
 0x18d   : > { %v2585_v24 = vmax.f32 %v4305_v3, %v2457_v40  ;;  %v5821_v49 = vand.u32 2147483647, %v4020_v13  ;;  %v5824_v45 = vand.u32 2147483647, %v4048_v22  ;;  %v4359_v59 = vmul.f32 %v4239_v36, %v4212_v14 }
 0x18e   : > { %v1387_v29 = vadd.f32 1.0, %v4326_v19  ;;  %v1390_v50 = vmul.f32 -0.5, %v4326_v19  ;;  %v1405_v6 = vadd.f32 1.0, %v4332_v42  ;;  %v1408_v4 = vmul.f32 -0.5, %v4332_v42 }
 0x18f   : > { %vm4339_vm4 = vcmp.lt.f32.partialorder %v5821_v49, 0.0004427343  ;;  %vm4345_vm5 = vcmp.lt.f32.partialorder %v5824_v45, 0.0004427343  ;;  %v4362_v22 = vmul.f32 %v1400_v31, %v4215_v61  ;;  %v1326_v1 = vmul.f32 0.6931472, %v4161_v52 }
 0x190   : > { %v1314_v3 = vsel %vm4339_vm4, %v4084_v63, %v1308_v15  ;;  %v1323_v13 = vsel %vm4345_vm5, %v4199_v32, %v1317_v23  ;;  %3033 = vlog2.f32 %v1387_v29  ;;  %v1391_v44 = vadd.f32 1.0, %v1390_v50  ;;  %v5835_v23 = vld [vmem:[#allocation11_spill] sm:$0xff] }
 0x191   : > { %3035 = vlog2.f32 %v1405_v6  ;;  %v5827_v47 = vand.u32 2147483647, %v4022_v56  ;;  %v1335_v63 = vmul.f32 0.6931472, %v4251_v33  ;;  %v5828_v36 = vand.u32 2147483647, %v4050_v43 }
 0x192   : > { %v2458_v20 = vmul.f32 %v2306_v28, %v1314_v3  ;;  %v2459_v48 = vmul.f32 %v2306_v28, %v1323_v13  ;;  %v1409_v51 = vadd.f32 1.0, %v1408_v4  ;;  %v1344_v12 = vmul.f32 0.6931472, %v4276_v55  ;;  %v5836_v50 = vld [vmem:[#allocation23_spill] sm:$0xff] }
 0x193   : > { %vm1331_vm6 = vcmp.lt.f32.partialorder %v5827_v47, 0.0004427343  ;;  %vm1340_vm7 = vcmp.lt.f32.partialorder %v5828_v36, 0.0004427343  ;;  %v1353_v60 = vmul.f32 0.6931472, %v4297_v53 }
 0x194   : > { %v1332_v32 = vsel %vm1331_vm6, %v4091_v17, %v1326_v1  ;;  %v1341_v52 = vsel %vm1340_vm7, %v4205_v41, %v1335_v63  ;;  %v4377_v38 = vmax.f32 %v2582_v10, %v2458_v20  ;;  %v4379_v33 = vmax.f32 %v2583_v39, %v2459_v48  ;;  %v5839_v13 = vld [vmem:[#allocation27_spill] sm:$0xff]  ;;  %v4425_v63 = vpop.f32.mrb[36].mxu0 }
 0x195   : > { %v2460_v18 = vmul.f32 %v2306_v28, %v1332_v32  ;;  %v2461_v56 = vmul.f32 %v2306_v28, %v1341_v52  ;;  %v5829_v17 = vand.u32 2147483647, %v4172_v7  ;;  %v5830_v41 = vand.u32 2147483647, %v4176_v35  ;;  %v4394_v7 = vpop.eup %3031  ;;  %v5833_v35 = vld [vmem:[#allocation8_spill] sm:$0xff]  ;;  %v4427_v32 = vpop.f32.mrb[36].mxu1 }
 0x196   : > { %v1362_v10 = vmul.f32 0.6931472, %v4286_v30  ;;  %v5831_v15 = vand.u32 2147483647, %v4174_v37  ;;  %v1371_v31 = vmul.f32 0.6931472, %v3028_v0  ;;  %v689_v1 = vadd.f32 %v5839_v13, %v3692_v26 }
 0x197   : > { %vm1349_vm8 = vcmp.lt.f32.partialorder %v5829_v17, 0.0004427343  ;;  %v4383_v43 = vmax.f32 %v2584_v8, %v2460_v18  ;;  %vm1358_vm9 = vcmp.lt.f32.partialorder %v5830_v41, 0.0004427343  ;;  %v4389_v55 = vmax.f32 %v2585_v24, %v2461_v56  ;;  %v5834_v8 = vld [vmem:[#allocation25_spill] sm:$0xff]  ;;  %v5838_v0 = vld [vmem:[#allocation26_spill] sm:$0xff] }
 0x198   : > { %v1350_v40 = vsel %vm1349_vm8, %v4221_v16, %v1344_v12  ;;  %vm1367_vm10 = vcmp.lt.f32.partialorder %v5831_v15, 0.0004427343  ;;  %v1359_v39 = vsel %vm1358_vm9, %v4229_v11, %v1353_v60  ;;  %v5832_v16 = vand.u32 2147483647, %v4210_v58  ;;  %v5837_v37 = vld [vmem:[#allocation9_spill] sm:$0xff]  ;;  %v5840_v28 = vld [vmem:[#allocation28_spill] sm:$0xff] }
 0x199   : > { %v4399_v53 = vmul.f32 %v2311_v9, %v1350_v40  ;;  %v687_v24 = vadd.f32 %v5834_v8, %v5833_v35  ;;  %v1368_v29 = vsel %vm1367_vm10, %v5835_v23, %v1362_v10  ;;  %v4405_v49 = vmul.f32 %v2311_v9, %v1359_v39  ;;  %v5841_v15 = vld [vmem:[#allocation29_spill] sm:$0xff]  ;;  %v5842_v39 = vld [vmem:[#allocation30_spill] sm:$0xff] }
 0x19a   : > { %vm1376_vm11 = vcmp.lt.f32.partialorder %v5832_v16, 0.0004427343  ;;  %v880_v57 = vadd.f32 %v5838_v0, %v5837_v37  ;;  %v4409_v45 = vmul.f32 %v2311_v9, %v1368_v29  ;;  %v3034_v6 = vpop.eup %3033  ;;  %v882_v47 = vadd.f32 %v5840_v28, %v3694_v27  ;;  %v4453_v29 = vpop.f32.mrb[37].mxu1 }
 0x19b   : > { %v1377_v30 = vsel %vm1376_vm11, %v5836_v50, %v1371_v31  ;;  %v2590_v58 = vmax.f32 %v4377_v38, %v4399_v53  ;;  %v4415_v5 = vmax.f32 %v687_v24, 0.0  ;;  %v2591_v4 = vmax.f32 %v4379_v33, %v4405_v49  ;;  %v3036_v36 = vpop.eup %3035 }
 0x19c   : > { %v4411_v11 = vmul.f32 %v2311_v9, %v1377_v30  ;;  %v4419_v3 = vmax.f32 %v880_v57, 0.0  ;;  %v2592_v20 = vmax.f32 %v4383_v43, %v4409_v45  ;;  %v1393_v12 = vand.u32 2147483647, %v4326_v19  ;;  %v5848_v43 = vld [vmem:[#allocation32_spill] sm:$0xff] }
 0x19d   : > { %v1414_v52 = vadd.f32 1.0, %v4415_v5  ;;  %v1417_v18 = vmul.f32 -0.5, %v4415_v5  ;;  %v1411_v56 = vand.u32 2147483647, %v4332_v42  ;;  %v1392_v60 = vmul.f32 %v1391_v44, %v4326_v19  ;;  %v4451_v44 = vpop.f32.mrb[37].mxu0 }
 0x19e   : > { %v1432_v17 = vadd.f32 1.0, %v4419_v3  ;;  %v1435_v40 = vmul.f32 -0.5, %v4419_v3  ;;  %v4440_v41 = vmax.f32 %v689_v1, 0.0  ;;  %v4442_v9 = vmax.f32 %v882_v47, 0.0 }
 0x19f   : > { %3037 = vlog2.f32 %v1414_v52  ;;  %v1418_v10 = vadd.f32 1.0, %v1417_v18  ;;  %v691_v31 = vadd.f32 %v5841_v15, %v5833_v35  ;;  %v884_v16 = vadd.f32 %v5842_v39, %v5837_v37 }
 0x1a0   : > { %3039 = vlog2.f32 %v1432_v17  ;;  %v1410_v8 = vmul.f32 %v1409_v51, %v4332_v42  ;;  %v1436_v24 = vadd.f32 1.0, %v1435_v40  ;;  %v1423_v23 = vadd.f32 1.0, %v4440_v41 }
 0x1a1   : > { %v1426_v19 = vmul.f32 -0.5, %v4440_v41  ;;  %v1420_v50 = vand.u32 2147483647, %v4415_v5  ;;  %v1438_v30 = vand.u32 2147483647, %v4419_v3  ;;  %v1441_v0 = vadd.f32 1.0, %v4442_v9 }
 0x1a2   : > { %v1444_v57 = vmul.f32 -0.5, %v4442_v9  ;;  %3041 = vlog2.f32 %v1423_v23  ;;  %v4459_v42 = vmax.f32 %v691_v31, 0.0  ;;  %v4461_v51 = vmax.f32 %v884_v16, 0.0 }
 0x1a3   : > { %v1427_v13 = vadd.f32 1.0, %v1426_v19  ;;  %v1419_v1 = vmul.f32 %v1418_v10, %v4415_v5  ;;  %3043 = vlog2.f32 %v1441_v0  ;;  %v1380_v47 = vmul.f32 0.6931472, %v4319_v54  ;;  %v4487_v19 = vpop.f32.mrb[38].mxu1 }
 0x1a4   : > { %v1445_v28 = vadd.f32 1.0, %v1444_v57  ;;  %v1437_v52 = vmul.f32 %v1436_v24, %v4419_v3  ;;  %v1429_v18 = vand.u32 2147483647, %v4440_v41  ;;  %v1447_v17 = vand.u32 2147483647, %v4442_v9  ;;  %v4482_v24 = vpop.f32.mrb[38].mxu0  ;;  %v2316_v57 = vpop.permute.xlu1 %2315 }
 0x1a5   : > { %v1450_v40 = vadd.f32 1.0, %v4459_v42  ;;  %v1428_v15 = vmul.f32 %v1427_v13, %v4440_v41  ;;  %v1453_v31 = vmul.f32 -0.5, %v4459_v42  ;;  %v1468_v39 = vadd.f32 1.0, %v4461_v51 }
 0x1a6   : > { %v5843_v5 = vand.u32 2147483647, %v4212_v14  ;;  %v1389_v16 = vmul.f32 0.6931472, %v3034_v6  ;;  %v1446_v41 = vmul.f32 %v1445_v28, %v4442_v9  ;;  %v1471_v23 = vmul.f32 -0.5, %v4461_v51 }
 0x1a7   : > { %3045 = vlog2.f32 %v1450_v40  ;;  %vm1394_vm13 = vcmp.lt.f32.partialorder %v1393_v12, 0.0004427343  ;;  %v1398_v14 = vmul.f32 0.6931472, %v4394_v7  ;;  %v5846_v40 = vand.u32 2147483647, %v4215_v61 }
 0x1a8   : > { %vm4474_vm12 = vcmp.lt.f32.partialorder %v5843_v5, 0.0004427343  ;;  %3047 = vlog2.f32 %v1468_v39  ;;  %v1395_v13 = vsel %vm1394_vm13, %v1392_v60, %v1389_v16  ;;  %vm1412_vm15 = vcmp.lt.f32.partialorder %v1411_v56, 0.0004427343 }
 0x1a9   : > { %v1386_v3 = vsel %vm4474_vm12, %v4359_v59, %v1380_v47  ;;  %v3038_v0 = vpop.eup %3037  ;;  %vm1403_vm14 = vcmp.lt.f32.partialorder %v5846_v40, 0.0004427343  ;;  %v1407_v59 = vmul.f32 0.6931472, %v3036_v36  ;;  %v1454_v47 = vadd.f32 1.0, %v1453_v31  ;;  %v4505_v31 = vpop.f32.mrb[39].mxu0 }
 0x1aa   : > { %v3040_v6 = vpop.eup %3039  ;;  %v1404_v5 = vsel %vm1403_vm14, %v4362_v22, %v1398_v14  ;;  %v2466_v9 = vmul.f32 %v2316_v57, %v1386_v3  ;;  %v2467_v12 = vmul.f32 %v2316_v57, %v1395_v13  ;;  %v1416_v7 = vmul.f32 0.6931472, %v3038_v0  ;;  %v5849_v3 = vld [vmem:[#allocation33_spill] sm:$0xff] }
 0x1ab   : > { %v1413_v28 = vsel %vm1412_vm15, %v1410_v8, %v1407_v59  ;;  %v2468_v10 = vmul.f32 %v2316_v57, %v1404_v5  ;;  %v1472_v54 = vadd.f32 1.0, %v1471_v23  ;;  %vm1421_vm0 = vcmp.lt.f32.partialorder %v1420_v50, 0.0004427343  ;;  %v4516_v23 = vpop.f32.mrb[39].mxu1 }
 0x1ac   : > { %v2469_v48 = vmul.f32 %v2316_v57, %v1413_v28  ;;  %v2594_v60 = vmax.f32 %v2590_v58, %v2466_v9  ;;  %v3042_v61 = vpop.eup %3041  ;;  %v4498_v36 = vmax.f32 %v2591_v4, %v2467_v12  ;;  %v1422_v56 = vsel %vm1421_vm0, %v1419_v1, %v1416_v7  ;;  %v2321_v58 = vpop.permute.xlu0 %2320 }
 0x1ad   : > { %v4503_v22 = vmax.f32 %v2592_v20, %v2468_v10  ;;  %v1434_v8 = vmul.f32 0.6931472, %v3040_v6  ;;  %v3044_v39 = vpop.eup %3043  ;;  %v5847_v38 = vmax.f32 %v4389_v55, %v4411_v11  ;;  %v1425_v50 = vmul.f32 0.6931472, %v3042_v61  ;;  %v4534_v7 = vpop.f32.mrb[40].mxu0 }
 0x1ae   : > { %vm1430_vm1 = vcmp.lt.f32.partialorder %v1429_v18, 0.0004427343  ;;  %vm1439_vm2 = vcmp.lt.f32.partialorder %v1438_v30, 0.0004427343  ;;  %v1443_v49 = vmul.f32 0.6931472, %v3044_v39  ;;  %v2470_v4 = vmul.f32 %v2321_v58, %v1422_v56 }
 0x1af   : > { %v4510_v53 = vmax.f32 %v5847_v38, %v2469_v48  ;;  %v1440_v33 = vsel %vm1439_vm2, %v1437_v52, %v1434_v8  ;;  %v693_v45 = vadd.f32 %v5848_v43, %v3692_v26  ;;  %v1431_v20 = vsel %vm1430_vm1, %v1428_v15, %v1425_v50  ;;  %v5852_v39 = vld [vmem:[#allocation36_spill] sm:$0xff] }
 0x1b0   : > { %vm1448_vm3 = vcmp.lt.f32.partialorder %v1447_v17, 0.0004427343  ;;  %v2472_v1 = vmul.f32 %v2321_v58, %v1440_v33  ;;  %v886_v16 = vadd.f32 %v5849_v3, %v3694_v27  ;;  %v4518_v48 = vmul.f32 %v2321_v58, %v1431_v20 }
 0x1b1   : > { %v3046_v55 = vpop.eup %3045  ;;  %v1449_v11 = vsel %vm1448_vm3, %v1446_v41, %v1443_v49  ;;  %v2598_v18 = vmax.f32 %v2594_v60, %v2470_v4  ;;  %v1035_v30 = vmax.f32 %v693_v45, 0.0  ;;  %v1455_v17 = vmul.f32 %v1454_v47, %v4459_v42  ;;  %v4532_v47 = vpop.permute.xlu1 %2325 }
 0x1b2   : > { %v4520_v52 = vmul.f32 %v2321_v58, %v1449_v11  ;;  %v2600_v14 = vmax.f32 %v4503_v22, %v2472_v1  ;;  %v1037_v0 = vmax.f32 %v886_v16, 0.0  ;;  %v1452_v57 = vmul.f32 0.6931472, %v3046_v55  ;;  %v3048_v15 = vpop.eup %3047  ;;  %v5851_v22 = vld [vmem:[#allocation35_spill] sm:$0xff]  ;;  %v4548_v4 = vpop.f32.mrb[41].mxu0  ;;  %v5854_v11 = vld [vmem:[#allocation38_spill] sm:$0xff] }
 0x1b3   : > { %v1474_v13 = vand.u32 2147483647, %v4461_v51  ;;  %v2599_v40 = vmax.f32 %v4498_v36, %v4518_v48  ;;  %v1459_v59 = vadd.f32 1.0, %v1035_v30  ;;  %v5850_v5 = vand.u32 2147483647, %v4459_v42  ;;  %v4539_v42 = vpop.f32.mrb[40].mxu1 }
 0x1b4   : > { %v2601_v41 = vmax.f32 %v4510_v53, %v4520_v52  ;;  %v1477_v6 = vadd.f32 1.0, %v1037_v0  ;;  %v1473_v28 = vmul.f32 %v1472_v54, %v4461_v51  ;;  %v1462_v12 = vmul.f32 -0.5, %v1035_v30  ;;  %v5853_v54 = vld [vmem:[#allocation37_spill] sm:$0xff] }
 0x1b5   : > { %vm1457_vm4 = vcmp.lt.f32.partialorder %v5850_v5, 0.0004427343  ;;  %3049 = vlog2.f32 %v1459_v59  ;;  %v1470_v10 = vmul.f32 0.6931472, %v3048_v15  ;;  %v1480_v60 = vmul.f32 -0.5, %v1037_v0 }
 0x1b6   : > { %v1458_v9 = vsel %vm1457_vm4, %v1455_v17, %v1452_v57  ;;  %3051 = vlog2.f32 %v1477_v6  ;;  %vm1475_vm5 = vcmp.lt.f32.partialorder %v1474_v13, 0.0004427343  ;;  %v697_v56 = vadd.f32 %v5851_v22, %v5833_v35 }
 0x1b7   : > { %v2474_v61 = vmul.f32 %v4532_v47, %v1458_v9  ;;  %v1476_v8 = vsel %vm1475_vm5, %v1473_v28, %v1470_v10  ;;  %v890_v51 = vadd.f32 %v5852_v39, %v5837_v37  ;;  %v699_v38 = vadd.f32 %v5853_v54, %v3692_v26  ;;  %v4560_v10 = vpop.f32.mrb[41].mxu1 }
 0x1b8   : > { %v1465_v58 = vand.u32 2147483647, %v1035_v30  ;;  %v2476_v50 = vmul.f32 %v4532_v47, %v1476_v8  ;;  %v1038_v49 = vmax.f32 %v697_v56, 0.0  ;;  %v1463_v43 = vadd.f32 1.0, %v1462_v12 }
 0x1b9   : > { %v4546_v33 = vmax.f32 %v2598_v18, %v2474_v61  ;;  %v1483_v45 = vand.u32 2147483647, %v1037_v0  ;;  %v1040_v20 = vmax.f32 %v890_v51, 0.0  ;;  %v1039_v1 = vmax.f32 %v699_v38, 0.0  ;;  %v5855_v18 = vld [vmem:[#allocation39_spill] sm:$0xff]  ;;  %v5860_v38 = vld [vmem:[#allocation40_spill] sm:$0xff] }
 0x1ba   : > { %v1481_v3 = vadd.f32 1.0, %v1480_v60  ;;  %v4550_v16 = vmax.f32 %v2600_v14, %v2476_v50  ;;  %v1486_v55 = vadd.f32 1.0, %v1038_v49  ;;  %v892_v57 = vadd.f32 %v5854_v11, %v3694_v27 }
 0x1bb   : > { %v1489_v15 = vmul.f32 -0.5, %v1038_v49  ;;  %v1504_v17 = vadd.f32 1.0, %v1040_v20  ;;  %v1495_v13 = vadd.f32 1.0, %v1039_v1  ;;  %v701_v59 = vadd.f32 %v5855_v18, %v5833_v35 }
 0x1bc   : > { %vm4556_vm6 = vcmp.lt.f32.partialorder %v1465_v58, 0.0004427343  ;;  %3053 = vlog2.f32 %v1486_v55  ;;  %v1492_v5 = vand.u32 2147483647, %v1038_v49  ;;  %v1507_v9 = vmul.f32 -0.5, %v1040_v20  ;;  %v4568_v58 = vpop.f32.mrb[42].mxu0 }
 0x1bd   : > { %v1464_v28 = vmul.f32 %v1463_v43, %v1035_v30  ;;  %3055 = vlog2.f32 %v1504_v17  ;;  %v1510_v14 = vand.u32 2147483647, %v1040_v20  ;;  %v1498_v12 = vmul.f32 -0.5, %v1039_v1  ;;  %v4604_v48 = vpop.f32.mrb[43].mxu0  ;;  %v5874_v43 = vld [vmem:[#allocation43_spill] sm:$0xff] }
 0x1be   : > { %v1482_v61 = vmul.f32 %v1481_v3, %v1037_v0  ;;  %vm4562_vm7 = vcmp.lt.f32.partialorder %v1483_v45, 0.0004427343  ;;  %3057 = vlog2.f32 %v1495_v13  ;;  %v1041_v56 = vmax.f32 %v892_v57, 0.0 }
 0x1bf   : > { %v3050_v60 = vpop.eup %3049  ;;  %v1490_v51 = vadd.f32 1.0, %v1489_v15  ;;  %v1042_v54 = vmax.f32 %v701_v59, 0.0  ;;  %v894_v30 = vadd.f32 %v5860_v38, %v5837_v37  ;;  %vm4570_vm8 = vcmp.lt.f32.partialorder %v1492_v5, 0.0004427343  ;;  %v4583_v5 = vpop.f32.mrb[42].mxu1  ;;  %v5868_v38 = vld [vmem:[#allocation42_spill] sm:$0xff] }
 0x1c0   : > { %v3052_v8 = vpop.eup %3051  ;;  %v1461_v39 = vmul.f32 0.6931472, %v3050_v60  ;;  %v1508_v0 = vadd.f32 1.0, %v1507_v9  ;;  %v1513_v45 = vadd.f32 1.0, %v1041_v56  ;;  %v1516_v3 = vmul.f32 -0.5, %v1041_v56 }
 0x1c1   : > { %v1479_v50 = vmul.f32 0.6931472, %v3052_v8  ;;  %vm4576_vm9 = vcmp.lt.f32.partialorder %v1510_v14, 0.0004427343  ;;  %v1499_v57 = vadd.f32 1.0, %v1498_v12  ;;  %v1522_v17 = vadd.f32 1.0, %v1042_v54 }
 0x1c2   : > { %v1467_v55 = vsel %vm4556_vm6, %v1464_v28, %v1461_v39  ;;  %v1501_v15 = vand.u32 2147483647, %v1039_v1  ;;  %3059 = vlog2.f32 %v1513_v45  ;;  %v1525_v59 = vmul.f32 -0.5, %v1042_v54  ;;  %v4610_v45 = vpop.f32.mrb[43].mxu1 }
 0x1c3   : > { %v1485_v13 = vsel %vm4562_vm7, %v1482_v61, %v1479_v50  ;;  %v2475_v18 = vmul.f32 %v4532_v47, %v1467_v55  ;;  %v1517_v6 = vadd.f32 1.0, %v1516_v3  ;;  %v1519_v28 = vand.u32 2147483647, %v1041_v56  ;;  %5871 = vst [vmem:[#allocation15_spill] sm:$0xff] %v4610_v45  ;;  %v4650_v50 = vpop.f32.mrb[44].mxu1 }
 0x1c4   : > { %v2477_v9 = vmul.f32 %v4532_v47, %v1485_v13  ;;  %3061 = vlog2.f32 %v1522_v17  ;;  %v1491_v12 = vmul.f32 %v1490_v51, %v1038_v49  ;;  %v1509_v60 = vmul.f32 %v1508_v0, %v1040_v20  ;;  %v5867_v47 = vld [vmem:[#allocation41_spill] sm:$0xff]  ;;  %5880 = vst [vmem:[#allocation17_spill] sm:$0xff] %v4650_v50 }
 0x1c5   : > { %v4589_v14 = vmax.f32 %v2599_v40, %v2475_v18  ;;  %v1044_v22 = vmax.f32 %v894_v30, 0.0  ;;  %vm4596_vm10 = vcmp.lt.f32.partialorder %v1501_v15, 0.0004427343  ;;  %v703_v39 = vadd.f32 %v5867_v47, %v3692_v26 }
 0x1c6   : > { %v4594_v61 = vmax.f32 %v2601_v41, %v2477_v9  ;;  %v896_v36 = vadd.f32 %v5868_v38, %v3694_v27  ;;  %v3054_v40 = vpop.eup %3053  ;;  %v1500_v49 = vmul.f32 %v1499_v57, %v1039_v1  ;;  %v1526_v20 = vadd.f32 1.0, %v1525_v59  ;;  %v2331_v1 = vpop.permute.xlu0 %2330 }
 0x1c7   : > { %v1528_v51 = vand.u32 2147483647, %v1042_v54  ;;  %v1540_v30 = vadd.f32 1.0, %v1044_v22  ;;  %v3056_v53 = vpop.eup %3055  ;;  %v1488_v52 = vmul.f32 0.6931472, %v3054_v40  ;;  %v1518_v41 = vmul.f32 %v1517_v6, %v1041_v56 }
 0x1c8   : > { %vm4606_vm11 = vcmp.lt.f32.partialorder %v1519_v28, 0.0004427343  ;;  %v1043_v0 = vmax.f32 %v703_v39, 0.0  ;;  %v3058_v3 = vpop.eup %3057  ;;  %v1506_v55 = vmul.f32 0.6931472, %v3056_v53  ;;  %v1543_v15 = vmul.f32 -0.5, %v1044_v22 }
 0x1c9   : > { %3063 = vlog2.f32 %v1540_v30  ;;  %v4612_v17 = vmax.f32 %v896_v36, 0.0  ;;  %v1494_v57 = vsel %vm4570_vm8, %v1491_v12, %v1488_v52  ;;  %v1497_v13 = vmul.f32 0.6931472, %v3058_v3  ;;  %v2336_v3 = vpop.permute.xlu1 %2335 }
 0x1ca   : > { %v1546_v18 = vand.u32 2147483647, %v1044_v22  ;;  %v1531_v56 = vadd.f32 1.0, %v1043_v0  ;;  %v1512_v59 = vsel %vm4576_vm9, %v1509_v60, %v1506_v55  ;;  %v1527_v9 = vmul.f32 %v1526_v20, %v1042_v54 }
 0x1cb   : > { %vm4618_vm12 = vcmp.lt.f32.partialorder %v1528_v51, 0.0004427343  ;;  %v2478_v28 = vmul.f32 %v2331_v1, %v1494_v57  ;;  %v1503_v47 = vsel %vm4596_vm10, %v1500_v49, %v1497_v13  ;;  %v2480_v39 = vmul.f32 %v2331_v1, %v1512_v59 }
 0x1cc   : > { %3065 = vlog2.f32 %v1531_v56  ;;  %v707_v12 = vadd.f32 %v5874_v43, %v5833_v35  ;;  %v3060_v38 = vpop.eup %3059  ;;  %v4626_v36 = vmul.f32 %v2331_v1, %v1503_v47  ;;  %v1534_v60 = vmul.f32 -0.5, %v1043_v0 }
 0x1cd   : > { %v2606_v11 = vmax.f32 %v4546_v33, %v2478_v28  ;;  %v1549_v54 = vadd.f32 1.0, %v4612_v17  ;;  %v1515_v20 = vmul.f32 0.6931472, %v3060_v38  ;;  %v1544_v51 = vadd.f32 1.0, %v1543_v15  ;;  %v5877_v15 = vld [vmem:[#allocation44_spill] sm:$0xff]  ;;  %v4648_v28 = vpop.f32.mrb[44].mxu0  ;;  %v2346_v45 = vpop.permute.xlu1 %2345 }
 0x1ce   : > { %v3062_v40 = vpop.eup %3061  ;;  %vm4630_vm13 = vcmp.lt.f32.partialorder %v1546_v18, 0.0004427343  ;;  %v2608_v8 = vmax.f32 %v4550_v16, %v2480_v39  ;;  %v2607_v49 = vmax.f32 %v4589_v14, %v4626_v36  ;;  %v1537_v52 = vand.u32 2147483647, %v1043_v0  ;;  %v5878_v14 = vld [vmem:[#allocation46_spill] sm:$0xff]  ;;  %5879 = vst [vmem:[#allocation16_spill] sm:$0xff] %v4648_v28 }
 0x1cf   : > { %v1524_v53 = vmul.f32 0.6931472, %v3062_v40  ;;  %3067 = vlog2.f32 %v1549_v54  ;;  %v1521_v33 = vsel %vm4606_vm11, %v1518_v41, %v1515_v20  ;;  %v1552_v55 = vmul.f32 -0.5, %v4612_v17  ;;  %v4655_v36 = vpop.f32.mrb[45].mxu0 }
 0x1d0   : > { %v1046_v57 = vmax.f32 %v707_v12, 0.0  ;;  %v900_v13 = vadd.f32 %v5877_v15, %v5837_v37  ;;  %v4642_v18 = vmul.f32 %v2331_v1, %v1521_v33  ;;  %v1535_v56 = vadd.f32 1.0, %v1534_v60  ;;  %5881 = vst [vmem:[#allocation13_spill] sm:$0xff] %v4655_v36 }
 0x1d1   : > { %v1530_v16 = vsel %vm4618_vm12, %v1527_v9, %v1524_v53  ;;  %v709_v59 = vadd.f32 %v5878_v14, %v3692_v26  ;;  %v1545_v41 = vmul.f32 %v1544_v51, %v1044_v22  ;;  %v1555_v39 = vand.u32 2147483647, %v4612_v17 }
 0x1d2   : > { %v2482_v47 = vmul.f32 %v2336_v3, %v1530_v16  ;;  %v1558_v43 = vadd.f32 1.0, %v1046_v57  ;;  %v2609_v1 = vmax.f32 %v4594_v61, %v4642_v18  ;;  %v1561_v38 = vmul.f32 -0.5, %v1046_v57  ;;  %v4665_v16 = vpop.f32.mrb[45].mxu1 }
 0x1d3   : > { %v3064_v12 = vpop.eup %3063  ;;  %v1048_v6 = vmax.f32 %v900_v13, 0.0  ;;  %v1047_v9 = vmax.f32 %v709_v59, 0.0  ;;  %v1553_v40 = vadd.f32 1.0, %v1552_v55  ;;  %v1536_v20 = vmul.f32 %v1535_v56, %v1043_v0  ;;  %5884 = vst [vmem:[#allocation24_spill] sm:$0xff] %v4665_v16 }
 0x1d4   : > { %v1542_v60 = vmul.f32 0.6931472, %v3064_v12  ;;  %v4657_v54 = vmax.f32 %v2606_v11, %v2482_v47  ;;  %3069 = vlog2.f32 %v1558_v43  ;;  %vm4659_vm14 = vcmp.lt.f32.partialorder %v1537_v52, 0.0004427343  ;;  %v5887_v43 = vld [vmem:[#allocation47_spill] sm:$0xff] }
 0x1d5   : > { %v1576_v51 = vadd.f32 1.0, %v1048_v6  ;;  %v1579_v53 = vmul.f32 -0.5, %v1048_v6  ;;  %v1564_v15 = vand.u32 2147483647, %v1046_v57  ;;  %v1567_v13 = vadd.f32 1.0, %v1047_v9  ;;  %v5897_v52 = vld [vmem:[#allocation51_spill] sm:$0xff] }
 0x1d6   : > { %v3066_v33 = vpop.eup %3065  ;;  %v1548_v61 = vsel %vm4630_vm13, %v1545_v41, %v1542_v60  ;;  %v1570_v18 = vmul.f32 -0.5, %v1047_v9  ;;  %v1562_v55 = vadd.f32 1.0, %v1561_v38  ;;  %v1554_v0 = vmul.f32 %v1553_v40, %v4612_v17 }
 0x1d7   : > { %v2484_v11 = vmul.f32 %v2336_v3, %v1548_v61  ;;  %v1533_v14 = vmul.f32 0.6931472, %v3066_v33  ;;  %3071 = vlog2.f32 %v1576_v51  ;;  %vm4668_vm15 = vcmp.lt.f32.partialorder %v1555_v39, 0.0004427343  ;;  %v5890_v33 = vld [vmem:[#allocation48_spill] sm:$0xff]  ;;  %v5891_v61 = vld [vmem:[#allocation49_spill] sm:$0xff] }
 0x1d8   : > { %v1582_v56 = vand.u32 2147483647, %v1048_v6  ;;  %3073 = vlog2.f32 %v1567_v13  ;;  %v1580_v47 = vadd.f32 1.0, %v1579_v53  ;;  %v902_v12 = vadd.f32 %v5887_v43, %v3694_v27 }
 0x1d9   : > { %v3068_v59 = vpop.eup %3067  ;;  %v4672_v30 = vmax.f32 %v2608_v8, %v2484_v11  ;;  %v1539_v41 = vsel %vm4659_vm14, %v1536_v20, %v1533_v14  ;;  %vm4678_vm0 = vcmp.lt.f32.partialorder %v1564_v15, 0.0004427343  ;;  %v1571_v39 = vadd.f32 1.0, %v1570_v18  ;;  %v4686_v20 = vpop.f32.mrb[46].mxu0 }
 0x1da   : > { %v2483_v38 = vmul.f32 %v2336_v3, %v1539_v41  ;;  %v1551_v60 = vmul.f32 0.6931472, %v3068_v59  ;;  %v1563_v40 = vmul.f32 %v1562_v55, %v1046_v57  ;;  %v1049_v51 = vmax.f32 %v902_v12, 0.0  ;;  %5892 = vst [vmem:[#allocation21_spill] sm:$0xff] %v4686_v20  ;;  %v4696_v57 = vpop.f32.mrb[46].mxu1  ;;  %v5896_v59 = vld [vmem:[#allocation50_spill] sm:$0xff] }
 0x1db   : > { %v711_v8 = vadd.f32 %v5890_v33, %v5833_v35  ;;  %v904_v22 = vadd.f32 %v5891_v61, %v5837_v37  ;;  %vm4692_vm1 = vcmp.lt.f32.partialorder %v1582_v56, 0.0004427343  ;;  %v1573_v18 = vand.u32 2147483647, %v1047_v9  ;;  %5895 = vst [vmem:[#allocation18_spill] sm:$0xff] %v4696_v57  ;;  %v4716_v57 = vpop.f32.mrb[47].mxu1 }
 0x1dc   : > { %v4688_v53 = vmax.f32 %v2607_v49, %v2483_v38  ;;  %v1557_v13 = vsel %vm4668_vm15, %v1554_v0, %v1551_v60  ;;  %v1581_v14 = vmul.f32 %v1580_v47, %v1048_v6  ;;  %v1585_v55 = vadd.f32 1.0, %v1049_v51  ;;  %v5900_v47 = vld [vmem:[#allocation52_spill] sm:$0xff]  ;;  %5902 = vst [vmem:[#allocation31_spill] sm:$0xff] %v4716_v57  ;;  %v5924_v57 = vld [vmem:[#allocation57_spill] sm:$0xff] }
 0x1dd   : > { %v2485_v11 = vmul.f32 %v2336_v3, %v1557_v13  ;;  %v713_v41 = vadd.f32 %v5896_v59, %v3692_v26  ;;  %v1572_v12 = vmul.f32 %v1571_v39, %v1047_v9  ;;  %v1050_v49 = vmax.f32 %v711_v8, 0.0  ;;  %v2341_v39 = vpop.permute.xlu0 %2340  ;;  %v4712_v59 = vpop.f32.mrb[47].mxu0 }
 0x1de   : > { %v3070_v43 = vpop.eup %3069  ;;  %v1052_v38 = vmax.f32 %v904_v22, 0.0  ;;  %v906_v0 = vadd.f32 %v5897_v52, %v3694_v27  ;;  %3075 = vlog2.f32 %v1585_v55  ;;  %v1588_v33 = vmul.f32 -0.5, %v1049_v51  ;;  %5901 = vst [vmem:[#allocation34_spill] sm:$0xff] %v4712_v59 }
 0x1df   : > { %v4702_v56 = vmax.f32 %v2609_v1, %v2485_v11  ;;  %v1560_v60 = vmul.f32 0.6931472, %v3070_v43  ;;  %vm4704_vm2 = vcmp.lt.f32.partialorder %v1573_v18, 0.0004427343  ;;  %v1591_v3 = vand.u32 2147483647, %v1049_v51 }
 0x1e0   : > { %v1594_v6 = vadd.f32 1.0, %v1050_v49  ;;  %v717_v13 = vadd.f32 %v5900_v47, %v5833_v35  ;;  %v1597_v22 = vmul.f32 -0.5, %v1050_v49  ;;  %v1612_v1 = vadd.f32 1.0, %v1052_v38 }
 0x1e1   : > { %v3072_v9 = vpop.eup %3071  ;;  %v1566_v8 = vsel %vm4678_vm0, %v1563_v40, %v1560_v60  ;;  %v1051_v11 = vmax.f32 %v713_v41, 0.0  ;;  %v1615_v52 = vmul.f32 -0.5, %v1052_v38  ;;  %v1589_v47 = vadd.f32 1.0, %v1588_v33 }
 0x1e2   : > { %v3074_v55 = vpop.eup %3073  ;;  %v4714_v18 = vmul.f32 %v2341_v39, %v1566_v8  ;;  %v1578_v43 = vmul.f32 0.6931472, %v3072_v9  ;;  %3077 = vlog2.f32 %v1594_v6  ;;  %v4718_v16 = vmax.f32 %v906_v0, 0.0 }
 0x1e3   : > { %v1569_v20 = vmul.f32 0.6931472, %v3074_v55  ;;  %3079 = vlog2.f32 %v1612_v1  ;;  %vm4724_vm3 = vcmp.lt.f32.partialorder %v1591_v3, 0.0004427343  ;;  %v1600_v60 = vand.u32 2147483647, %v1050_v49 }
 0x1e4   : > { %v1584_v40 = vsel %vm4692_vm1, %v1581_v14, %v1578_v43  ;;  %v1598_v33 = vadd.f32 1.0, %v1597_v22  ;;  %v1603_v8 = vadd.f32 1.0, %v1051_v11  ;;  %v1616_v1 = vadd.f32 1.0, %v1615_v52 }
 0x1e5   : > { %v4728_v6 = vmul.f32 %v2341_v39, %v1584_v40  ;;  %v1575_v9 = vsel %vm4704_vm2, %v1572_v12, %v1569_v20  ;;  %v1618_v55 = vand.u32 2147483647, %v1052_v38  ;;  %v1606_v17 = vmul.f32 -0.5, %v1051_v11 }
 0x1e6   : > { %v4732_v0 = vmul.f32 %v2341_v39, %v1575_v9  ;;  %3081 = vlog2.f32 %v1603_v8  ;;  %v1609_v14 = vand.u32 2147483647, %v1051_v11  ;;  %v1621_v3 = vadd.f32 1.0, %v4718_v16 }
 0x1e7   : > { %v2616_v15 = vmax.f32 %v4672_v30, %v4728_v6  ;;  %v1590_v40 = vmul.f32 %v1589_v47, %v1049_v51  ;;  %vm4739_vm4 = vcmp.lt.f32.partialorder %v1600_v60, 0.0004427343  ;;  %v1624_v12 = vmul.f32 -0.5, %v4718_v16  ;;  %v5907_v30 = vld [vmem:[#allocation53_spill] sm:$0xff]  ;;  %v5910_v51 = vld [vmem:[#allocation54_spill] sm:$0xff] }
 0x1e8   : > { %v3076_v61 = vpop.eup %3075  ;;  %v1599_v22 = vmul.f32 %v1598_v33, %v1050_v49  ;;  %3083 = vlog2.f32 %v1621_v3  ;;  %v1054_v52 = vmax.f32 %v717_v13, 0.0  ;;  %v910_v6 = vadd.f32 %v5907_v30, %v5837_v37  ;;  %v4756_v13 = vpop.f32.mrb[48].mxu0 }
 0x1e9   : > { %v1587_v9 = vmul.f32 0.6931472, %v3076_v61  ;;  %vm4746_vm5 = vcmp.lt.f32.partialorder %v1618_v55, 0.0004427343  ;;  %v1607_v43 = vadd.f32 1.0, %v1606_v17  ;;  %v719_v47 = vadd.f32 %v5910_v51, %v3692_v26  ;;  %5913 = vst [vmem:[#allocation45_spill] sm:$0xff] %v4756_v13 }
 0x1ea   : > { %v1617_v60 = vmul.f32 %v1616_v1, %v1052_v38  ;;  %vm4752_vm6 = vcmp.lt.f32.partialorder %v1609_v14, 0.0004427343  ;;  %v1630_v49 = vadd.f32 1.0, %v1054_v52  ;;  %v1633_v33 = vmul.f32 -0.5, %v1054_v52  ;;  %v4758_v3 = vpop.f32.mrb[48].mxu1 }
 0x1eb   : > { %5914 = vst [vmem:[#allocation19_spill] sm:$0xff] %v4758_v3  ;;  %v1593_v55 = vsel %vm4724_vm3, %v1590_v40, %v1587_v9  ;;  %v1625_v30 = vadd.f32 1.0, %v1624_v12  ;;  %v1627_v17 = vand.u32 2147483647, %v4718_v16  ;;  %v1056_v59 = vmax.f32 %v910_v6, 0.0  ;;  %v5915_v12 = vld [vmem:[#allocation55_spill] sm:$0xff] }
 0x1ec   : > { %v3078_v61 = vpop.eup %3077  ;;  %v2489_v38 = vmul.f32 %v2341_v39, %v1593_v55  ;;  %3085 = vlog2.f32 %v1630_v49  ;;  %v4763_v14 = vmax.f32 %v719_v47, 0.0  ;;  %v1608_v50 = vmul.f32 %v1607_v43, %v1051_v11  ;;  %v4770_v9 = vpop.f32.mrb[49].mxu0 }
 0x1ed   : > { %v3080_v51 = vpop.eup %3079  ;;  %v1596_v1 = vmul.f32 0.6931472, %v3078_v61  ;;  %v1636_v28 = vand.u32 2147483647, %v1054_v52  ;;  %v1648_v13 = vadd.f32 1.0, %v1056_v59  ;;  %v1634_v40 = vadd.f32 1.0, %v1633_v33 }
 0x1ee   : > { %v1614_v36 = vmul.f32 0.6931472, %v3080_v51  ;;  %v2617_v3 = vmax.f32 %v4702_v56, %v2489_v38  ;;  %v912_v6 = vadd.f32 %v5915_v12, %v3694_v27  ;;  %vm4774_vm7 = vcmp.lt.f32.partialorder %v1627_v17, 0.0004427343  ;;  %v4778_v43 = vpop.f32.mrb[49].mxu1 }
 0x1ef   : > { %v1602_v41 = vsel %vm4739_vm4, %v1599_v22, %v1596_v1  ;;  %3087 = vlog2.f32 %v1648_v13  ;;  %v1626_v22 = vmul.f32 %v1625_v30, %v4718_v16  ;;  %v1651_v49 = vmul.f32 -0.5, %v1056_v59 }
 0x1f0   : > { %v2490_v39 = vmul.f32 %v2346_v45, %v1602_v41  ;;  %v1620_v47 = vsel %vm4746_vm5, %v1617_v60, %v1614_v36  ;;  %v3082_v56 = vpop.eup %3081  ;;  %v1639_v33 = vadd.f32 1.0, %v4763_v14  ;;  %v5918_v61 = vmax.f32 %v4657_v54, %v4714_v18  ;;  %v5921_v18 = vld [vmem:[#allocation56_spill] sm:$0xff] }
 0x1f1   : > { %v2492_v20 = vmul.f32 %v2346_v45, %v1620_v47  ;;  %v1605_v36 = vmul.f32 0.6931472, %v3082_v56  ;;  %vm4787_vm8 = vcmp.lt.f32.partialorder %v1636_v28, 0.0004427343  ;;  %v1654_v60 = vand.u32 2147483647, %v1056_v59 }
 0x1f2   : > { %v4785_v55 = vmax.f32 %v5918_v61, %v2490_v39  ;;  %v3084_v13 = vpop.eup %3083  ;;  %v1635_v51 = vmul.f32 %v1634_v40, %v1054_v52  ;;  %3089 = vlog2.f32 %v1639_v33  ;;  %v1057_v16 = vmax.f32 %v912_v6, 0.0  ;;  %v4799_v47 = vpop.f32.mrb[50].mxu0 }
 0x1f3   : > { %v4791_v17 = vmax.f32 %v2616_v15, %v2492_v20  ;;  %v1611_v30 = vsel %vm4752_vm6, %v1608_v50, %v1605_v36  ;;  %v1623_v38 = vmul.f32 0.6931472, %v3084_v13  ;;  %v1642_v54 = vmul.f32 -0.5, %v4763_v14  ;;  %v4814_v61 = vpop.f32.mrb[50].mxu1  ;;  %v2351_v13 = vpop.permute.xlu0 %2350 }
 0x1f4   : > { %v721_v1 = vadd.f32 %v5921_v18, %v5833_v35  ;;  %v2491_v28 = vmul.f32 %v2346_v45, %v1611_v30  ;;  %v1652_v41 = vadd.f32 1.0, %v1651_v49  ;;  %v1645_v12 = vand.u32 2147483647, %v4763_v14 }
 0x1f5   : > { %v1657_v39 = vadd.f32 1.0, %v1057_v16  ;;  %v1629_v15 = vsel %vm4774_vm7, %v1626_v22, %v1623_v38  ;;  %vm4803_vm9 = vcmp.lt.f32.partialorder %v1654_v60, 0.0004427343  ;;  %v914_v40 = vadd.f32 %v5924_v57, %v5837_v37 }
 0x1f6   : > { %v1058_v50 = vmax.f32 %v721_v1, 0.0  ;;  %v3086_v6 = vpop.eup %3085  ;;  %v5925_v56 = vmax.f32 %v4688_v53, %v4732_v0  ;;  %v2493_v49 = vmul.f32 %v2346_v45, %v1629_v15  ;;  %v1660_v33 = vmul.f32 -0.5, %v1057_v16  ;;  %v4828_v15 = vpop.f32.mrb[51].mxu1 }
 0x1f7   : > { %3091 = vlog2.f32 %v1657_v39  ;;  %v1632_v11 = vmul.f32 0.6931472, %v3086_v6  ;;  %v1643_v22 = vadd.f32 1.0, %v1642_v54  ;;  %v1653_v38 = vmul.f32 %v1652_v41, %v1056_v59  ;;  %v4826_v39 = vpop.f32.mrb[51].mxu0  ;;  %5930 = vst [vmem:[#allocation8_spill] sm:$0xff] %v4828_v15  ;;  %v4871_v18 = vpop.f32.mrb[52].mxu1 }
 0x1f8   : > { %v4812_v20 = vmax.f32 %v5925_v56, %v2491_v28  ;;  %v1666_v36 = vadd.f32 1.0, %v1058_v50  ;;  %v1669_v60 = vmul.f32 -0.5, %v1058_v50  ;;  %v4816_v30 = vmax.f32 %v2617_v3, %v2493_v49  ;;  %v5928_v28 = vld [vmem:[#allocation10_spill] sm:$0xff]  ;;  %5929 = vst [vmem:[#allocation22_spill] sm:$0xff] %v4826_v39  ;;  %5941 = vst [vmem:[#allocation11_spill] sm:$0xff] %v4871_v18 }
 0x1f9   : > { %vm4818_vm10 = vcmp.lt.f32.partialorder %v1645_v12, 0.0004427343  ;;  %v1060_v53 = vmax.f32 %v914_v40, 0.0  ;;  %v3088_v0 = vpop.eup %3087  ;;  %v1638_v45 = vsel %vm4787_vm8, %v1635_v51, %v1632_v11  ;;  %v1663_v1 = vand.u32 2147483647, %v1057_v16  ;;  %v5931_v11 = vld [vmem:[#allocation20_spill] sm:$0xff] }
 0x1fa   : > { %3093 = vlog2.f32 %v1666_v36  ;;  %v723_v54 = vadd.f32 %v5928_v28, %v3692_v26  ;;  %v4830_v3 = vmul.f32 %v2351_v13, %v1638_v45  ;;  %v1650_v59 = vmul.f32 0.6931472, %v3088_v0 }
 0x1fb   : > { %v1661_v41 = vadd.f32 1.0, %v1660_v33  ;;  %v1684_v12 = vadd.f32 1.0, %v1060_v53  ;;  %v1644_v57 = vmul.f32 %v1643_v22, %v4763_v14  ;;  %v1670_v40 = vadd.f32 1.0, %v1669_v60 }
 0x1fc   : > { %v1672_v6 = vand.u32 2147483647, %v1058_v50  ;;  %v1059_v8 = vmax.f32 %v723_v54, 0.0  ;;  %v3090_v51 = vpop.eup %3089  ;;  %v2622_v56 = vmax.f32 %v4785_v55, %v4830_v3  ;;  %v1656_v49 = vsel %vm4803_vm9, %v1653_v38, %v1650_v59  ;;  %v5934_v3 = vld [vmem:[#allocation12_spill] sm:$0xff] }
 0x1fd   : > { %3095 = vlog2.f32 %v1684_v12  ;;  %v916_v36 = vadd.f32 %v5931_v11, %v3694_v27  ;;  %v4839_v45 = vmul.f32 %v2351_v13, %v1656_v49  ;;  %v1641_v33 = vmul.f32 0.6931472, %v3090_v51 }
 0x1fe   : > { %vm4841_vm11 = vcmp.lt.f32.partialorder %v1663_v1, 0.0004427343  ;;  %v1687_v14 = vmul.f32 -0.5, %v1060_v53  ;;  %v1662_v22 = vmul.f32 %v1661_v41, %v1057_v16  ;;  %v1690_v60 = vand.u32 2147483647, %v1060_v53 }
 0x1ff   : > { %v1675_v28 = vadd.f32 1.0, %v1059_v8  ;;  %v1061_v54 = vmax.f32 %v916_v36, 0.0  ;;  %v2624_v55 = vmax.f32 %v4791_v17, %v4839_v45  ;;  %v1647_v52 = vsel %vm4818_vm10, %v1644_v57, %v1641_v33  ;;  %v5939_v45 = vld [vmem:[#allocation14_spill] sm:$0xff] }
 0x200   : > { %v1678_v38 = vmul.f32 -0.5, %v1059_v8  ;;  %v727_v59 = vadd.f32 %v5934_v3, %v5833_v35  ;;  %v4851_v1 = vmul.f32 %v2351_v13, %v1647_v52  ;;  %v1671_v51 = vmul.f32 %v1670_v40, %v1058_v50 }
 0x201   : > { %v3092_v12 = vpop.eup %3091  ;;  %vm4853_vm12 = vcmp.lt.f32.partialorder %v1672_v6, 0.0004427343  ;;  %3097 = vlog2.f32 %v1675_v28  ;;  %v1688_v41 = vadd.f32 1.0, %v1687_v14  ;;  %v1681_v11 = vand.u32 2147483647, %v1059_v8 }
 0x202   : > { %v1659_v16 = vmul.f32 0.6931472, %v3092_v12  ;;  %v1693_v17 = vadd.f32 1.0, %v1061_v54  ;;  %vm4859_vm13 = vcmp.lt.f32.partialorder %v1690_v60, 0.0004427343  ;;  %v1062_v36 = vmax.f32 %v727_v59, 0.0 }
 0x203   : > { %v920_v50 = vadd.f32 %v5939_v45, %v5837_v37  ;;  %v1679_v33 = vadd.f32 1.0, %v1678_v38  ;;  %v1696_v14 = vmul.f32 -0.5, %v1061_v54  ;;  %v4869_v60 = vpop.f32.mrb[52].mxu0  ;;  %v1689_v59 = vmul.f32 %v1688_v41, %v1060_v53  ;;  %v2356_v38 = vpop.permute.xlu1 %2355 }
 0x204   : > { %v3094_v40 = vpop.eup %3093  ;;  %v1665_v6 = vsel %vm4841_vm11, %v1662_v22, %v1659_v16  ;;  %3099 = vlog2.f32 %v1693_v17  ;;  %v1702_v3 = vadd.f32 1.0, %v1062_v36  ;;  %v1705_v12 = vmul.f32 -0.5, %v1062_v36  ;;  %5940 = vst [vmem:[#allocation25_spill] sm:$0xff] %v4869_v60  ;;  %v4879_v22 = vpop.f32.mrb[53].mxu0 }
 0x205   : > { %v4867_v28 = vmul.f32 %v2351_v13, %v1665_v6  ;;  %v1668_v52 = vmul.f32 0.6931472, %v3094_v40  ;;  %vm4873_vm14 = vcmp.lt.f32.partialorder %v1681_v11, 0.0004427343  ;;  %v1064_v45 = vmax.f32 %v920_v50, 0.0  ;;  %5944 = vst [vmem:[#allocation23_spill] sm:$0xff] %v4879_v22 }
 0x206   : > { %v729_v0 = vadd.f32 %v4264_v2, %v3692_v26  ;;  %v1699_v40 = vand.u32 2147483647, %v1061_v54  ;;  %3101 = vlog2.f32 %v1702_v3  ;;  %v1697_v11 = vadd.f32 1.0, %v1696_v14 }
 0x207   : > { %v3096_v13 = vpop.eup %3095  ;;  %v2625_v16 = vmax.f32 %v4816_v30, %v4867_v28  ;;  %v1674_v17 = vsel %vm4853_vm12, %v1671_v51, %v1668_v52  ;;  %v1720_v6 = vadd.f32 1.0, %v1064_v45  ;;  %v1680_v50 = vmul.f32 %v1679_v33, %v1059_v8  ;;  %v4895_v33 = vpop.f32.mrb[53].mxu1 }
 0x208   : > { %v2498_v53 = vmul.f32 %v2356_v38, %v1674_v17  ;;  %v1686_v41 = vmul.f32 0.6931472, %v3096_v13  ;;  %v1706_v18 = vadd.f32 1.0, %v1705_v12  ;;  %v1708_v60 = vand.u32 2147483647, %v1062_v36 }
 0x209   : > { %v1063_v2 = vmax.f32 %v729_v0, 0.0  ;;  %3103 = vlog2.f32 %v1720_v6  ;;  %v922_v30 = vadd.f32 %v4274_v62, %v3694_v27  ;;  %vm4891_vm15 = vcmp.lt.f32.partialorder %v1699_v40, 0.0004427343 }
 0x20a   : > { %v4885_v39 = vmax.f32 %v2622_v56, %v2498_v53  ;;  %v1692_v22 = vsel %vm4859_vm13, %v1689_v59, %v1686_v41  ;;  %v1723_v14 = vmul.f32 -0.5, %v1064_v45  ;;  %v1698_v56 = vmul.f32 %v1697_v11, %v1061_v54  ;;  %v4907_v54 = vpop.f32.mrb[54].mxu0 }
 0x20b   : > { %v3098_v51 = vpop.eup %3097  ;;  %v2500_v49 = vmul.f32 %v2356_v38, %v1692_v22  ;;  %v1711_v8 = vadd.f32 1.0, %v1063_v2  ;;  %v1726_v3 = vand.u32 2147483647, %v1064_v45  ;;  %v1065_v12 = vmax.f32 %v922_v30, 0.0 }
 0x20c   : > { %v1677_v52 = vmul.f32 0.6931472, %v3098_v51  ;;  %v1714_v59 = vmul.f32 -0.5, %v1063_v2  ;;  %v731_v62 = vadd.f32 %v4314_v46, %v5833_v35  ;;  %v1707_v13 = vmul.f32 %v1706_v18, %v1062_v36  ;;  %v4915_v18 = vpop.f32.mrb[54].mxu1 }
 0x20d   : > { %v4897_v57 = vmax.f32 %v2624_v55, %v2500_v49  ;;  %3105 = vlog2.f32 %v1711_v8  ;;  %vm4903_vm0 = vcmp.lt.f32.partialorder %v1708_v60, 0.0004427343  ;;  %v1729_v40 = vadd.f32 1.0, %v1065_v12 }
 0x20e   : > { %v3100_v0 = vpop.eup %3099  ;;  %v1683_v22 = vsel %vm4873_vm14, %v1680_v50, %v1677_v52  ;;  %v1724_v41 = vadd.f32 1.0, %v1723_v14  ;;  %v1717_v11 = vand.u32 2147483647, %v1063_v2  ;;  %vm4909_vm1 = vcmp.lt.f32.partialorder %v1726_v3, 0.0004427343 }
 0x20f   : > { %v2499_v53 = vmul.f32 %v2356_v38, %v1683_v22  ;;  %v1695_v55 = vmul.f32 0.6931472, %v3100_v0  ;;  %3107 = vlog2.f32 %v1729_v40  ;;  %v1066_v46 = vmax.f32 %v731_v62, 0.0  ;;  %v2361_v22 = vpop.permute.xlu0 %2360 }
 0x210   : > { %v924_v15 = vadd.f32 %v4328_v21, %v5837_v37  ;;  %v3102_v36 = vpop.eup %3101  ;;  %v5951_v60 = vmax.f32 %v4812_v20, %v4851_v1  ;;  %v1715_v51 = vadd.f32 1.0, %v1714_v59  ;;  %v1732_v49 = vmul.f32 -0.5, %v1065_v12 }
 0x211   : > { %v1701_v30 = vsel %vm4891_vm15, %v1698_v56, %v1695_v55  ;;  %v1704_v8 = vmul.f32 0.6931472, %v3102_v36  ;;  %v1735_v52 = vand.u32 2147483647, %v1065_v12  ;;  %v1738_v3 = vadd.f32 1.0, %v1066_v46  ;;  %v4934_v56 = vpop.f32.mrb[55].mxu0 }
 0x212   : > { %v4920_v50 = vmax.f32 %v5951_v60, %v2499_v53  ;;  %v2501_v14 = vmul.f32 %v2356_v38, %v1701_v30  ;;  %v1725_v62 = vmul.f32 %v1724_v41, %v1064_v45  ;;  %vm4924_vm2 = vcmp.lt.f32.partialorder %v1717_v11, 0.0004427343  ;;  %v4948_v60 = vpop.f32.mrb[55].mxu1 }
 0x213   : > { %v1068_v0 = vmax.f32 %v924_v15, 0.0  ;;  %v733_v20 = vadd.f32 %v4368_v25, %v3692_v26  ;;  %v3104_v1 = vpop.eup %3103  ;;  %v1710_v28 = vsel %vm4903_vm0, %v1707_v13, %v1704_v8  ;;  %3109 = vlog2.f32 %v1738_v3 }
 0x214   : > { %v4930_v40 = vmax.f32 %v2625_v16, %v2501_v14  ;;  %v1741_v38 = vmul.f32 -0.5, %v1066_v46  ;;  %v4936_v45 = vmul.f32 %v2361_v22, %v1710_v28  ;;  %v1722_v59 = vmul.f32 0.6931472, %v3104_v1 }
 0x215   : > { %v1733_v53 = vadd.f32 1.0, %v1732_v49  ;;  %v1756_v55 = vadd.f32 1.0, %v1068_v0  ;;  %v1716_v41 = vmul.f32 %v1715_v51, %v1063_v2  ;;  %vm4938_vm3 = vcmp.lt.f32.partialorder %v1735_v52, 0.0004427343 }
 0x216   : > { %v1744_v25 = vand.u32 2147483647, %v1066_v46  ;;  %v1067_v16 = vmax.f32 %v733_v20, 0.0  ;;  %v2630_v13 = vmax.f32 %v4885_v39, %v4936_v45  ;;  %v1728_v17 = vsel %vm4909_vm1, %v1725_v62, %v1722_v59 }
 0x217   : > { %v3106_v15 = vpop.eup %3105  ;;  %3111 = vlog2.f32 %v1756_v55  ;;  %v926_v36 = vadd.f32 %v4375_v34, %v3694_v27  ;;  %v4950_v2 = vmul.f32 %v2361_v22, %v1728_v17  ;;  %v1742_v51 = vadd.f32 1.0, %v1741_v38 }
 0x218   : > { %v1713_v30 = vmul.f32 0.6931472, %v3106_v15  ;;  %v1759_v49 = vmul.f32 -0.5, %v1068_v0  ;;  %v1734_v14 = vmul.f32 %v1733_v53, %v1065_v12  ;;  %v1762_v8 = vand.u32 2147483647, %v1068_v0 }
 0x219   : > { %v1747_v52 = vadd.f32 1.0, %v1067_v16  ;;  %v4952_v3 = vmax.f32 %v926_v36, 0.0  ;;  %v3108_v39 = vpop.eup %3107  ;;  %v2632_v6 = vmax.f32 %v4897_v57, %v4950_v2  ;;  %v1750_v34 = vmul.f32 -0.5, %v1067_v16 }
 0x21a   : > { %v1719_v62 = vsel %vm4924_vm2, %v1716_v41, %v1713_v30  ;;  %v737_v20 = vadd.f32 %v4425_v63, %v5833_v35  ;;  %v1731_v28 = vmul.f32 0.6931472, %v3108_v39  ;;  %vm4962_vm4 = vcmp.lt.f32.partialorder %v1744_v25, 0.0004427343  ;;  %v2366_v39 = vpop.permute.xlu1 %2365 }
 0x21b   : > { %v4960_v1 = vmul.f32 %v2361_v22, %v1719_v62  ;;  %3113 = vlog2.f32 %v1747_v52  ;;  %v1743_v38 = vmul.f32 %v1742_v51, %v1066_v46  ;;  %v1760_v45 = vadd.f32 1.0, %v1759_v49 }
 0x21c   : > { %v1753_v59 = vand.u32 2147483647, %v1067_v16  ;;  %v1765_v57 = vadd.f32 1.0, %v4952_v3  ;;  %v1737_v53 = vsel %vm4938_vm3, %v1734_v14, %v1731_v28  ;;  %v1768_v63 = vmul.f32 -0.5, %v4952_v3  ;;  %v4985_v14 = vpop.f32.mrb[56].mxu0 }
 0x21d   : > { %v1070_v55 = vmax.f32 %v737_v20, 0.0  ;;  %v3110_v41 = vpop.eup %3109  ;;  %v4972_v25 = vmul.f32 %v2361_v22, %v1737_v53  ;;  %vm4974_vm5 = vcmp.lt.f32.partialorder %v1762_v8, 0.0004427343  ;;  %v1751_v46 = vadd.f32 1.0, %v1750_v34  ;;  %v4987_v8 = vpop.f32.mrb[56].mxu1 }
 0x21e   : > { %3115 = vlog2.f32 %v1765_v57  ;;  %v1740_v17 = vmul.f32 0.6931472, %v3110_v41  ;;  %v1771_v36 = vand.u32 2147483647, %v4952_v3  ;;  %v1761_v51 = vmul.f32 %v1760_v45, %v1068_v0  ;;  %v4995_v20 = vpop.f32.mrb[57].mxu0 }
 0x21f   : > { %v1774_v2 = vadd.f32 1.0, %v1070_v55  ;;  %v1777_v30 = vmul.f32 -0.5, %v1070_v55  ;;  %v930_v49 = vadd.f32 %v4427_v32, %v5837_v37  ;;  %v739_v22 = vadd.f32 %v4451_v44, %v3692_v26 }
 0x220   : > { %v1746_v62 = vsel %vm4962_vm4, %v1743_v38, %v1740_v17  ;;  %vm4991_vm6 = vcmp.lt.f32.partialorder %v1753_v59, 0.0004427343  ;;  %v1769_v0 = vadd.f32 1.0, %v1768_v63  ;;  %v1752_v57 = vmul.f32 %v1751_v46, %v1067_v16  ;;  %v5001_v38 = vpop.f32.mrb[57].mxu1 }
 0x221   : > { %v3112_v52 = vpop.eup %3111  ;;  %3117 = vlog2.f32 %v1774_v2  ;;  %v2506_v32 = vmul.f32 %v2366_v39, %v1746_v62  ;;  %v1072_v44 = vmax.f32 %v930_v49, 0.0  ;;  %v1071_v45 = vmax.f32 %v739_v22, 0.0 }
 0x222   : > { %v1758_v28 = vmul.f32 0.6931472, %v3112_v52  ;;  %vm4997_vm7 = vcmp.lt.f32.partialorder %v1771_v36, 0.0004427343  ;;  %v1778_v41 = vadd.f32 1.0, %v1777_v30  ;;  %v932_v2 = vadd.f32 %v4453_v29, %v3694_v27 }
 0x223   : > { %v1780_v12 = vand.u32 2147483647, %v1070_v55  ;;  %v5003_v59 = vmax.f32 %v2630_v13, %v2506_v32  ;;  %v1792_v17 = vadd.f32 1.0, %v1072_v44  ;;  %v1795_v16 = vmul.f32 -0.5, %v1072_v44 }
 0x224   : > { %v1764_v63 = vsel %vm4974_vm5, %v1761_v51, %v1758_v28  ;;  %v1783_v46 = vadd.f32 1.0, %v1071_v45  ;;  %v741_v36 = vadd.f32 %v4482_v24, %v5833_v35  ;;  %v1786_v52 = vmul.f32 -0.5, %v1071_v45 }
 0x225   : > { %v3114_v49 = vpop.eup %3113  ;;  %v2508_v22 = vmul.f32 %v2366_v39, %v1764_v63  ;;  %3119 = vlog2.f32 %v1792_v17  ;;  %v934_v13 = vadd.f32 %v4487_v19, %v5837_v37  ;;  %v1770_v15 = vmul.f32 %v1769_v0, %v4952_v3  ;;  %v5026_v3 = vpop.f32.mrb[58].mxu1 }
 0x226   : > { %v1749_v30 = vmul.f32 0.6931472, %v3114_v49  ;;  %vm5016_vm8 = vcmp.lt.f32.partialorder %v1780_v12, 0.0004427343  ;;  %3121 = vlog2.f32 %v1783_v46  ;;  %v1798_v24 = vand.u32 2147483647, %v1072_v44 }
 0x227   : > { %v5013_v62 = vmax.f32 %v2632_v6, %v2508_v22  ;;  %v1789_v28 = vand.u32 2147483647, %v1071_v45  ;;  %v1073_v63 = vmax.f32 %v932_v2, 0.0  ;;  %v1796_v11 = vadd.f32 1.0, %v1795_v16  ;;  %v5024_v6 = vpop.f32.mrb[58].mxu0 }
 0x228   : > { %v3116_v29 = vpop.eup %3115  ;;  %v1755_v32 = vsel %vm4991_vm6, %v1752_v57, %v1749_v30  ;;  %v5022_v19 = vmax.f32 %v741_v36, 0.0  ;;  %v1779_v0 = vmul.f32 %v1778_v41, %v1070_v55  ;;  %v1787_v12 = vadd.f32 1.0, %v1786_v52 }
 0x229   : > { %v2507_v17 = vmul.f32 %v2366_v39, %v1755_v32  ;;  %v1767_v49 = vmul.f32 0.6931472, %v3116_v29  ;;  %v1801_v22 = vadd.f32 1.0, %v1073_v63  ;;  %v5028_v46 = vmax.f32 %v934_v13, 0.0 }
 0x22a   : > { %v5966_v34 = vmax.f32 %v4920_v50, %v4960_v1  ;;  %v1804_v16 = vmul.f32 -0.5, %v1073_v63  ;;  %v1810_v36 = vadd.f32 1.0, %v5022_v19  ;;  %v1807_v55 = vand.u32 2147483647, %v1073_v63  ;;  %v2371_v50 = vpop.permute.xlu0 %2370 }
 0x22b   : > { %v3118_v21 = vpop.eup %3117  ;;  %v1773_v2 = vsel %vm4997_vm7, %v1770_v15, %v1767_v49  ;;  %3123 = vlog2.f32 %v1801_v22  ;;  %v1797_v41 = vmul.f32 %v1796_v11, %v1072_v44  ;;  %vm5038_vm9 = vcmp.lt.f32.partialorder %v1798_v24, 0.0004427343 }
 0x22c   : > { %v5033_v57 = vmax.f32 %v5966_v34, %v2507_v17  ;;  %v2509_v30 = vmul.f32 %v2366_v39, %v1773_v2  ;;  %v1776_v29 = vmul.f32 0.6931472, %v3118_v21  ;;  %vm5042_vm10 = vcmp.lt.f32.partialorder %v1789_v28, 0.0004427343  ;;  %v5058_v28 = vpop.f32.mrb[59].mxu0  ;;  %v5073_v34 = vpop.f32.mrb[59].mxu1 }
 0x22d   : > { %3125 = vlog2.f32 %v1810_v36  ;;  %v5971_v1 = vmax.f32 %v4930_v40, %v4972_v25  ;;  %v1788_v39 = vmul.f32 %v1787_v12, %v1071_v45  ;;  %v1828_v11 = vadd.f32 1.0, %v5028_v46 }
 0x22e   : > { %v1782_v21 = vsel %vm5016_vm8, %v1779_v0, %v1776_v29  ;;  %v1805_v15 = vadd.f32 1.0, %v1804_v16  ;;  %v1813_v32 = vmul.f32 -0.5, %v5022_v19  ;;  %v1816_v24 = vand.u32 2147483647, %v5022_v19 }
 0x22f   : > { %v5049_v53 = vmax.f32 %v5971_v1, %v2509_v30  ;;  %v5054_v44 = vmul.f32 %v2371_v50, %v1782_v21  ;;  %v3120_v17 = vpop.eup %3119  ;;  %vm5060_vm11 = vcmp.lt.f32.partialorder %v1807_v55, 0.0004427343  ;;  %3127 = vlog2.f32 %v1828_v11 }
 0x230   : > { %v743_v25 = vadd.f32 %v4505_v31, %v3692_v26  ;;  %v936_v45 = vadd.f32 %v4516_v23, %v3694_v27  ;;  %v3122_v51 = vpop.eup %3121  ;;  %v1794_v0 = vmul.f32 0.6931472, %v3120_v17  ;;  %v1831_v12 = vmul.f32 -0.5, %v5028_v46 }
 0x231   : > { %v2638_v49 = vmax.f32 %v5003_v59, %v5054_v44  ;;  %v747_v22 = vadd.f32 %v4534_v7, %v5833_v35  ;;  %v1785_v2 = vmul.f32 0.6931472, %v3122_v51  ;;  %v1834_v16 = vand.u32 2147483647, %v5028_v46 }
 0x232   : > { %v1075_v36 = vmax.f32 %v743_v25, 0.0  ;;  %v5076_v31 = vmax.f32 %v936_v45, 0.0  ;;  %v1800_v23 = vsel %vm5038_vm9, %v1797_v41, %v1794_v0  ;;  %v1806_v30 = vmul.f32 %v1805_v15, %v1073_v63 }
 0x233   : > { %v1814_v29 = vadd.f32 1.0, %v1813_v32  ;;  %vm5080_vm12 = vcmp.lt.f32.partialorder %v1816_v24, 0.0004427343  ;;  %v2512_v55 = vmul.f32 %v2371_v50, %v1800_v23  ;;  %v1791_v7 = vsel %vm5042_vm10, %v1788_v39, %v1785_v2  ;;  %v5106_v23 = vpop.f32.mrb[60].mxu1 }
 0x234   : > { %v1819_v1 = vadd.f32 1.0, %v1075_v36  ;;  %v1822_v21 = vmul.f32 -0.5, %v1075_v36  ;;  %v5086_v11 = vmul.f32 %v2371_v50, %v1791_v7  ;;  %v1832_v44 = vadd.f32 1.0, %v1831_v12  ;;  %v5100_v12 = vpop.f32.mrb[60].mxu0  ;;  %v2376_v7 = vpop.permute.xlu1 %2375 }
 0x235   : > { %v1837_v17 = vadd.f32 1.0, %v5076_v31  ;;  %v1078_v25 = vmax.f32 %v747_v22, 0.0  ;;  %v3124_v52 = vpop.eup %3123  ;;  %v2640_v63 = vmax.f32 %v5013_v62, %v2512_v55  ;;  %vm5090_vm13 = vcmp.lt.f32.partialorder %v1834_v16, 0.0004427343  ;;  %v5131_v41 = vpop.f32.mrb[61].mxu1 }
 0x236   : > { %3129 = vlog2.f32 %v1819_v1  ;;  %v940_v13 = vadd.f32 %v4539_v42, %v5837_v37  ;;  %v2639_v15 = vmax.f32 %v5033_v57, %v5086_v11  ;;  %v1803_v32 = vmul.f32 0.6931472, %v3124_v52 }
 0x237   : > { %v3126_v39 = vpop.eup %3125  ;;  %v1825_v24 = vand.u32 2147483647, %v1075_v36  ;;  %3131 = vlog2.f32 %v1837_v17  ;;  %v1815_v51 = vmul.f32 %v1814_v29, %v5022_v19  ;;  %v1823_v0 = vadd.f32 1.0, %v1822_v21  ;;  %v5110_v17 = vpop.f32.mrb[61].mxu0 }
 0x238   : > { %v1812_v45 = vmul.f32 0.6931472, %v3126_v39  ;;  %v1840_v62 = vmul.f32 -0.5, %v5076_v31  ;;  %v1809_v22 = vsel %vm5060_vm11, %v1806_v30, %v1803_v32  ;;  %v1833_v42 = vmul.f32 %v1832_v44, %v5028_v46 }
 0x239   : > { %v1843_v2 = vand.u32 2147483647, %v5076_v31  ;;  %v1846_v16 = vadd.f32 1.0, %v1078_v25  ;;  %v3128_v55 = vpop.eup %3127  ;;  %v2513_v1 = vmul.f32 %v2371_v50, %v1809_v22  ;;  %v1849_v29 = vmul.f32 -0.5, %v1078_v25 }
 0x23a   : > { %v1818_v19 = vsel %vm5080_vm12, %v1815_v51, %v1812_v45  ;;  %v1080_v21 = vmax.f32 %v940_v13, 0.0  ;;  %v1830_v40 = vmul.f32 0.6931472, %v3128_v55  ;;  %vm5112_vm14 = vcmp.lt.f32.partialorder %v1825_v24, 0.0004427343 }
 0x23b   : > { %v2514_v52 = vmul.f32 %v2376_v7, %v1818_v19  ;;  %3133 = vlog2.f32 %v1846_v16  ;;  %v2641_v46 = vmax.f32 %v5049_v53, %v2513_v1  ;;  %v1824_v44 = vmul.f32 %v1823_v0, %v1075_v36 }
 0x23c   : > { %v1841_v39 = vadd.f32 1.0, %v1840_v62  ;;  %v1864_v32 = vadd.f32 1.0, %v1080_v21  ;;  %v1836_v59 = vsel %vm5090_vm13, %v1833_v42, %v1830_v40  ;;  %v1852_v13 = vand.u32 2147483647, %v1078_v25 }
 0x23d   : > { %v5117_v50 = vmax.f32 %v2638_v49, %v2514_v52  ;;  %v1867_v45 = vmul.f32 -0.5, %v1080_v21  ;;  %v2516_v51 = vmul.f32 %v2376_v7, %v1836_v59  ;;  %v1850_v22 = vadd.f32 1.0, %v1849_v29  ;;  %v5148_v59 = vpop.f32.mrb[62].mxu0 }
 0x23e   : > { %3135 = vlog2.f32 %v1864_v32  ;;  %v749_v24 = vadd.f32 %v4548_v4, %v3692_v26  ;;  %vm5123_vm15 = vcmp.lt.f32.partialorder %v1843_v2, 0.0004427343  ;;  %v1870_v53 = vand.u32 2147483647, %v1080_v21 }
 0x23f   : > { %v942_v49 = vadd.f32 %v4560_v10, %v3694_v27  ;;  %v751_v36 = vadd.f32 %v4568_v58, %v5833_v35  ;;  %v5133_v62 = vmax.f32 %v2640_v63, %v2516_v51  ;;  %v1842_v42 = vmul.f32 %v1841_v39, %v5076_v31  ;;  %v5992_v31 = vld [vmem:[#allocation16_spill] sm:$0xff] }
 0x240   : > { %v3130_v0 = vpop.eup %3129  ;;  %v1079_v55 = vmax.f32 %v749_v24, 0.0  ;;  %v944_v4 = vadd.f32 %v4583_v5, %v5837_v37  ;;  %vm5138_vm0 = vcmp.lt.f32.partialorder %v1852_v13, 0.0004427343  ;;  %v1868_v10 = vadd.f32 1.0, %v1867_v45 }
 0x241   : > { %v3132_v2 = vpop.eup %3131  ;;  %v1821_v1 = vmul.f32 0.6931472, %v3130_v0  ;;  %v1081_v29 = vmax.f32 %v942_v49, 0.0  ;;  %v1851_v52 = vmul.f32 %v1850_v22, %v1078_v25  ;;  %vm5144_vm1 = vcmp.lt.f32.partialorder %v1870_v53, 0.0004427343  ;;  %v5154_v25 = vpop.f32.mrb[62].mxu1 }
 0x242   : > { %v1839_v58 = vmul.f32 0.6931472, %v3132_v2  ;;  %v1855_v40 = vadd.f32 1.0, %v1079_v55  ;;  %v1858_v32 = vmul.f32 -0.5, %v1079_v55  ;;  %v1082_v39 = vmax.f32 %v751_v36, 0.0 }
 0x243   : > { %v1827_v63 = vsel %vm5112_vm14, %v1824_v44, %v1821_v1  ;;  %v1873_v5 = vadd.f32 1.0, %v1081_v29  ;;  %v5152_v51 = vmax.f32 %v944_v4, 0.0  ;;  %v1869_v44 = vmul.f32 %v1868_v10, %v1080_v21 }
 0x244   : > { %v2515_v13 = vmul.f32 %v2376_v7, %v1827_v63  ;;  %v1845_v45 = vsel %vm5123_vm15, %v1842_v42, %v1839_v58  ;;  %3137 = vlog2.f32 %v1855_v40  ;;  %v1876_v24 = vmul.f32 -0.5, %v1081_v29 }
 0x245   : > { %v3134_v22 = vpop.eup %3133  ;;  %v2517_v30 = vmul.f32 %v2376_v7, %v1845_v45  ;;  %3139 = vlog2.f32 %v1873_v5  ;;  %v1859_v36 = vadd.f32 1.0, %v1858_v32  ;;  %v1861_v0 = vand.u32 2147483647, %v1079_v55  ;;  %v2381_v7 = vpop.permute.xlu0 %2380 }
 0x246   : > { %v5159_v53 = vmax.f32 %v2639_v15, %v2515_v13  ;;  %v1848_v49 = vmul.f32 0.6931472, %v3134_v22  ;;  %v1882_v42 = vadd.f32 1.0, %v1082_v39  ;;  %v1885_v4 = vmul.f32 -0.5, %v1082_v39  ;;  %v5169_v15 = vpop.f32.mrb[63].mxu0  ;;  %v5998_v22 = vld [vmem:[#allocation13_spill] sm:$0xff] }
 0x247   : > { %v5161_v16 = vmax.f32 %v2641_v46, %v2517_v30  ;;  %v753_v2 = vadd.f32 %v4604_v48, %v3692_v26  ;;  %v1879_v10 = vand.u32 2147483647, %v1081_v29  ;;  %v1900_v57 = vadd.f32 1.0, %v5152_v51  ;;  %v5990_v30 = vld [vmem:[#allocation15_spill] sm:$0xff] }
 0x248   : > { %v3136_v1 = vpop.eup %3135  ;;  %v1854_v21 = vsel %vm5138_vm0, %v1851_v52, %v1848_v49  ;;  %v1903_v11 = vmul.f32 -0.5, %v5152_v51  ;;  %v1877_v40 = vadd.f32 1.0, %v1876_v24  ;;  %3141 = vlog2.f32 %v1882_v42  ;;  %v5189_v49 = vpop.f32.mrb[63].mxu1 }
 0x249   : > { %v5171_v58 = vmul.f32 %v2381_v7, %v1854_v21  ;;  %v1866_v46 = vmul.f32 0.6931472, %v3136_v1  ;;  %v1860_v32 = vmul.f32 %v1859_v36, %v1079_v55  ;;  %vm5173_vm2 = vcmp.lt.f32.partialorder %v1861_v0, 0.0004427343  ;;  %5991 = vst [vmem:[#allocation9_spill] sm:$0xff] %v5189_v49 }
 0x24a   : > { %v1888_v63 = vand.u32 2147483647, %v1082_v39  ;;  %3143 = vlog2.f32 %v1900_v57  ;;  %v1886_v5 = vadd.f32 1.0, %v1885_v4  ;;  %v1083_v13 = vmax.f32 %v753_v2, 0.0 }
 0x24b   : > { %v1872_v52 = vsel %vm5144_vm1, %v1869_v44, %v1866_v46  ;;  %vm5183_vm3 = vcmp.lt.f32.partialorder %v1879_v10, 0.0004427343  ;;  %v1904_v55 = vadd.f32 1.0, %v1903_v11  ;;  %v946_v24 = vadd.f32 %v5990_v30, %v3694_v27  ;;  %v5995_v10 = vld [vmem:[#allocation17_spill] sm:$0xff] }
 0x24c   : > { %v5181_v45 = vmul.f32 %v2381_v7, %v1872_v52  ;;  %v1878_v36 = vmul.f32 %v1877_v40, %v1081_v29  ;;  %v1891_v0 = vadd.f32 1.0, %v1083_v13  ;;  %v1894_v42 = vmul.f32 -0.5, %v1083_v13 }
 0x24d   : > { %v757_v44 = vadd.f32 %v5992_v31, %v5833_v35  ;;  %vm5195_vm4 = vcmp.lt.f32.partialorder %v1888_v63, 0.0004427343  ;;  %v1085_v21 = vmax.f32 %v946_v24, 0.0  ;;  %v950_v57 = vadd.f32 %v5995_v10, %v5837_v37 }
 0x24e   : > { %v3138_v4 = vpop.eup %3137  ;;  %v2648_v2 = vmax.f32 %v5133_v62, %v5181_v45  ;;  %v1887_v29 = vmul.f32 %v1886_v5, %v1082_v39  ;;  %v1906_v40 = vand.u32 2147483647, %v5152_v51  ;;  %3145 = vlog2.f32 %v1891_v0 }
 0x24f   : > { %v3140_v11 = vpop.eup %3139  ;;  %v1857_v46 = vmul.f32 0.6931472, %v3138_v4  ;;  %v1905_v30 = vmul.f32 %v1904_v55, %v5152_v51  ;;  %v1897_v31 = vand.u32 2147483647, %v1083_v13  ;;  %v1909_v19 = vadd.f32 1.0, %v1085_v21 }
 0x250   : > { %v1875_v52 = vmul.f32 0.6931472, %v3140_v11  ;;  %v1895_v63 = vadd.f32 1.0, %v1894_v42  ;;  %v1912_v45 = vmul.f32 -0.5, %v1085_v21  ;;  %v1086_v24 = vmax.f32 %v757_v44, 0.0  ;;  %v2386_v11 = vpop.permute.xlu1 %2385 }
 0x251   : > { %v1863_v62 = vsel %vm5173_vm2, %v1860_v32, %v1857_v46  ;;  %3147 = vlog2.f32 %v1909_v19  ;;  %v5207_v39 = vmax.f32 %v950_v57, 0.0  ;;  %vm5211_vm5 = vcmp.lt.f32.partialorder %v1906_v40, 0.0004427343 }
 0x252   : > { %v2519_v49 = vmul.f32 %v2381_v7, %v1863_v62  ;;  %v1881_v10 = vsel %vm5183_vm3, %v1878_v36, %v1875_v52  ;;  %v3142_v5 = vpop.eup %3141  ;;  %v1915_v55 = vand.u32 2147483647, %v1085_v21  ;;  %v1918_v48 = vadd.f32 1.0, %v1086_v24 }
 0x253   : > { %v5209_v0 = vmul.f32 %v2381_v7, %v1881_v10  ;;  %v1884_v44 = vmul.f32 0.6931472, %v3142_v5  ;;  %v1921_v4 = vmul.f32 -0.5, %v1086_v24  ;;  %v759_v36 = vadd.f32 %v5998_v22, %v3692_v26  ;;  %v6015_v22 = vld [vmem:[#allocation45_spill] sm:$0xff] }
 0x254   : > { %v3144_v32 = vpop.eup %3143  ;;  %v2647_v42 = vmax.f32 %v5159_v53, %v2519_v49  ;;  %vm5220_vm6 = vcmp.lt.f32.partialorder %v1897_v31, 0.0004427343  ;;  %3149 = vlog2.f32 %v1918_v48  ;;  %v1896_v40 = vmul.f32 %v1895_v63, %v1083_v13  ;;  %v6004_v63 = vld [vmem:[#allocation24_spill] sm:$0xff] }
 0x255   : > { %v2649_v19 = vmax.f32 %v5161_v16, %v5209_v0  ;;  %v1902_v57 = vmul.f32 0.6931472, %v3144_v32  ;;  %v1890_v46 = vsel %vm5195_vm4, %v1887_v29, %v1884_v44  ;;  %v1913_v53 = vadd.f32 1.0, %v1912_v45  ;;  %v6005_v45 = vld [vmem:[#allocation21_spill] sm:$0xff]  ;;  %v2391_v16 = vpop.permute.xlu0 %2390 }
 0x256   : > { %v1936_v49 = vadd.f32 1.0, %v5207_v39  ;;  %v2522_v52 = vmul.f32 %v2386_v11, %v1890_v46  ;;  %vm5229_vm7 = vcmp.lt.f32.partialorder %v1915_v55, 0.0004427343  ;;  %v1924_v31 = vand.u32 2147483647, %v1086_v24 }
 0x257   : > { %v1908_v62 = vsel %vm5211_vm5, %v1905_v30, %v1902_v57  ;;  %v1922_v5 = vadd.f32 1.0, %v1921_v4  ;;  %v1087_v0 = vmax.f32 %v759_v36, 0.0  ;;  %v6003_v13 = vmax.f32 %v5117_v50, %v5171_v58 }
 0x258   : > { %v2524_v10 = vmul.f32 %v2386_v11, %v1908_v62  ;;  %3151 = vlog2.f32 %v1936_v49  ;;  %v3146_v48 = vpop.eup %3145  ;;  %v1939_v29 = vmul.f32 -0.5, %v5207_v39  ;;  %v952_v30 = vadd.f32 %v6004_v63, %v3694_v27  ;;  %v6009_v63 = vld [vmem:[#allocation34_spill] sm:$0xff] }
 0x259   : > { %v5236_v1 = vmax.f32 %v6003_v13, %v2522_v52  ;;  %v761_v51 = vadd.f32 %v6005_v45, %v5833_v35  ;;  %v1893_v32 = vmul.f32 0.6931472, %v3146_v48  ;;  %v1914_v44 = vmul.f32 %v1913_v53, %v1085_v21  ;;  %v6008_v48 = vld [vmem:[#allocation18_spill] sm:$0xff] }
 0x25a   : > { %v5243_v55 = vmax.f32 %v2648_v2, %v2524_v10  ;;  %v1927_v4 = vadd.f32 1.0, %v1087_v0  ;;  %vm5245_vm8 = vcmp.lt.f32.partialorder %v1924_v31, 0.0004427343  ;;  %v1930_v50 = vmul.f32 -0.5, %v1087_v0 }
 0x25b   : > { %v1089_v58 = vmax.f32 %v952_v30, 0.0  ;;  %v5249_v36 = vmax.f32 %v761_v51, 0.0  ;;  %v3148_v57 = vpop.eup %3147  ;;  %v1899_v46 = vsel %vm5220_vm6, %v1896_v40, %v1893_v32  ;;  %v1923_v49 = vmul.f32 %v1922_v5, %v1086_v24 }
 0x25c   : > { %v1942_v52 = vand.u32 2147483647, %v5207_v39  ;;  %3153 = vlog2.f32 %v1927_v4  ;;  %v2523_v2 = vmul.f32 %v2386_v11, %v1899_v46  ;;  %v1911_v62 = vmul.f32 0.6931472, %v3148_v57 }
 0x25d   : > { %v1940_v21 = vadd.f32 1.0, %v1939_v29  ;;  %v1933_v53 = vand.u32 2147483647, %v1087_v0  ;;  %v1945_v31 = vadd.f32 1.0, %v1089_v58  ;;  %v1954_v10 = vadd.f32 1.0, %v5249_v36 }
 0x25e   : > { %v954_v13 = vadd.f32 %v6008_v48, %v5837_v37  ;;  %v763_v30 = vadd.f32 %v6009_v63, %v3692_v26  ;;  %v3150_v45 = vpop.eup %3149  ;;  %v5259_v7 = vmax.f32 %v2647_v42, %v2523_v2  ;;  %v1917_v24 = vsel %vm5229_vm7, %v1914_v44, %v1911_v62 }
 0x25f   : > { %v1931_v40 = vadd.f32 1.0, %v1930_v50  ;;  %v1948_v5 = vmul.f32 -0.5, %v1089_v58  ;;  %v2525_v51 = vmul.f32 %v2386_v11, %v1917_v24  ;;  %v1920_v29 = vmul.f32 0.6931472, %v3150_v45 }
 0x260   : > { %3155 = vlog2.f32 %v1945_v31  ;;  %v1957_v32 = vmul.f32 -0.5, %v5249_v36  ;;  %v1941_v4 = vmul.f32 %v1940_v21, %v5207_v39  ;;  %vm5265_vm9 = vcmp.lt.f32.partialorder %v1942_v52, 0.0004427343 }
 0x261   : > { %vm5269_vm10 = vcmp.lt.f32.partialorder %v1933_v53, 0.0004427343  ;;  %3157 = vlog2.f32 %v1954_v10  ;;  %v5273_v44 = vmax.f32 %v2649_v19, %v2525_v51  ;;  %v1926_v11 = vsel %vm5245_vm8, %v1923_v49, %v1920_v29  ;;  %v6014_v19 = vld [vmem:[#allocation31_spill] sm:$0xff] }
 0x262   : > { %v3152_v42 = vpop.eup %3151  ;;  %v1951_v50 = vand.u32 2147483647, %v1089_v58  ;;  %v1092_v2 = vmax.f32 %v954_v13, 0.0  ;;  %v2526_v62 = vmul.f32 %v2391_v16, %v1926_v11  ;;  %v1932_v52 = vmul.f32 %v1931_v40, %v1087_v0 }
 0x263   : > { %v1938_v39 = vmul.f32 0.6931472, %v3152_v42  ;;  %v1949_v21 = vadd.f32 1.0, %v1948_v5  ;;  %v1958_v31 = vadd.f32 1.0, %v1957_v32  ;;  %v1091_v63 = vmax.f32 %v763_v30, 0.0 }
 0x264   : > { %v1972_v48 = vadd.f32 1.0, %v1092_v2  ;;  %v1975_v53 = vmul.f32 -0.5, %v1092_v2  ;;  %v2654_v45 = vmax.f32 %v5236_v1, %v2526_v62  ;;  %v956_v24 = vadd.f32 %v6014_v19, %v3694_v27 }
 0x265   : > { %v1944_v10 = vsel %vm5265_vm9, %v1941_v4, %v1938_v39  ;;  %v767_v49 = vadd.f32 %v6015_v22, %v5833_v35  ;;  %vm5286_vm11 = vcmp.lt.f32.partialorder %v1951_v50, 0.0004427343  ;;  %v1960_v30 = vand.u32 2147483647, %v5249_v36 }
 0x266   : > { %v3154_v13 = vpop.eup %3153  ;;  %v5284_v51 = vmul.f32 %v2391_v16, %v1944_v10  ;;  %3159 = vlog2.f32 %v1972_v48  ;;  %v1950_v40 = vmul.f32 %v1949_v21, %v1089_v58  ;;  %v1978_v5 = vand.u32 2147483647, %v1092_v2 }
 0x267   : > { %v1929_v1 = vmul.f32 0.6931472, %v3154_v13  ;;  %v1963_v29 = vadd.f32 1.0, %v1091_v63  ;;  %v1959_v4 = vmul.f32 %v1958_v31, %v5249_v36  ;;  %v1093_v57 = vmax.f32 %v956_v24, 0.0 }
 0x268   : > { %v2656_v32 = vmax.f32 %v5243_v55, %v5284_v51  ;;  %v1094_v42 = vmax.f32 %v767_v49, 0.0  ;;  %v1976_v50 = vadd.f32 1.0, %v1975_v53  ;;  %v1966_v62 = vmul.f32 -0.5, %v1091_v63  ;;  %v2396_v51 = vpop.permute.xlu1 %2395 }
 0x269   : > { %v1935_v11 = vsel %vm5269_vm10, %v1932_v52, %v1929_v1  ;;  %3161 = vlog2.f32 %v1963_v29  ;;  %vm5298_vm12 = vcmp.lt.f32.partialorder %v1960_v30, 0.0004427343  ;;  %v1981_v21 = vadd.f32 1.0, %v1093_v57 }
 0x26a   : > { %v3156_v39 = vpop.eup %3155  ;;  %v5296_v10 = vmul.f32 %v2391_v16, %v1935_v11  ;;  %v1984_v48 = vmul.f32 -0.5, %v1093_v57  ;;  %vm5302_vm13 = vcmp.lt.f32.partialorder %v1978_v5, 0.0004427343  ;;  %v1990_v46 = vadd.f32 1.0, %v1094_v42 }
 0x26b   : > { %v3158_v55 = vpop.eup %3157  ;;  %v1947_v19 = vmul.f32 0.6931472, %v3156_v39  ;;  %v1993_v52 = vmul.f32 -0.5, %v1094_v42  ;;  %v1969_v24 = vand.u32 2147483647, %v1091_v63  ;;  %3163 = vlog2.f32 %v1981_v21 }
 0x26c   : > { %v2655_v31 = vmax.f32 %v5259_v7, %v5296_v10  ;;  %v1956_v53 = vmul.f32 0.6931472, %v3158_v55  ;;  %v1977_v49 = vmul.f32 %v1976_v50, %v1092_v2  ;;  %v1967_v13 = vadd.f32 1.0, %v1966_v62  ;;  %v6022_v7 = vld [vmem:[#allocation19_spill] sm:$0xff] }
 0x26d   : > { %v1953_v22 = vsel %vm5286_vm11, %v1950_v40, %v1947_v19  ;;  %3165 = vlog2.f32 %v1990_v46  ;;  %v1985_v5 = vadd.f32 1.0, %v1984_v48  ;;  %v1987_v29 = vand.u32 2147483647, %v1093_v57 }
 0x26e   : > { %v2529_v30 = vmul.f32 %v2391_v16, %v1953_v22  ;;  %v1962_v1 = vsel %vm5298_vm12, %v1959_v4, %v1956_v53  ;;  %v1994_v39 = vadd.f32 1.0, %v1993_v52  ;;  %v960_v10 = vadd.f32 %v6022_v7, %v5837_v37  ;;  %v6029_v7 = vld [vmem:[#allocation22_spill] sm:$0xff] }
 0x26f   : > { %v2530_v11 = vmul.f32 %v2396_v51, %v1962_v1  ;;  %v769_v21 = vadd.f32 %v4770_v9, %v3692_v26  ;;  %v1996_v40 = vand.u32 2147483647, %v1094_v42  ;;  %v962_v16 = vadd.f32 %v4778_v43, %v3694_v27 }
 0x270   : > { %v3160_v0 = vpop.eup %3159  ;;  %v2657_v2 = vmax.f32 %v5273_v44, %v2529_v30  ;;  %v771_v4 = vadd.f32 %v4799_v47, %v5833_v35  ;;  %v1096_v58 = vmax.f32 %v960_v10, 0.0  ;;  %v1968_v55 = vmul.f32 %v1967_v13, %v1091_v63 }
 0x271   : > { %v5321_v50 = vmax.f32 %v2654_v45, %v2530_v11  ;;  %v1974_v62 = vmul.f32 0.6931472, %v3160_v0  ;;  %v1095_v48 = vmax.f32 %v769_v21, 0.0  ;;  %vm5323_vm14 = vcmp.lt.f32.partialorder %v1969_v24, 0.0004427343 }
 0x272   : > { %v1986_v9 = vmul.f32 %v1985_v5, %v1093_v57  ;;  %vm5327_vm15 = vcmp.lt.f32.partialorder %v1987_v29, 0.0004427343  ;;  %v1995_v47 = vmul.f32 %v1994_v39, %v1094_v42  ;;  %v2008_v45 = vadd.f32 1.0, %v1096_v58 }
 0x273   : > { %v3162_v46 = vpop.eup %3161  ;;  %v1980_v43 = vsel %vm5302_vm13, %v1977_v49, %v1974_v62  ;;  %v1097_v52 = vmax.f32 %v962_v16, 0.0  ;;  %v2011_v30 = vmul.f32 -0.5, %v1096_v58  ;;  %v1999_v63 = vadd.f32 1.0, %v1095_v48 }
 0x274   : > { %v2532_v53 = vmul.f32 %v2396_v51, %v1980_v43  ;;  %v1965_v22 = vmul.f32 0.6931472, %v3162_v46  ;;  %vm5333_vm0 = vcmp.lt.f32.partialorder %v1996_v40, 0.0004427343  ;;  %3167 = vlog2.f32 %v2008_v45 }
 0x275   : > { %v5337_v57 = vmax.f32 %v771_v4, 0.0  ;;  %v964_v13 = vadd.f32 %v4814_v61, %v5837_v37  ;;  %v3164_v1 = vpop.eup %3163  ;;  %3169 = vlog2.f32 %v1999_v63  ;;  %v2002_v49 = vmul.f32 -0.5, %v1095_v48 }
 0x276   : > { %v5341_v36 = vmax.f32 %v2656_v32, %v2532_v53  ;;  %v1971_v42 = vsel %vm5323_vm14, %v1968_v55, %v1965_v22  ;;  %v1983_v11 = vmul.f32 0.6931472, %v3164_v1  ;;  %v2014_v39 = vand.u32 2147483647, %v1096_v58  ;;  %v2401_v55 = vpop.permute.xlu0 %2400 }
 0x277   : > { %v3166_v5 = vpop.eup %3165  ;;  %v2531_v29 = vmul.f32 %v2396_v51, %v1971_v42  ;;  %v773_v10 = vadd.f32 %v6029_v7, %v3692_v26  ;;  %v2012_v0 = vadd.f32 1.0, %v2011_v30  ;;  %v2017_v40 = vadd.f32 1.0, %v1097_v52  ;;  %v6034_v42 = vld [vmem:[#allocation8_spill] sm:$0xff] }
 0x278   : > { %v1992_v21 = vmul.f32 0.6931472, %v3166_v5  ;;  %v2020_v16 = vmul.f32 -0.5, %v1097_v52  ;;  %v1989_v32 = vsel %vm5327_vm15, %v1986_v9, %v1983_v11  ;;  %v2005_v4 = vand.u32 2147483647, %v1095_v48 }
 0x279   : > { %v5347_v61 = vmax.f32 %v2655_v31, %v2531_v29  ;;  %v2026_v62 = vadd.f32 1.0, %v5337_v57  ;;  %v2533_v19 = vmul.f32 %v2396_v51, %v1989_v32  ;;  %v2003_v43 = vadd.f32 1.0, %v2002_v49  ;;  %v6037_v32 = vld [vmem:[#allocation25_spill] sm:$0xff] }
 0x27a   : > { %v1998_v46 = vsel %vm5333_vm0, %v1995_v47, %v1992_v21  ;;  %3171 = vlog2.f32 %v2017_v40  ;;  %v2023_v53 = vand.u32 2147483647, %v1097_v52  ;;  %v2029_v31 = vmul.f32 -0.5, %v5337_v57 }
 0x27b   : > { %v5354_v45 = vmul.f32 %v2401_v55, %v1998_v46  ;;  %3173 = vlog2.f32 %v2026_v62  ;;  %v5357_v22 = vmax.f32 %v2657_v2, %v2533_v19  ;;  %v2021_v44 = vadd.f32 1.0, %v2020_v16  ;;  %v6038_v46 = vld [vmem:[#allocation11_spill] sm:$0xff] }
 0x27c   : > { %v1100_v9 = vmax.f32 %v964_v13, 0.0  ;;  %vm5361_vm1 = vcmp.lt.f32.partialorder %v2014_v39, 0.0004427343  ;;  %v1099_v47 = vmax.f32 %v773_v10, 0.0  ;;  %v2013_v63 = vmul.f32 %v2012_v0, %v1096_v58 }
 0x27d   : > { %v2662_v30 = vmax.f32 %v5321_v50, %v5354_v45  ;;  %vm5365_vm2 = vcmp.lt.f32.partialorder %v2005_v4, 0.0004427343  ;;  %v966_v2 = vadd.f32 %v6034_v42, %v3694_v27  ;;  %v2004_v5 = vmul.f32 %v2003_v43, %v1095_v48 }
 0x27e   : > { %v2044_v1 = vadd.f32 1.0, %v1100_v9  ;;  %v3168_v49 = vpop.eup %3167  ;;  %vm5371_vm3 = vcmp.lt.f32.partialorder %v2023_v53, 0.0004427343  ;;  %v2030_v50 = vadd.f32 1.0, %v2029_v31  ;;  %v2035_v29 = vadd.f32 1.0, %v1099_v47 }
 0x27f   : > { %v3170_v11 = vpop.eup %3169  ;;  %v2010_v39 = vmul.f32 0.6931472, %v3168_v49  ;;  %v2022_v7 = vmul.f32 %v2021_v44, %v1097_v52  ;;  %v2047_v58 = vmul.f32 -0.5, %v1100_v9  ;;  %v2032_v21 = vand.u32 2147483647, %v5337_v57 }
 0x280   : > { %3175 = vlog2.f32 %v2044_v1  ;;  %v2001_v10 = vmul.f32 0.6931472, %v3170_v11  ;;  %v2050_v0 = vand.u32 2147483647, %v1100_v9  ;;  %v2038_v48 = vmul.f32 -0.5, %v1099_v47 }
 0x281   : > { %3177 = vlog2.f32 %v2035_v29  ;;  %v2016_v40 = vsel %vm5361_vm1, %v2013_v63, %v2010_v39  ;;  %v1101_v16 = vmax.f32 %v966_v2, 0.0  ;;  %v777_v4 = vadd.f32 %v6037_v32, %v5833_v35  ;;  %v2406_v39 = vpop.permute.xlu1 %2405 }
 0x282   : > { %v2536_v62 = vmul.f32 %v2401_v55, %v2016_v40  ;;  %v2007_v19 = vsel %vm5365_vm2, %v2004_v5, %v2001_v10  ;;  %v2031_v52 = vmul.f32 %v2030_v50, %v5337_v57  ;;  %v970_v43 = vadd.f32 %v6038_v46, %v5837_v37 }
 0x283   : > { %v2535_v53 = vmul.f32 %v2401_v55, %v2007_v19  ;;  %v2048_v31 = vadd.f32 1.0, %v2047_v58  ;;  %v2041_v44 = vand.u32 2147483647, %v1099_v47  ;;  %v2053_v51 = vadd.f32 1.0, %v1101_v16 }
 0x284   : > { %v3172_v45 = vpop.eup %3171  ;;  %v2664_v1 = vmax.f32 %v5341_v36, %v2536_v62  ;;  %v1102_v2 = vmax.f32 %v777_v4, 0.0  ;;  %v5386_v49 = vmax.f32 %v970_v43, 0.0  ;;  %v2039_v29 = vadd.f32 1.0, %v2038_v48 }
 0x285   : > { %v3174_v63 = vpop.eup %3173  ;;  %v2019_v42 = vmul.f32 0.6931472, %v3172_v45  ;;  %v2663_v24 = vmax.f32 %v5347_v61, %v2535_v53  ;;  %3179 = vlog2.f32 %v2053_v51  ;;  %vm2033_vm4 = vcmp.lt.f32.partialorder %v2032_v21, 0.0004427343  ;;  %v6043_v53 = vld [vmem:[#allocation23_spill] sm:$0xff] }
 0x286   : > { %v2028_v5 = vmul.f32 0.6931472, %v3174_v63  ;;  %v2056_v50 = vmul.f32 -0.5, %v1101_v16  ;;  %v2062_v11 = vadd.f32 1.0, %v1102_v2  ;;  %vm5393_vm5 = vcmp.lt.f32.partialorder %v2050_v0, 0.0004427343 }
 0x287   : > { %v2025_v57 = vsel %vm5371_vm3, %v2022_v7, %v2019_v42  ;;  %v2065_v40 = vmul.f32 -0.5, %v1102_v2  ;;  %vm5397_vm6 = vcmp.lt.f32.partialorder %v2041_v44, 0.0004427343  ;;  %v2080_v13 = vadd.f32 1.0, %v5386_v49 }
 0x288   : > { %v5391_v58 = vmul.f32 %v2401_v55, %v2025_v57  ;;  %v2034_v10 = vsel %vm2033_vm4, %v2031_v52, %v2028_v5  ;;  %3181 = vlog2.f32 %v2062_v11  ;;  %v2049_v55 = vmul.f32 %v2048_v31, %v1100_v9 }
 0x289   : > { %v2538_v32 = vmul.f32 %v2406_v39, %v2034_v10  ;;  %v2040_v48 = vmul.f32 %v2039_v29, %v1099_v47  ;;  %v2059_v4 = vand.u32 2147483647, %v1101_v16  ;;  %v2057_v52 = vadd.f32 1.0, %v2056_v50 }
 0x28a   : > { %v3176_v7 = vpop.eup %3175  ;;  %v2665_v21 = vmax.f32 %v5357_v22, %v5391_v58  ;;  %3183 = vlog2.f32 %v2080_v13  ;;  %v2066_v43 = vadd.f32 1.0, %v2065_v40  ;;  %v2068_v45 = vand.u32 2147483647, %v1102_v2 }
 0x28b   : > { %v3178_v0 = vpop.eup %3177  ;;  %v5404_v62 = vmax.f32 %v2662_v30, %v2538_v32  ;;  %v2046_v19 = vmul.f32 0.6931472, %v3176_v7  ;;  %v779_v44 = vadd.f32 %v6043_v53, %v3692_v26  ;;  %v2083_v22 = vmul.f32 -0.5, %v5386_v49 }
 0x28c   : > { %v2037_v46 = vmul.f32 0.6931472, %v3178_v0  ;;  %v972_v9 = vadd.f32 %v4895_v33, %v3694_v27  ;;  %v781_v30 = vadd.f32 %v4907_v54, %v5833_v35  ;;  %v974_v42 = vadd.f32 %v4915_v18, %v5837_v37 }
 0x28d   : > { %v2052_v51 = vsel %vm5393_vm5, %v2049_v55, %v2046_v19  ;;  %v1103_v63 = vmax.f32 %v779_v44, 0.0  ;;  %vm5419_vm7 = vcmp.lt.f32.partialorder %v2059_v4, 0.0004427343  ;;  %v2058_v58 = vmul.f32 %v2057_v52, %v1101_v16 }
 0x28e   : > { %v2540_v47 = vmul.f32 %v2406_v39, %v2052_v51  ;;  %v2043_v31 = vsel %vm5397_vm6, %v2040_v48, %v2037_v46  ;;  %v1105_v57 = vmax.f32 %v972_v9, 0.0  ;;  %v1106_v50 = vmax.f32 %v781_v30, 0.0 }
 0x28f   : > { %v2539_v5 = vmul.f32 %v2406_v39, %v2043_v31  ;;  %v3180_v11 = vpop.eup %3179  ;;  %v2086_v54 = vand.u32 2147483647, %v5386_v49  ;;  %v2071_v10 = vadd.f32 1.0, %v1103_v63  ;;  %v2084_v32 = vadd.f32 1.0, %v2083_v22 }
 0x290   : > { %v5423_v33 = vmax.f32 %v2664_v1, %v2540_v47  ;;  %v2055_v40 = vmul.f32 0.6931472, %v3180_v11  ;;  %v2089_v61 = vadd.f32 1.0, %v1105_v57  ;;  %v2067_v18 = vmul.f32 %v2066_v43, %v1102_v2 }
 0x291   : > { %v5426_v36 = vmax.f32 %v2663_v24, %v2539_v5  ;;  %vm5428_vm8 = vcmp.lt.f32.partialorder %v2068_v45, 0.0004427343  ;;  %3185 = vlog2.f32 %v2071_v10  ;;  %v5432_v7 = vmax.f32 %v974_v42, 0.0  ;;  %v2411_v45 = vpop.permute.xlu0 %2410 }
 0x292   : > { %v3182_v55 = vpop.eup %3181  ;;  %v2061_v16 = vsel %vm5419_vm7, %v2058_v58, %v2055_v40  ;;  %v2074_v1 = vmul.f32 -0.5, %v1103_v63  ;;  %3187 = vlog2.f32 %v2089_v61  ;;  %v2098_v48 = vadd.f32 1.0, %v1106_v50 }
 0x293   : > { %v2541_v24 = vmul.f32 %v2406_v39, %v2061_v16  ;;  %v2064_v4 = vmul.f32 0.6931472, %v3182_v55  ;;  %vm5436_vm9 = vcmp.lt.f32.partialorder %v2086_v54, 0.0004427343  ;;  %v2092_v2 = vmul.f32 -0.5, %v1105_v57 }
 0x294   : > { %v3184_v19 = vpop.eup %3183  ;;  %v2085_v52 = vmul.f32 %v2084_v32, %v5386_v49  ;;  %v2077_v46 = vand.u32 2147483647, %v1103_v63  ;;  %3189 = vlog2.f32 %v2098_v48  ;;  %v2101_v43 = vmul.f32 -0.5, %v1106_v50 }
 0x295   : > { %v5441_v53 = vmax.f32 %v2665_v21, %v2541_v24  ;;  %v2070_v44 = vsel %vm5428_vm8, %v2067_v18, %v2064_v4  ;;  %v2082_v51 = vmul.f32 0.6931472, %v3184_v19  ;;  %v2116_v39 = vadd.f32 1.0, %v5432_v7 }
 0x296   : > { %v2542_v22 = vmul.f32 %v2411_v45, %v2070_v44  ;;  %v2075_v9 = vadd.f32 1.0, %v2074_v1  ;;  %v2095_v30 = vand.u32 2147483647, %v1105_v57  ;;  %v2119_v47 = vmul.f32 -0.5, %v5432_v7 }
 0x297   : > { %v2088_v49 = vsel %vm5436_vm9, %v2085_v52, %v2082_v51  ;;  %v2093_v31 = vadd.f32 1.0, %v2092_v2  ;;  %3191 = vlog2.f32 %v2116_v39  ;;  %v783_v21 = vadd.f32 %v4934_v56, %v3692_v26 }
 0x298   : > { %v2670_v42 = vmax.f32 %v5404_v62, %v2542_v22  ;;  %v5452_v5 = vmul.f32 %v2411_v45, %v2088_v49  ;;  %v2102_v29 = vadd.f32 1.0, %v2101_v43  ;;  %v2104_v11 = vand.u32 2147483647, %v1106_v50 }
 0x299   : > { %v2120_v58 = vadd.f32 1.0, %v2119_v47  ;;  %v1107_v54 = vmax.f32 %v783_v21, 0.0  ;;  %v976_v10 = vadd.f32 %v4948_v60, %v3694_v27  ;;  %v787_v40 = vadd.f32 %v4985_v14, %v5833_v35 }
 0x29a   : > { %v2672_v32 = vmax.f32 %v5423_v33, %v5452_v5  ;;  %v2076_v61 = vmul.f32 %v2075_v9, %v1103_v63  ;;  %vm5460_vm10 = vcmp.lt.f32.partialorder %v2077_v46, 0.0004427343  ;;  %vm5464_vm11 = vcmp.lt.f32.partialorder %v2095_v30, 0.0004427343  ;;  %v2416_v9 = vpop.permute.xlu1 %2415 }
 0x29b   : > { %v3186_v18 = vpop.eup %3185  ;;  %v2094_v13 = vmul.f32 %v2093_v31, %v1105_v57  ;;  %v2107_v55 = vadd.f32 1.0, %v1107_v54  ;;  %v1109_v16 = vmax.f32 %v976_v10, 0.0  ;;  %v980_v60 = vadd.f32 %v4987_v8, %v5837_v37 }
 0x29c   : > { %v3188_v14 = vpop.eup %3187  ;;  %v2073_v1 = vmul.f32 0.6931472, %v3186_v18  ;;  %v2103_v48 = vmul.f32 %v2102_v29, %v1106_v50  ;;  %vm5470_vm12 = vcmp.lt.f32.partialorder %v2104_v11, 0.0004427343  ;;  %v2122_v33 = vand.u32 2147483647, %v5432_v7 }
 0x29d   : > { %v2091_v24 = vmul.f32 0.6931472, %v3188_v14  ;;  %v2121_v4 = vmul.f32 %v2120_v58, %v5432_v7  ;;  %3193 = vlog2.f32 %v2107_v55  ;;  %v1110_v0 = vmax.f32 %v787_v40, 0.0 }
 0x29e   : > { %v3190_v57 = vpop.eup %3189  ;;  %v2079_v2 = vsel %vm5460_vm10, %v2076_v61, %v2073_v1  ;;  %v2110_v19 = vmul.f32 -0.5, %v1107_v54  ;;  %v2125_v8 = vadd.f32 1.0, %v1109_v16  ;;  %v789_v50 = vadd.f32 %v4995_v20, %v3692_v26 }
 0x29f   : > { %v2543_v52 = vmul.f32 %v2411_v45, %v2079_v2  ;;  %v2097_v46 = vsel %vm5464_vm11, %v2094_v13, %v2091_v24  ;;  %v2100_v43 = vmul.f32 0.6931472, %v3190_v57  ;;  %v5482_v44 = vmax.f32 %v980_v60, 0.0 }
 0x2a0   : > { %v5484_v51 = vmul.f32 %v2411_v45, %v2097_v46  ;;  %v2113_v7 = vand.u32 2147483647, %v1107_v54  ;;  %3195 = vlog2.f32 %v2125_v8  ;;  %v2128_v39 = vmul.f32 -0.5, %v1109_v16 }
 0x2a1   : > { %v3192_v22 = vpop.eup %3191  ;;  %v2671_v30 = vmax.f32 %v5426_v36, %v2543_v52  ;;  %v2106_v47 = vsel %vm5470_vm12, %v2103_v48, %v2100_v43  ;;  %v2134_v20 = vadd.f32 1.0, %v1110_v0  ;;  %v2137_v49 = vmul.f32 -0.5, %v1110_v0 }
 0x2a2   : > { %v2673_v31 = vmax.f32 %v5441_v53, %v5484_v51  ;;  %v2546_v21 = vmul.f32 %v2416_v9, %v2106_v47  ;;  %v2118_v5 = vmul.f32 0.6931472, %v3192_v22  ;;  %v5491_v29 = vmax.f32 %v789_v50, 0.0 }
 0x2a3   : > { %vm2123_vm13 = vcmp.lt.f32.partialorder %v2122_v33, 0.0004427343  ;;  %v2111_v45 = vadd.f32 1.0, %v2110_v19  ;;  %3197 = vlog2.f32 %v2134_v20  ;;  %v2152_v11 = vadd.f32 1.0, %v5482_v44 }
 0x2a4   : > { %v5494_v58 = vmax.f32 %v2670_v42, %v2546_v21  ;;  %v2124_v36 = vsel %vm2123_vm13, %v2121_v4, %v2118_v5  ;;  %vm5496_vm14 = vcmp.lt.f32.partialorder %v2113_v7, 0.0004427343  ;;  %v2131_v40 = vand.u32 2147483647, %v1109_v16 }
 0x2a5   : > { %v2548_v61 = vmul.f32 %v2416_v9, %v2124_v36  ;;  %v2129_v56 = vadd.f32 1.0, %v2128_v39  ;;  %v2138_v53 = vadd.f32 1.0, %v2137_v49  ;;  %3199 = vlog2.f32 %v2152_v11 }
 0x2a6   : > { %v2140_v62 = vand.u32 2147483647, %v1110_v0  ;;  %v2155_v18 = vmul.f32 -0.5, %v5482_v44  ;;  %v2143_v13 = vadd.f32 1.0, %v5491_v29  ;;  %v2146_v55 = vmul.f32 -0.5, %v5491_v29 }
 0x2a7   : > { %v3194_v60 = vpop.eup %3193  ;;  %v5503_v42 = vmax.f32 %v2672_v32, %v2548_v61  ;;  %v2112_v14 = vmul.f32 %v2111_v45, %v1107_v54  ;;  %v982_v1 = vadd.f32 %v5001_v38, %v3694_v27  ;;  %v791_v48 = vadd.f32 %v5024_v6, %v5833_v35 }
 0x2a8   : > { %v2109_v63 = vmul.f32 0.6931472, %v3194_v60  ;;  %vm5509_vm15 = vcmp.lt.f32.partialorder %v2131_v40, 0.0004427343  ;;  %v2158_v24 = vand.u32 2147483647, %v5482_v44  ;;  %3201 = vlog2.f32 %v2143_v13 }
 0x2a9   : > { %v2130_v4 = vmul.f32 %v2129_v56, %v1109_v16  ;;  %v2139_v57 = vmul.f32 %v2138_v53, %v1110_v0  ;;  %v1113_v2 = vmax.f32 %v982_v1, 0.0  ;;  %v5514_v32 = vmax.f32 %v791_v48, 0.0 }
 0x2aa   : > { %v3196_v54 = vpop.eup %3195  ;;  %v2115_v38 = vsel %vm5496_vm14, %v2112_v14, %v2109_v63  ;;  %vm5518_vm0 = vcmp.lt.f32.partialorder %v2140_v62, 0.0004427343  ;;  %v2156_v6 = vadd.f32 1.0, %v2155_v18  ;;  %v2147_v8 = vadd.f32 1.0, %v2146_v55 }
 0x2ab   : > { %v2547_v50 = vmul.f32 %v2416_v9, %v2115_v38  ;;  %v2127_v52 = vmul.f32 0.6931472, %v3196_v54  ;;  %v2161_v46 = vadd.f32 1.0, %v1113_v2  ;;  %v984_v16 = vadd.f32 %v5026_v3, %v5837_v37 }
 0x2ac   : > { %vm5524_vm1 = vcmp.lt.f32.partialorder %v2158_v24, 0.0004427343  ;;  %v2149_v43 = vand.u32 2147483647, %v5491_v29  ;;  %v2170_v51 = vadd.f32 1.0, %v5514_v32  ;;  %v793_v7 = vadd.f32 %v5058_v28, %v3692_v26 }
 0x2ad   : > { %v3198_v39 = vpop.eup %3197  ;;  %v5532_v22 = vmax.f32 %v2671_v30, %v2547_v50  ;;  %v2133_v47 = vsel %vm5509_vm15, %v2130_v4, %v2127_v52  ;;  %3203 = vlog2.f32 %v2161_v46  ;;  %v2164_v20 = vmul.f32 -0.5, %v1113_v2  ;;  %v2421_v30 = vpop.permute.xlu0 %2420 }
 0x2ae   : > { %v2549_v3 = vmul.f32 %v2416_v9, %v2133_v47  ;;  %v2136_v49 = vmul.f32 0.6931472, %v3198_v39  ;;  %3205 = vlog2.f32 %v2170_v51  ;;  %v2173_v21 = vmul.f32 -0.5, %v5514_v32 }
 0x2af   : > { %v3200_v5 = vpop.eup %3199  ;;  %v2157_v45 = vmul.f32 %v2156_v6, %v5482_v44  ;;  %v2148_v11 = vmul.f32 %v2147_v8, %v5491_v29  ;;  %v1116_v36 = vmax.f32 %v984_v16, 0.0  ;;  %v986_v28 = vadd.f32 %v5073_v34, %v3694_v27 }
 0x2b0   : > { %v5541_v10 = vmax.f32 %v2673_v31, %v2549_v3  ;;  %v2142_v40 = vsel %vm5518_vm0, %v2139_v57, %v2136_v49  ;;  %v2154_v9 = vmul.f32 0.6931472, %v3200_v5  ;;  %v1115_v61 = vmax.f32 %v793_v7, 0.0  ;;  %v2426_v7 = vpop.permute.xlu1 %2425 }
 0x2b1   : > { %v2550_v56 = vmul.f32 %v2421_v30, %v2142_v40  ;;  %v2165_v53 = vadd.f32 1.0, %v2164_v20  ;;  %v2167_v62 = vand.u32 2147483647, %v1113_v2  ;;  %v2188_v18 = vadd.f32 1.0, %v1116_v36 }
 0x2b2   : > { %v3202_v13 = vpop.eup %3201  ;;  %v2160_v44 = vsel %vm5524_vm1, %v2157_v45, %v2154_v9  ;;  %v2174_v29 = vadd.f32 1.0, %v2173_v21  ;;  %v2191_v55 = vmul.f32 -0.5, %v1116_v36  ;;  %v2179_v60 = vadd.f32 1.0, %v1115_v61 }
 0x2b3   : > { %v2678_v34 = vmax.f32 %v5494_v58, %v2550_v56  ;;  %v5548_v31 = vmul.f32 %v2421_v30, %v2160_v44  ;;  %v2145_v14 = vmul.f32 0.6931472, %v3202_v13  ;;  %3207 = vlog2.f32 %v2188_v18 }
 0x2b4   : > { %vm2150_vm2 = vcmp.lt.f32.partialorder %v2149_v43, 0.0004427343  ;;  %v2176_v1 = vand.u32 2147483647, %v5514_v32  ;;  %3209 = vlog2.f32 %v2179_v60  ;;  %v2182_v33 = vmul.f32 -0.5, %v1115_v61 }
 0x2b5   : > { %v2680_v48 = vmax.f32 %v5503_v42, %v5548_v31  ;;  %v2151_v63 = vsel %vm2150_vm2, %v2148_v11, %v2145_v14  ;;  %v5553_v24 = vmax.f32 %v986_v28, 0.0  ;;  %v2166_v57 = vmul.f32 %v2165_v53, %v1113_v2 }
 0x2b6   : > { %v2551_v4 = vmul.f32 %v2421_v30, %v2151_v63  ;;  %vm5555_vm3 = vcmp.lt.f32.partialorder %v2167_v62, 0.0004427343  ;;  %v797_v58 = vadd.f32 %v5100_v12, %v5833_v35  ;;  %v2175_v19 = vmul.f32 %v2174_v29, %v5514_v32 }
 0x2b7   : > { %v3204_v38 = vpop.eup %3203  ;;  %v2192_v6 = vadd.f32 1.0, %v2191_v55  ;;  %v2194_v8 = vand.u32 2147483647, %v1116_v36  ;;  %v2197_v42 = vadd.f32 1.0, %v5553_v24  ;;  %v990_v2 = vadd.f32 %v5106_v23, %v5837_v37 }
 0x2b8   : > { %v3206_v50 = vpop.eup %3205  ;;  %v2679_v52 = vmax.f32 %v5532_v22, %v2551_v4  ;;  %v2163_v46 = vmul.f32 0.6931472, %v3204_v38  ;;  %v5564_v16 = vmax.f32 %v797_v58, 0.0  ;;  %v2183_v43 = vadd.f32 1.0, %v2182_v33 }
 0x2b9   : > { %v2172_v0 = vmul.f32 0.6931472, %v3206_v50  ;;  %v2185_v51 = vand.u32 2147483647, %v1115_v61  ;;  %3211 = vlog2.f32 %v2197_v42  ;;  %vm2177_vm4 = vcmp.lt.f32.partialorder %v2176_v1, 0.0004427343 }
 0x2ba   : > { %v2169_v12 = vsel %vm5555_vm3, %v2166_v57, %v2163_v46  ;;  %v2206_v32 = vadd.f32 1.0, %v5564_v16  ;;  %v2200_v22 = vmul.f32 -0.5, %v5553_v24  ;;  %v5572_v20 = vmax.f32 %v990_v2, 0.0 }
 0x2bb   : > { %v2553_v39 = vmul.f32 %v2421_v30, %v2169_v12  ;;  %v2178_v47 = vsel %vm2177_vm4, %v2175_v19, %v2172_v0  ;;  %v2193_v49 = vmul.f32 %v2192_v6, %v1116_v36  ;;  %vm5574_vm5 = vcmp.lt.f32.partialorder %v2194_v8, 0.0004427343 }
 0x2bc   : > { %v2554_v3 = vmul.f32 %v2426_v7, %v2178_v47  ;;  %3213 = vlog2.f32 %v2206_v32  ;;  %v2184_v45 = vmul.f32 %v2183_v43, %v1115_v61  ;;  %vm5579_vm6 = vcmp.lt.f32.partialorder %v2185_v51, 0.0004427343 }
 0x2bd   : > { %v3208_v21 = vpop.eup %3207  ;;  %v2681_v5 = vmax.f32 %v5541_v10, %v2553_v39  ;;  %v2224_v28 = vadd.f32 1.0, %v5572_v20  ;;  %v2203_v36 = vand.u32 2147483647, %v5553_v24  ;;  %v799_v56 = vadd.f32 %v5110_v17, %v3692_v26 }
 0x2be   : > { %v3210_v30 = vpop.eup %3209  ;;  %v5584_v40 = vmax.f32 %v2678_v34, %v2554_v3  ;;  %v2190_v9 = vmul.f32 0.6931472, %v3208_v21  ;;  %v2201_v62 = vadd.f32 1.0, %v2200_v22  ;;  %v2209_v10 = vmul.f32 -0.5, %v5564_v16 }
 0x2bf   : > { %v2181_v53 = vmul.f32 0.6931472, %v3210_v30  ;;  %3215 = vlog2.f32 %v2224_v28  ;;  %v5592_v18 = vmax.f32 %v799_v56, 0.0  ;;  %v992_v13 = vadd.f32 %v5131_v41, %v3694_v27 }
 0x2c0   : > { %v2196_v61 = vsel %vm5574_vm5, %v2193_v49, %v2190_v9  ;;  %v801_v44 = vadd.f32 %v5148_v59, %v5833_v35  ;;  %v2227_v55 = vmul.f32 -0.5, %v5572_v20  ;;  %v994_v60 = vadd.f32 %v5154_v25, %v5837_v37 }
 0x2c1   : > { %v2556_v29 = vmul.f32 %v2426_v7, %v2196_v61  ;;  %v2187_v17 = vsel %vm5579_vm6, %v2184_v45, %v2181_v53  ;;  %v2212_v31 = vand.u32 2147483647, %v5564_v16  ;;  %v2215_v14 = vadd.f32 1.0, %v5592_v18 }
 0x2c2   : > { %v2555_v34 = vmul.f32 %v2426_v7, %v2187_v17  ;;  %v2210_v41 = vadd.f32 1.0, %v2209_v10  ;;  %v1121_v33 = vmax.f32 %v992_v13, 0.0  ;;  %v5607_v35 = vmax.f32 %v801_v44, 0.0 }
 0x2c3   : > { %v3212_v1 = vpop.eup %3211  ;;  %v5605_v63 = vmax.f32 %v2680_v48, %v2556_v29  ;;  %v2202_v57 = vmul.f32 %v2201_v62, %v5553_v24  ;;  %3217 = vlog2.f32 %v2215_v14  ;;  %vm2204_vm7 = vcmp.lt.f32.partialorder %v2203_v36, 0.0004427343 }
 0x2c4   : > { %v5609_v59 = vmax.f32 %v2679_v52, %v2555_v34  ;;  %v2199_v4 = vmul.f32 0.6931472, %v3212_v1  ;;  %v2228_v37 = vadd.f32 1.0, %v2227_v55  ;;  %v2233_v25 = vadd.f32 1.0, %v1121_v33  ;;  %v2431_v52 = vpop.permute.xlu0 %2430 }
 0x2c5   : > { %v5612_v54 = vmax.f32 %v994_v60, 0.0  ;;  %v2230_v48 = vand.u32 2147483647, %v5572_v20  ;;  %v2218_v19 = vmul.f32 -0.5, %v5592_v18  ;;  %v2242_v6 = vadd.f32 1.0, %v5607_v35 }
 0x2c6   : > { %v3214_v58 = vpop.eup %3213  ;;  %v2205_v38 = vsel %vm2204_vm7, %v2202_v57, %v2199_v4  ;;  %v2211_v50 = vmul.f32 %v2210_v41, %v5564_v16  ;;  %3219 = vlog2.f32 %v2233_v25  ;;  %vm2213_vm8 = vcmp.lt.f32.partialorder %v2212_v31, 0.0004427343 }
 0x2c7   : > { %v2557_v8 = vmul.f32 %v2426_v7, %v2205_v38  ;;  %v2208_v42 = vmul.f32 0.6931472, %v3214_v58  ;;  %3221 = vlog2.f32 %v2242_v6  ;;  %v2229_v0 = vmul.f32 %v2228_v37, %v5572_v20  ;;  %v6070_v20 = vld [vmem:[#allocation9_spill] sm:$0xff] }
 0x2c8   : > { %v2260_v43 = vadd.f32 1.0, %v5612_v54  ;;  %v2219_v32 = vadd.f32 1.0, %v2218_v19  ;;  %v2236_v39 = vmul.f32 -0.5, %v1121_v33  ;;  %vm2231_vm9 = vcmp.lt.f32.partialorder %v2230_v48, 0.0004427343 }
 0x2c9   : > { %v3216_v24 = vpop.eup %3215  ;;  %v5618_v46 = vmax.f32 %v2681_v5, %v2557_v8  ;;  %v2214_v2 = vsel %vm2213_vm8, %v2211_v50, %v2208_v42  ;;  %v2245_v7 = vmul.f32 -0.5, %v5607_v35  ;;  %v803_v16 = vadd.f32 %v5169_v15, %v3692_v26 }
 0x2ca   : > { %v2558_v51 = vmul.f32 %v2431_v52, %v2214_v2  ;;  %v2226_v12 = vmul.f32 0.6931472, %v3216_v24  ;;  %3223 = vlog2.f32 %v2260_v43  ;;  %v2221_v3 = vand.u32 2147483647, %v5592_v18 }
 0x2cb   : > { %v996_v49 = vadd.f32 %v6070_v20, %v3694_v27  ;;  %v2239_v21 = vand.u32 2147483647, %v1121_v33  ;;  %v1123_v5 = vmax.f32 %v803_v16, 0.0  ;;  %v2220_v11 = vmul.f32 %v2219_v32, %v5592_v18 }
 0x2cc   : > { %v2686_v47 = vmax.f32 %v5584_v40, %v2558_v51  ;;  %v2232_v22 = vsel %vm2231_vm9, %v2229_v0, %v2226_v12  ;;  %v2237_v28 = vadd.f32 1.0, %v2236_v39  ;;  %v2263_v30 = vmul.f32 -0.5, %v5612_v54 }
 0x2cd   : > { %v2560_v23 = vmul.f32 %v2431_v52, %v2232_v22  ;;  %v3218_v45 = vpop.eup %3217  ;;  %v1125_v9 = vmax.f32 %v996_v49, 0.0  ;;  %v2246_v40 = vadd.f32 1.0, %v2245_v7  ;;  %v2251_v36 = vadd.f32 1.0, %v1123_v5 }
 0x2ce   : > { %v2217_v15 = vmul.f32 0.6931472, %v3218_v45  ;;  %vm2222_vm10 = vcmp.lt.f32.partialorder %v2221_v3, 0.0004427343  ;;  %v2248_v56 = vand.u32 2147483647, %v5607_v35  ;;  %v2238_v44 = vmul.f32 %v2237_v28, %v1121_v33 }
 0x2cf   : > { %v2688_v26 = vmax.f32 %v5605_v63, %v2560_v23  ;;  %v2269_v53 = vadd.f32 1.0, %v1125_v9  ;;  %vm5633_vm11 = vcmp.lt.f32.partialorder %v2239_v21, 0.0004427343  ;;  %3225 = vlog2.f32 %v2251_v36  ;;  %v2436_v63 = vpop.permute.xlu1 %2435 }
 0x2d0   : > { %v3220_v27 = vpop.eup %3219  ;;  %v2223_v62 = vsel %vm2222_vm10, %v2220_v11, %v2217_v15  ;;  %v2264_v29 = vadd.f32 1.0, %v2263_v30  ;;  %v2247_v55 = vmul.f32 %v2246_v40, %v5607_v35  ;;  %v2266_v60 = vand.u32 2147483647, %v5612_v54 }
 0x2d1   : > { %v3222_v61 = vpop.eup %3221  ;;  %v2559_v18 = vmul.f32 %v2431_v52, %v2223_v62  ;;  %v2235_v13 = vmul.f32 0.6931472, %v3220_v27  ;;  %3227 = vlog2.f32 %v2269_v53  ;;  %vm2249_vm12 = vcmp.lt.f32.partialorder %v2248_v56, 0.0004427343 }
 0x2d2   : > { %v2244_v17 = vmul.f32 0.6931472, %v3222_v61  ;;  %v2254_v14 = vmul.f32 -0.5, %v1123_v5  ;;  %v2265_v37 = vmul.f32 %v2264_v29, %v5612_v54  ;;  %v2272_v35 = vmul.f32 -0.5, %v1125_v9 }
 0x2d3   : > { %v2687_v34 = vmax.f32 %v5609_v59, %v2559_v18  ;;  %v2241_v31 = vsel %vm5633_vm11, %v2238_v44, %v2235_v13  ;;  %vm2267_vm13 = vcmp.lt.f32.partialorder %v2266_v60, 0.0004427343  ;;  %v2257_v19 = vand.u32 2147483647, %v1123_v5 }
 0x2d4   : > { %v3224_v1 = vpop.eup %3223  ;;  %v2561_v41 = vmul.f32 %v2431_v52, %v2241_v31  ;;  %v2250_v4 = vsel %vm2249_vm12, %v2247_v55, %v2244_v17  ;;  %v2255_v38 = vadd.f32 1.0, %v2254_v14  ;;  %v2273_v6 = vadd.f32 1.0, %v2272_v35 }
 0x2d5   : > { %v2562_v33 = vmul.f32 %v2436_v63, %v2250_v4  ;;  %v2262_v57 = vmul.f32 0.6931472, %v3224_v1  ;;  %v2275_v50 = vand.u32 2147483647, %v1125_v9  ;;  %vm2258_vm14 = vcmp.lt.f32.partialorder %v2257_v19, 0.0004427343 }
 0x2d6   : > { %v2689_v25 = vmax.f32 %v5618_v46, %v2561_v41  ;;  %v2256_v52 = vmul.f32 %v2255_v38, %v1123_v5  ;;  %v2274_v0 = vmul.f32 %v2273_v6, %v1125_v9 }
 0x2d7   : > { %v2690_v58 = vmax.f32 %v2686_v47, %v2562_v33  ;;  %v2268_v59 = vsel %vm2267_vm13, %v2265_v37, %v2262_v57  ;;  %vm2276_vm15 = vcmp.lt.f32.partialorder %v2275_v50, 0.0004427343 }
 0x2d8   : > { %v2564_v48 = vmul.f32 %v2436_v63, %v2268_v59 }
 0x2d9   : > { %2694 = vst [vmem:[%s229_s25] sm:$0xff] %v2690_v58  ;;  %v3226_v8 = vpop.eup %3225 }
 0x2da   : > { %v2692_v42 = vmax.f32 %v2688_v26, %v2564_v48  ;;  %v2253_v24 = vmul.f32 0.6931472, %v3226_v8 }
 0x2db   : > { %v3228_v2 = vpop.eup %3227 }
 0x2dc   : > { %2696 = vst [vmem:[%s229_s25 + $0x10] sm:$0xff] %v2692_v42  ;;  %v2259_v54 = vsel %vm2258_vm14, %v2256_v52, %v2253_v24  ;;  %v2271_v46 = vmul.f32 0.6931472, %v3228_v2 }
 0x2dd   : > { %v2563_v43 = vmul.f32 %v2436_v63, %v2259_v54 }
 0x2de   : > { %v2277_v51 = vsel %vm2276_vm15, %v2274_v0, %v2271_v46 }
 0x2df   : > { %v2691_v12 = vmax.f32 %v2687_v34, %v2563_v43  ;;  %v2565_v32 = vmul.f32 %v2436_v63, %v2277_v51 }
 0x2e1   : > { %v2693_v39 = vmax.f32 %v2689_v25, %v2565_v32  ;;  %2695 = vst [vmem:[%s229_s25 + $0x8] sm:$0xff] %v2691_v12 }
 0x2e3   : > { %2697 = vst [vmem:[%s229_s25 + $0x18] sm:$0xff] %v2693_v39 }
 0x2e4   : > { %3272 = shalt.err (!%p3269_p5)
}
 0x2e5   : > { %s3273_s14 = scalar_lea.hbm %s5649_s7, 512  ;;  %s3277_s8 = scalar_lea.hbm %s5697_s4, 1024 }
 0x2e6   : > { %p3274_p7 = scmp.ne.s32.totalorder %s5649_s7, %s3273_s14  ;;  %p3278_p0 = scmp.lt.u32.totalorder %s5649_s7, %s5697_s4 }
 0x2e7   : > { %p3279_p2 = scmp.lt.u32.totalorder %s3277_s8, %s3273_s14  ;;  %p3281_p11 = scmp.lt.u32.totalorder %s3273_s14, %s5649_s7 }
 0x2e8   : > { %p3275_p8 = pnand %p3274_p7, %p6073_p12 }
 0x2e9   : > { %p3280_p6 = por %p3279_p2, %p3278_p0 }
 0x2ea   : > { %p3276_p9 = pneg %p3275_p8 }
 0x2eb   : > { %p3282_p13 = por %p3281_p11, %p3280_p6 }
 0x2ed   : > { %p3283_p4 = pnand %p3282_p13, %p3276_p9 }
 0x2ef   : > { %3286 = shalt.err (!%p3283_p4)
}
 0x2f0   : > { %2859 = dma.vmem_to_hbm [thread:$0]  (%p6073_p12), %s5651_s30, 512, %s5649_s7, %s2699_s9  }
 0x2f1 PF: > { %s2725_s12 = sand.u32 1, %s3313_s15   ;;  %p6074_p10 = scmp.ne.s32.totalorder %s5710_s28, 0 }
 0x2f2   : > { %p6075_p1 = scmp.ge.s32.totalorder %s3325_s18, 2  ;;  %s2726_s25 = scalar_lea.sflag [#allocation4], %s2725_s12 }
 0x2f4   : > { %p2866_p3 = pnand %p6075_p1, %p6074_p10 }
 0x2f6   : > { %3308 = dma.done.wait (!%p2866_p3), %s2726_s25, 512  }
 0x2f7   : > { %3310 = vsyncadd (!%p2866_p3), %s2726_s25, 4294966784  ;;  %p17_p5 = scmp.ge.s32.totalorder %s3383_s21, 4   ;;  %s6076_s15 = smov %s3317_s16 }
 0x2f8   : > { %s6077_s16 = smov %s3321_s17  ;;  %s6078_s17 = smov %s3395_s24 }
 0x2f9   : > { %s6079_s18 = smov %s3383_s21  ;;  %19 = sbr.rel (!%p17_p5) target bundleno = 5 (0x5), region = 84 }
 0x300   :  { %2731 = vsyncpa [#allocation3], 1 }
 0x301   :  { %2733 = vsyncpa [#allocation3 + $0x1], 1 }
 0x302   :  { %2734 = vsyncpa [#allocation4], 1 }
 0x303   :  { %2736 = vsyncpa [#allocation4 + $0x1], 1 }

</bundles_post_ra>
